<compile_context>
chip_gen: v7x
topology: tpu7x:2x2x1
jax: 0.10.0
libtpu: 0.0.40
codegen_flags: <defaults>
</compile_context>

<pallas_src>
import numpy as np
import jax
import jax.numpy as jnp
from jax import lax
from jax.experimental import pallas as pl
from jax.experimental.pallas import tpu as pltpu

KH = KW = 3


def _round_up(x, m):
    return ((x + m - 1) // m) * m


def make_basic_block_call(N, H, W, Cin, Cout, MT, n_m, P):
    """Builds the pallas_call for a fixed geometry.

    Row axis = flattened once-padded image (Hp*Wp), padded up to FH_pad =
    n_m*MT rows; the h1 scratch slab adds a P-row halo on both sides so a
    3x3 tap is a static row shift."""
    Hp, Wp = H + 2, W + 2
    FH = Hp * Wp
    FH_pad = MT * n_m
    L = FH_pad + 2 * P                    # h1 slab rows (halo + padded interior)
    K1 = KH * KW * Cin                    # im2col depth for conv1

    def kernel(mask_ref, x1_ref, xc_ref, w1_ref, b1_ref, w2_ref, b2_ref,
               ws_ref, bs_ref, alpha_ref, out_ref, h1_ref):
        alpha = alpha_ref[0]

        def trelu(v):                     # F.relu(v - alpha) + alpha
            return jnp.maximum(v - alpha, 0.0) + alpha

        # hoisted small operands (loaded once per grid step)
        w1 = w1_ref[...]                  # (9*Cin, Cout)
        b1 = b1_ref[...]                  # (1, Cout)
        b2 = b2_ref[...]
        bs = bs_ref[...]
        ws = ws_ref[...]                  # (Cin, Cout) 1x1 shortcut

        # Zero only the halo rows of the h1 slab, once per grid step.  The
        # interior [P, P+FH_pad) is fully overwritten below.  Not guarded by
        # program_id: under megacore each core has its own scratch.
        h1_ref[pl.ds(0, P), :] = jnp.zeros((P, Cout), jnp.float32)
        h1_ref[pl.ds(P + FH_pad, P), :] = jnp.zeros((P, Cout), jnp.float32)

        # ---- phase 1: conv1 = single K=9*Cin matmul per M-tile ------------
        for mt in range(n_m):             # static unrolled loop (n_m small)
            m0 = mt * MT
            xt = x1_ref[0, pl.ds(m0, MT), :]                   # (MT, 9*Cin)
            acc1 = jnp.dot(xt, w1, preferred_element_type=jnp.float32)
            # mask zeroes the padding border (and the FH..FH_pad junk rows)
            # so conv2 sees a correctly zero-padded h1.
            h1 = trelu(acc1 + b1) * mask_ref[pl.ds(m0, MT), :]
            h1_ref[pl.ds(P + m0, MT), :] = h1                  # aligned store

        # ---- phase 2: conv2 (9 row-shift taps) + 1x1 shortcut + TReLU -----
        for mt in range(n_m):
            m0 = mt * MT
            acc2 = jnp.zeros((MT, Cout), jnp.float32)
            for kh in range(KH):
                for kw in range(KW):
                    off = P + m0 + (kh - 1) * Wp + (kw - 1)    # static offset
                    ht = h1_ref[pl.ds(off, MT), :]             # (MT, Cout)
                    acc2 = acc2 + jnp.dot(ht, w2_ref[kh * KW + kw],
                                          preferred_element_type=jnp.float32)
            sc = jnp.dot(xc_ref[0, pl.ds(m0, MT), :], ws,      # 1x1 shortcut
                         preferred_element_type=jnp.float32)
            out = trelu(acc2 + b2 + sc + bs)
            out_ref[0, pl.ds(m0, MT), :] = out.astype(out_ref.dtype)

    grid_spec = pltpu.PrefetchScalarGridSpec(
        num_scalar_prefetch=0,
        grid=(N,),                                             # one image / step
        in_specs=[
            pl.BlockSpec((FH_pad, 1), lambda g: (0, 0)),              # interior mask
            pl.BlockSpec((1, FH_pad, K1), lambda g: (g, 0, 0)),       # im2col x
            pl.BlockSpec((1, FH_pad, Cin), lambda g: (g, 0, 0)),      # center x (shortcut)
            pl.BlockSpec((K1, Cout), lambda g: (0, 0)),               # w1 (folded)
            pl.BlockSpec((1, Cout), lambda g: (0, 0)),                # b1
            pl.BlockSpec((KH * KW, Cout, Cout), lambda g: (0, 0, 0)), # w2 taps
            pl.BlockSpec((1, Cout), lambda g: (0, 0)),                # b2
            pl.BlockSpec((Cin, Cout), lambda g: (0, 0)),              # ws (1x1)
            pl.BlockSpec((1, Cout), lambda g: (0, 0)),                # bs
            pl.BlockSpec(memory_space=pltpu.MemorySpace.SMEM),        # alpha (1,)
        ],
        out_specs=pl.BlockSpec((1, FH_pad, Cout), lambda g: (g, 0, 0)),
        scratch_shapes=[pltpu.VMEM((L, Cout), jnp.float32)],          # padded h1 slab
    )

    return pl.pallas_call(
        kernel,
        out_shape=jax.ShapeDtypeStruct((N, FH_pad, Cout), jnp.float32),
        grid_spec=grid_spec,
        compiler_params=pltpu.CompilerParams(
            dimension_semantics=("parallel",),
            vmem_limit_bytes=32 * 1024 * 1024,
        ),
    )


# ---------------- plain-JAX parameter glue ----------------
def weight_norm(v, g):
    # PyTorch weight_norm, dim=0: w = g * v / ||v||, norm over (Cin, kH, kW)
    norm = jnp.sqrt(jnp.sum(v * v, axis=(1, 2, 3), keepdims=True))
    return v * (g.reshape(-1, 1, 1, 1) / norm)


def oihw_to_hwio(w):
    return jnp.transpose(w, (2, 3, 1, 0))


def basic_block_forward(x_nchw, params):
    N, Cin, H, W = x_nchw.shape
    w1 = oihw_to_hwio(weight_norm(params["v1"], params["g1"]))      # (3,3,Cin,Cout)
    w2 = oihw_to_hwio(weight_norm(params["v2"], params["g2"]))      # (3,3,Cout,Cout)
    ws = weight_norm(params["vs"], params["gs"])[:, :, 0, 0].T      # (Cin,Cout)
    Cout = w1.shape[-1]

    Hp, Wp = H + 2, W + 2
    FH = Hp * Wp
    n_m = max(1, -(-FH // 256))           # M-tiles of <= 256 rows
    MT = _round_up(-(-FH // n_m), 8)      # tile rows, sublane aligned
    FH_pad = n_m * MT
    P = _round_up(Wp + 1, 8)              # halo >= max tap shift, aligned

    w1f = w1.reshape(KH * KW * Cin, Cout)             # folded conv1 weights
    w2f = w2.reshape(KH * KW, Cout, Cout)             # per-tap conv2 weights
    b1 = params["b1"].reshape(1, Cout)
    b2 = params["b2"].reshape(1, Cout)
    bs = params["bs"].reshape(1, Cout)

    # interior mask over the flat padded-image domain (zero on the 1-pixel
    # border and on the FH..FH_pad padding rows)
    mask = jnp.zeros((Hp, Wp), jnp.float32).at[1:1 + H, 1:1 + W].set(1.0)
    mask = jnp.pad(mask.reshape(FH, 1), ((0, FH_pad - FH), (0, 0)))

    # im2col-lite for conv1: 9 spatial shifts of the once-padded image,
    # concatenated along channels -> (N, Hp*Wp, 9*Cin)
    x = jnp.transpose(x_nchw, (0, 2, 3, 1))                         # NHWC
    xp1 = jnp.pad(x, ((0, 0), (1, 1), (1, 1), (0, 0)))              # pad 1
    xp2 = jnp.pad(x, ((0, 0), (2, 2), (2, 2), (0, 0)))              # pad 2
    x1 = jnp.concatenate(
        [xp2[:, kh:kh + Hp, kw:kw + Wp, :] for kh in range(KH) for kw in range(KW)],
        axis=-1).reshape(N, FH, KH * KW * Cin)
    x1 = jnp.pad(x1, ((0, 0), (0, FH_pad - FH), (0, 0)))
    # center tap (= once-padded x, flat) for the 1x1 shortcut
    xc = jnp.pad(xp1.reshape(N, FH, Cin), ((0, 0), (0, FH_pad - FH), (0, 0)))

    call = make_basic_block_call(N, H, W, Cin, Cout, MT, n_m, P)
    out = call(mask, x1, xc, w1f, b1, w2f, b2, ws, bs,
               jnp.reshape(params["alpha"], (1,)).astype(jnp.float32))

    # drop junk border rows / padding rows, back to NCHW
    out = out[:, :FH, :].reshape(N, Hp, Wp, Cout)[:, 1:1 + H, 1:1 + W, :]
    return jnp.transpose(out, (0, 3, 1, 2))


# ---------------- pure-JAX reference ----------------
def reference_forward(x_nchw, params):
    x = jnp.transpose(x_nchw, (0, 2, 3, 1))
    w1 = oihw_to_hwio(weight_norm(params["v1"], params["g1"]))
    w2 = oihw_to_hwio(weight_norm(params["v2"], params["g2"]))
    ws = oihw_to_hwio(weight_norm(params["vs"], params["gs"]))
    a = params["alpha"]

    def conv(x, w, b, pad):
        y = lax.conv_general_dilated(
            x, w, (1, 1), [(pad, pad), (pad, pad)],
            dimension_numbers=("NHWC", "HWIO", "NHWC"))
        return y + b.reshape(1, 1, 1, -1)

    def trelu(v):
        return jnp.maximum(v - a, 0.0) + a

    h1 = trelu(conv(x, w1, params["b1"], 1))
    out = conv(h1, params_b2 := params["b2"], 1) if False else \
        conv(h1, w2, params["b2"], 1) + conv(x, ws, params["bs"], 0)
    out = trelu(out)
    return jnp.transpose(out, (0, 3, 1, 2))


if __name__ == "__main__":
    key = jax.random.PRNGKey(0)
    N, Cin, H, W, Cout = 2, 4, 16, 16, 8
    ks = jax.random.split(key, 10)

    params = dict(
        v1=jax.random.normal(ks[0], (Cout, Cin, 3, 3), jnp.float32) * 0.3,
        g1=jax.random.uniform(ks[1], (Cout,), jnp.float32, minval=0.5, maxval=1.5),
        b1=jax.random.normal(ks[2], (Cout,), jnp.float32) * 0.1,
        v2=jax.random.normal(ks[3], (Cout, Cout, 3, 3), jnp.float32) * 0.3,
        g2=jax.random.uniform(ks[4], (Cout,), jnp.float32, minval=0.5, maxval=1.5),
        b2=jax.random.normal(ks[5], (Cout,), jnp.float32) * 0.1,
        vs=jax.random.normal(ks[6], (Cout, Cin, 1, 1), jnp.float32) * 0.3,
        gs=jax.random.uniform(ks[7], (Cout,), jnp.float32, minval=0.5, maxval=1.5),
        bs=jax.random.normal(ks[8], (Cout,), jnp.float32) * 0.1,
        alpha=jnp.float32(0.1),   # TReLU alpha (module inits to 0; any scalar works)
    )
    x = jax.random.normal(ks[9], (N, Cin, H, W), jnp.float32)

    out = basic_block_forward(x, params)
    out = jax.block_until_ready(out)

    ref = reference_forward(x, params)
    assert out.shape == (N, Cout, H, W)
    np.testing.assert_allclose(np.asarray(out), np.asarray(ref), rtol=1e-4, atol=1e-4)
    print("KERNEL_OK")
</pallas_src>

<mosaic_0001>
module attributes {stable_mosaic.version = 11 : i64} {
  func.func @kernel(%arg0: i32, %arg1: memref<336x1xf32, #tpu.memory_space<vmem>>, %arg2: memref<1x336x36xf32, #tpu.memory_space<vmem>>, %arg3: memref<1x336x4xf32, #tpu.memory_space<vmem>>, %arg4: memref<36x8xf32, #tpu.memory_space<vmem>>, %arg5: memref<1x8xf32, #tpu.memory_space<vmem>>, %arg6: memref<9x8x8xf32, #tpu.memory_space<vmem>>, %arg7: memref<1x8xf32, #tpu.memory_space<vmem>>, %arg8: memref<4x8xf32, #tpu.memory_space<vmem>>, %arg9: memref<1x8xf32, #tpu.memory_space<vmem>>, %arg10: memref<1xf32, #tpu.memory_space<smem>>, %arg11: memref<1x336x8xf32, #tpu.memory_space<vmem>>, %arg12: memref<384x8xf32, #tpu.memory_space<vmem>>) attributes {dimension_semantics = [#tpu.dimension_semantics<parallel>], iteration_bounds = array<i64: 2>, scalar_prefetch = 0 : i64, scratch_operands = 1 : i64, tpu.core_type = #tpu.core_type<tc>, window_params = [{pipeline_mode = #tpu.pipeline_mode<synchronous>, transform_indices = @transform_0, window_bounds = array<i64: 336, 1>}, {transform_indices = @transform_1, window_bounds = array<i64: 1, 336, 36>}, {transform_indices = @transform_2, window_bounds = array<i64: 1, 336, 4>}, {pipeline_mode = #tpu.pipeline_mode<synchronous>, transform_indices = @transform_3, window_bounds = array<i64: 36, 8>}, {pipeline_mode = #tpu.pipeline_mode<synchronous>, transform_indices = @transform_4, window_bounds = array<i64: 1, 8>}, {pipeline_mode = #tpu.pipeline_mode<synchronous>, transform_indices = @transform_5, window_bounds = array<i64: 9, 8, 8>}, {pipeline_mode = #tpu.pipeline_mode<synchronous>, transform_indices = @transform_6, window_bounds = array<i64: 1, 8>}, {pipeline_mode = #tpu.pipeline_mode<synchronous>, transform_indices = @transform_7, window_bounds = array<i64: 4, 8>}, {pipeline_mode = #tpu.pipeline_mode<synchronous>, transform_indices = @transform_8, window_bounds = array<i64: 1, 8>}, {transform_indices = @transform_9, window_bounds = array<i64: 1>}, {transform_indices = @transform_10, window_bounds = array<i64: 1, 336, 8>}]} {
    %c0 = arith.constant 0 : index
    %0 = memref.load %arg10[%c0] : memref<1xf32, #tpu.memory_space<smem>>
    %c0_0 = arith.constant 0 : index
    %c0_1 = arith.constant 0 : index
    %1 = vector.load %arg4[%c0_0, %c0_1] : memref<36x8xf32, #tpu.memory_space<vmem>>, vector<36x8xf32>
    %c0_2 = arith.constant 0 : index
    %c0_3 = arith.constant 0 : index
    %2 = vector.load %arg5[%c0_2, %c0_3] : memref<1x8xf32, #tpu.memory_space<vmem>>, vector<1x8xf32>
    %c0_4 = arith.constant 0 : index
    %c0_5 = arith.constant 0 : index
    %3 = vector.load %arg7[%c0_4, %c0_5] : memref<1x8xf32, #tpu.memory_space<vmem>>, vector<1x8xf32>
    %c0_6 = arith.constant 0 : index
    %c0_7 = arith.constant 0 : index
    %4 = vector.load %arg9[%c0_6, %c0_7] : memref<1x8xf32, #tpu.memory_space<vmem>>, vector<1x8xf32>
    %c0_8 = arith.constant 0 : index
    %c0_9 = arith.constant 0 : index
    %5 = vector.load %arg8[%c0_8, %c0_9] : memref<4x8xf32, #tpu.memory_space<vmem>>, vector<4x8xf32>
    %cst = arith.constant 0.000000e+00 : f32
    %6 = vector.broadcast %cst : f32 to vector<24x8xf32>
    %c0_10 = arith.constant 0 : index
    %c0_11 = arith.constant 0 : index
    %7 = vector.load %arg12[%c0_10, %c0_11] : memref<384x8xf32, #tpu.memory_space<vmem>>, vector<24x8xf32>
    tpu.vector_store %arg12[%c0_10, %c0_11], %6 {strides = array<i32>} : memref<384x8xf32, #tpu.memory_space<vmem>>, vector<24x8xf32>,
    %cst_12 = arith.constant 0.000000e+00 : f32
    %8 = vector.broadcast %cst_12 : f32 to vector<24x8xf32>
    %c360 = arith.constant 360 : index
    %c0_13 = arith.constant 0 : index
    %9 = vector.load %arg12[%c360, %c0_13] : memref<384x8xf32, #tpu.memory_space<vmem>>, vector<24x8xf32>
    tpu.vector_store %arg12[%c360, %c0_13], %8 {strides = array<i32>} : memref<384x8xf32, #tpu.memory_space<vmem>>, vector<24x8xf32>,
    %c0_14 = arith.constant 0 : index
    %c0_15 = arith.constant 0 : index
    %c0_16 = arith.constant 0 : index
    %10 = vector.load %arg2[%c0_14, %c0_15, %c0_16] : memref<1x336x36xf32, #tpu.memory_space<vmem>>, vector<1x168x36xf32>
    %11 = vector.shape_cast %10 : vector<1x168x36xf32> to vector<168x36xf32>
    %cst_17 = arith.constant dense<0.000000e+00> : vector<168x8xf32>
    %12 = tpu.matmul %11, %1, %cst_17 {dimension_numbers = #tpu.dot_dimension_numbers<[1], [0], [0], [1], [0, 0, 1, 1], [], []>} : vector<168x36xf32>, vector<36x8xf32>, vector<168x8xf32> -> vector<168x8xf32>
    %13 = vector.broadcast %2 : vector<1x8xf32> to vector<168x8xf32>
    %14 = arith.addf %12, %13 : vector<168x8xf32>
    %15 = vector.broadcast %0 : f32 to vector<168x8xf32>
    %16 = arith.subf %14, %15 : vector<168x8xf32>
    %cst_18 = arith.constant 0.000000e+00 : f32
    %17 = vector.broadcast %cst_18 : f32 to vector<168x8xf32>
    %18 = arith.maximumf %16, %17 : vector<168x8xf32>
    %19 = vector.broadcast %0 : f32 to vector<168x8xf32>
    %20 = arith.addf %18, %19 : vector<168x8xf32>
    %c0_19 = arith.constant 0 : index
    %c0_20 = arith.constant 0 : index
    %21 = vector.load %arg1[%c0_19, %c0_20] : memref<336x1xf32, #tpu.memory_space<vmem>>, vector<168x1xf32>
    %22 = vector.broadcast %21 : vector<168x1xf32> to vector<168x8xf32>
    %23 = arith.mulf %20, %22 : vector<168x8xf32>
    %c24 = arith.constant 24 : index
    %c0_21 = arith.constant 0 : index
    %24 = vector.load %arg12[%c24, %c0_21] : memref<384x8xf32, #tpu.memory_space<vmem>>, vector<168x8xf32>
    tpu.vector_store %arg12[%c24, %c0_21], %23 {strides = array<i32>} : memref<384x8xf32, #tpu.memory_space<vmem>>, vector<168x8xf32>,
    %c0_22 = arith.constant 0 : index
    %c168 = arith.constant 168 : index
    %c0_23 = arith.constant 0 : index
    %25 = vector.load %arg2[%c0_22, %c168, %c0_23] : memref<1x336x36xf32, #tpu.memory_space<vmem>>, vector<1x168x36xf32>
    %26 = vector.shape_cast %25 : vector<1x168x36xf32> to vector<168x36xf32>
    %cst_24 = arith.constant dense<0.000000e+00> : vector<168x8xf32>
    %27 = tpu.matmul %26, %1, %cst_24 {dimension_numbers = #tpu.dot_dimension_numbers<[1], [0], [0], [1], [0, 0, 1, 1], [], []>} : vector<168x36xf32>, vector<36x8xf32>, vector<168x8xf32> -> vector<168x8xf32>
    %28 = vector.broadcast %2 : vector<1x8xf32> to vector<168x8xf32>
    %29 = arith.addf %27, %28 : vector<168x8xf32>
    %30 = vector.broadcast %0 : f32 to vector<168x8xf32>
    %31 = arith.subf %29, %30 : vector<168x8xf32>
    %cst_25 = arith.constant 0.000000e+00 : f32
    %32 = vector.broadcast %cst_25 : f32 to vector<168x8xf32>
    %33 = arith.maximumf %31, %32 : vector<168x8xf32>
    %34 = vector.broadcast %0 : f32 to vector<168x8xf32>
    %35 = arith.addf %33, %34 : vector<168x8xf32>
    %c168_26 = arith.constant 168 : index
    %c0_27 = arith.constant 0 : index
    %36 = vector.load %arg1[%c168_26, %c0_27] : memref<336x1xf32, #tpu.memory_space<vmem>>, vector<168x1xf32>
    %37 = vector.broadcast %36 : vector<168x1xf32> to vector<168x8xf32>
    %38 = arith.mulf %35, %37 : vector<168x8xf32>
    %c192 = arith.constant 192 : index
    %c0_28 = arith.constant 0 : index
    %39 = vector.load %arg12[%c192, %c0_28] : memref<384x8xf32, #tpu.memory_space<vmem>>, vector<168x8xf32>
    tpu.vector_store %arg12[%c192, %c0_28], %38 {strides = array<i32>} : memref<384x8xf32, #tpu.memory_space<vmem>>, vector<168x8xf32>,
    %cst_29 = arith.constant 0.000000e+00 : f32
    %40 = vector.broadcast %cst_29 : f32 to vector<168x8xf32>
    %c5 = arith.constant 5 : index
    %c0_30 = arith.constant 0 : index
    %41 = vector.load %arg12[%c5, %c0_30] : memref<384x8xf32, #tpu.memory_space<vmem>>, vector<168x8xf32>
    %c0_31 = arith.constant 0 : index
    %c0_32 = arith.constant 0 : index
    %c0_33 = arith.constant 0 : index
    %42 = vector.load %arg6[%c0_31, %c0_32, %c0_33] : memref<9x8x8xf32, #tpu.memory_space<vmem>>, vector<1x8x8xf32>
    %43 = vector.shape_cast %42 : vector<1x8x8xf32> to vector<8x8xf32>
    %cst_34 = arith.constant dense<0.000000e+00> : vector<168x8xf32>
    %44 = tpu.matmul %41, %43, %cst_34 {dimension_numbers = #tpu.dot_dimension_numbers<[1], [0], [0], [1], [0, 0, 1, 1], [], []>} : vector<168x8xf32>, vector<8x8xf32>, vector<168x8xf32> -> vector<168x8xf32>
    %45 = arith.addf %40, %44 : vector<168x8xf32>
    %c6 = arith.constant 6 : index
    %c0_35 = arith.constant 0 : index
    %46 = vector.load %arg12[%c6, %c0_35] : memref<384x8xf32, #tpu.memory_space<vmem>>, vector<168x8xf32>
    %c1 = arith.constant 1 : index
    %c0_36 = arith.constant 0 : index
    %c0_37 = arith.constant 0 : index
    %47 = vector.load %arg6[%c1, %c0_36, %c0_37] : memref<9x8x8xf32, #tpu.memory_space<vmem>>, vector<1x8x8xf32>
    %48 = vector.shape_cast %47 : vector<1x8x8xf32> to vector<8x8xf32>
    %cst_38 = arith.constant dense<0.000000e+00> : vector<168x8xf32>
    %49 = tpu.matmul %46, %48, %cst_38 {dimension_numbers = #tpu.dot_dimension_numbers<[1], [0], [0], [1], [0, 0, 1, 1], [], []>} : vector<168x8xf32>, vector<8x8xf32>, vector<168x8xf32> -> vector<168x8xf32>
    %50 = arith.addf %45, %49 : vector<168x8xf32>
    %c7 = arith.constant 7 : index
    %c0_39 = arith.constant 0 : index
    %51 = vector.load %arg12[%c7, %c0_39] : memref<384x8xf32, #tpu.memory_space<vmem>>, vector<168x8xf32>
    %c2 = arith.constant 2 : index
    %c0_40 = arith.constant 0 : index
    %c0_41 = arith.constant 0 : index
    %52 = vector.load %arg6[%c2, %c0_40, %c0_41] : memref<9x8x8xf32, #tpu.memory_space<vmem>>, vector<1x8x8xf32>
    %53 = vector.shape_cast %52 : vector<1x8x8xf32> to vector<8x8xf32>
    %cst_42 = arith.constant dense<0.000000e+00> : vector<168x8xf32>
    %54 = tpu.matmul %51, %53, %cst_42 {dimension_numbers = #tpu.dot_dimension_numbers<[1], [0], [0], [1], [0, 0, 1, 1], [], []>} : vector<168x8xf32>, vector<8x8xf32>, vector<168x8xf32> -> vector<168x8xf32>
    %55 = arith.addf %50, %54 : vector<168x8xf32>
    %c23 = arith.constant 23 : index
    %c0_43 = arith.constant 0 : index
    %56 = vector.load %arg12[%c23, %c0_43] : memref<384x8xf32, #tpu.memory_space<vmem>>, vector<168x8xf32>
    %c3 = arith.constant 3 : index
    %c0_44 = arith.constant 0 : index
    %c0_45 = arith.constant 0 : index
    %57 = vector.load %arg6[%c3, %c0_44, %c0_45] : memref<9x8x8xf32, #tpu.memory_space<vmem>>, vector<1x8x8xf32>
    %58 = vector.shape_cast %57 : vector<1x8x8xf32> to vector<8x8xf32>
    %cst_46 = arith.constant dense<0.000000e+00> : vector<168x8xf32>
    %59 = tpu.matmul %56, %58, %cst_46 {dimension_numbers = #tpu.dot_dimension_numbers<[1], [0], [0], [1], [0, 0, 1, 1], [], []>} : vector<168x8xf32>, vector<8x8xf32>, vector<168x8xf32> -> vector<168x8xf32>
    %60 = arith.addf %55, %59 : vector<168x8xf32>
    %c24_47 = arith.constant 24 : index
    %c0_48 = arith.constant 0 : index
    %61 = vector.load %arg12[%c24_47, %c0_48] : memref<384x8xf32, #tpu.memory_space<vmem>>, vector<168x8xf32>
    %c4 = arith.constant 4 : index
    %c0_49 = arith.constant 0 : index
    %c0_50 = arith.constant 0 : index
    %62 = vector.load %arg6[%c4, %c0_49, %c0_50] : memref<9x8x8xf32, #tpu.memory_space<vmem>>, vector<1x8x8xf32>
    %63 = vector.shape_cast %62 : vector<1x8x8xf32> to vector<8x8xf32>
    %cst_51 = arith.constant dense<0.000000e+00> : vector<168x8xf32>
    %64 = tpu.matmul %61, %63, %cst_51 {dimension_numbers = #tpu.dot_dimension_numbers<[1], [0], [0], [1], [0, 0, 1, 1], [], []>} : vector<168x8xf32>, vector<8x8xf32>, vector<168x8xf32> -> vector<168x8xf32>
    %65 = arith.addf %60, %64 : vector<168x8xf32>
    %c25 = arith.constant 25 : index
    %c0_52 = arith.constant 0 : index
    %66 = vector.load %arg12[%c25, %c0_52] : memref<384x8xf32, #tpu.memory_space<vmem>>, vector<168x8xf32>
    %c5_53 = arith.constant 5 : index
    %c0_54 = arith.constant 0 : index
    %c0_55 = arith.constant 0 : index
    %67 = vector.load %arg6[%c5_53, %c0_54, %c0_55] : memref<9x8x8xf32, #tpu.memory_space<vmem>>, vector<1x8x8xf32>
    %68 = vector.shape_cast %67 : vector<1x8x8xf32> to vector<8x8xf32>
    %cst_56 = arith.constant dense<0.000000e+00> : vector<168x8xf32>
    %69 = tpu.matmul %66, %68, %cst_56 {dimension_numbers = #tpu.dot_dimension_numbers<[1], [0], [0], [1], [0, 0, 1, 1], [], []>} : vector<168x8xf32>, vector<8x8xf32>, vector<168x8xf32> -> vector<168x8xf32>
    %70 = arith.addf %65, %69 : vector<168x8xf32>
    %c41 = arith.constant 41 : index
    %c0_57 = arith.constant 0 : index
    %71 = vector.load %arg12[%c41, %c0_57] : memref<384x8xf32, #tpu.memory_space<vmem>>, vector<168x8xf32>
    %c6_58 = arith.constant 6 : index
    %c0_59 = arith.constant 0 : index
    %c0_60 = arith.constant 0 : index
    %72 = vector.load %arg6[%c6_58, %c0_59, %c0_60] : memref<9x8x8xf32, #tpu.memory_space<vmem>>, vector<1x8x8xf32>
    %73 = vector.shape_cast %72 : vector<1x8x8xf32> to vector<8x8xf32>
    %cst_61 = arith.constant dense<0.000000e+00> : vector<168x8xf32>
    %74 = tpu.matmul %71, %73, %cst_61 {dimension_numbers = #tpu.dot_dimension_numbers<[1], [0], [0], [1], [0, 0, 1, 1], [], []>} : vector<168x8xf32>, vector<8x8xf32>, vector<168x8xf32> -> vector<168x8xf32>
    %75 = arith.addf %70, %74 : vector<168x8xf32>
    %c42 = arith.constant 42 : index
    %c0_62 = arith.constant 0 : index
    %76 = vector.load %arg12[%c42, %c0_62] : memref<384x8xf32, #tpu.memory_space<vmem>>, vector<168x8xf32>
    %c7_63 = arith.constant 7 : index
    %c0_64 = arith.constant 0 : index
    %c0_65 = arith.constant 0 : index
    %77 = vector.load %arg6[%c7_63, %c0_64, %c0_65] : memref<9x8x8xf32, #tpu.memory_space<vmem>>, vector<1x8x8xf32>
    %78 = vector.shape_cast %77 : vector<1x8x8xf32> to vector<8x8xf32>
    %cst_66 = arith.constant dense<0.000000e+00> : vector<168x8xf32>
    %79 = tpu.matmul %76, %78, %cst_66 {dimension_numbers = #tpu.dot_dimension_numbers<[1], [0], [0], [1], [0, 0, 1, 1], [], []>} : vector<168x8xf32>, vector<8x8xf32>, vector<168x8xf32> -> vector<168x8xf32>
    %80 = arith.addf %75, %79 : vector<168x8xf32>
    %c43 = arith.constant 43 : index
    %c0_67 = arith.constant 0 : index
    %81 = vector.load %arg12[%c43, %c0_67] : memref<384x8xf32, #tpu.memory_space<vmem>>, vector<168x8xf32>
    %c8 = arith.constant 8 : index
    %c0_68 = arith.constant 0 : index
    %c0_69 = arith.constant 0 : index
    %82 = vector.load %arg6[%c8, %c0_68, %c0_69] : memref<9x8x8xf32, #tpu.memory_space<vmem>>, vector<1x8x8xf32>
    %83 = vector.shape_cast %82 : vector<1x8x8xf32> to vector<8x8xf32>
    %cst_70 = arith.constant dense<0.000000e+00> : vector<168x8xf32>
    %84 = tpu.matmul %81, %83, %cst_70 {dimension_numbers = #tpu.dot_dimension_numbers<[1], [0], [0], [1], [0, 0, 1, 1], [], []>} : vector<168x8xf32>, vector<8x8xf32>, vector<168x8xf32> -> vector<168x8xf32>
    %85 = arith.addf %80, %84 : vector<168x8xf32>
    %c0_71 = arith.constant 0 : index
    %c0_72 = arith.constant 0 : index
    %c0_73 = arith.constant 0 : index
    %86 = vector.load %arg3[%c0_71, %c0_72, %c0_73] : memref<1x336x4xf32, #tpu.memory_space<vmem>>, vector<1x168x4xf32>
    %87 = vector.shape_cast %86 : vector<1x168x4xf32> to vector<168x4xf32>
    %cst_74 = arith.constant dense<0.000000e+00> : vector<168x8xf32>
    %88 = tpu.matmul %87, %5, %cst_74 {dimension_numbers = #tpu.dot_dimension_numbers<[1], [0], [0], [1], [0, 0, 1, 1], [], []>} : vector<168x4xf32>, vector<4x8xf32>, vector<168x8xf32> -> vector<168x8xf32>
    %89 = vector.broadcast %3 : vector<1x8xf32> to vector<168x8xf32>
    %90 = arith.addf %85, %89 : vector<168x8xf32>
    %91 = arith.addf %90, %88 : vector<168x8xf32>
    %92 = vector.broadcast %4 : vector<1x8xf32> to vector<168x8xf32>
    %93 = arith.addf %91, %92 : vector<168x8xf32>
    %94 = vector.broadcast %0 : f32 to vector<168x8xf32>
    %95 = arith.subf %93, %94 : vector<168x8xf32>
    %cst_75 = arith.constant 0.000000e+00 : f32
    %96 = vector.broadcast %cst_75 : f32 to vector<168x8xf32>
    %97 = arith.maximumf %95, %96 : vector<168x8xf32>
    %98 = vector.broadcast %0 : f32 to vector<168x8xf32>
    %99 = arith.addf %97, %98 : vector<168x8xf32>
    %c0_76 = arith.constant 0 : index
    %c0_77 = arith.constant 0 : index
    %c0_78 = arith.constant 0 : index
    %100 = vector.load %arg11[%c0_76, %c0_77, %c0_78] : memref<1x336x8xf32, #tpu.memory_space<vmem>>, vector<1x168x8xf32>
    %101 = vector.shape_cast %100 : vector<1x168x8xf32> to vector<168x8xf32>
    %102 = vector.shape_cast %99 : vector<168x8xf32> to vector<1x168x8xf32>
    tpu.vector_store %arg11[%c0_76, %c0_77, %c0_78], %102 {strides = array<i32>} : memref<1x336x8xf32, #tpu.memory_space<vmem>>, vector<1x168x8xf32>,
    %cst_79 = arith.constant 0.000000e+00 : f32
    %103 = vector.broadcast %cst_79 : f32 to vector<168x8xf32>
    %c173 = arith.constant 173 : index
    %c0_80 = arith.constant 0 : index
    %104 = vector.load %arg12[%c173, %c0_80] : memref<384x8xf32, #tpu.memory_space<vmem>>, vector<168x8xf32>
    %c0_81 = arith.constant 0 : index
    %c0_82 = arith.constant 0 : index
    %c0_83 = arith.constant 0 : index
    %105 = vector.load %arg6[%c0_81, %c0_82, %c0_83] : memref<9x8x8xf32, #tpu.memory_space<vmem>>, vector<1x8x8xf32>
    %106 = vector.shape_cast %105 : vector<1x8x8xf32> to vector<8x8xf32>
    %cst_84 = arith.constant dense<0.000000e+00> : vector<168x8xf32>
    %107 = tpu.matmul %104, %106, %cst_84 {dimension_numbers = #tpu.dot_dimension_numbers<[1], [0], [0], [1], [0, 0, 1, 1], [], []>} : vector<168x8xf32>, vector<8x8xf32>, vector<168x8xf32> -> vector<168x8xf32>
    %108 = arith.addf %103, %107 : vector<168x8xf32>
    %c174 = arith.constant 174 : index
    %c0_85 = arith.constant 0 : index
    %109 = vector.load %arg12[%c174, %c0_85] : memref<384x8xf32, #tpu.memory_space<vmem>>, vector<168x8xf32>
    %c1_86 = arith.constant 1 : index
    %c0_87 = arith.constant 0 : index
    %c0_88 = arith.constant 0 : index
    %110 = vector.load %arg6[%c1_86, %c0_87, %c0_88] : memref<9x8x8xf32, #tpu.memory_space<vmem>>, vector<1x8x8xf32>
    %111 = vector.shape_cast %110 : vector<1x8x8xf32> to vector<8x8xf32>
    %cst_89 = arith.constant dense<0.000000e+00> : vector<168x8xf32>
    %112 = tpu.matmul %109, %111, %cst_89 {dimension_numbers = #tpu.dot_dimension_numbers<[1], [0], [0], [1], [0, 0, 1, 1], [], []>} : vector<168x8xf32>, vector<8x8xf32>, vector<168x8xf32> -> vector<168x8xf32>
    %113 = arith.addf %108, %112 : vector<168x8xf32>
    %c175 = arith.constant 175 : index
    %c0_90 = arith.constant 0 : index
    %114 = vector.load %arg12[%c175, %c0_90] : memref<384x8xf32, #tpu.memory_space<vmem>>, vector<168x8xf32>
    %c2_91 = arith.constant 2 : index
    %c0_92 = arith.constant 0 : index
    %c0_93 = arith.constant 0 : index
    %115 = vector.load %arg6[%c2_91, %c0_92, %c0_93] : memref<9x8x8xf32, #tpu.memory_space<vmem>>, vector<1x8x8xf32>
    %116 = vector.shape_cast %115 : vector<1x8x8xf32> to vector<8x8xf32>
    %cst_94 = arith.constant dense<0.000000e+00> : vector<168x8xf32>
    %117 = tpu.matmul %114, %116, %cst_94 {dimension_numbers = #tpu.dot_dimension_numbers<[1], [0], [0], [1], [0, 0, 1, 1], [], []>} : vector<168x8xf32>, vector<8x8xf32>, vector<168x8xf32> -> vector<168x8xf32>
    %118 = arith.addf %113, %117 : vector<168x8xf32>
    %c191 = arith.constant 191 : index
    %c0_95 = arith.constant 0 : index
    %119 = vector.load %arg12[%c191, %c0_95] : memref<384x8xf32, #tpu.memory_space<vmem>>, vector<168x8xf32>
    %c3_96 = arith.constant 3 : index
    %c0_97 = arith.constant 0 : index
    %c0_98 = arith.constant 0 : index
    %120 = vector.load %arg6[%c3_96, %c0_97, %c0_98] : memref<9x8x8xf32, #tpu.memory_space<vmem>>, vector<1x8x8xf32>
    %121 = vector.shape_cast %120 : vector<1x8x8xf32> to vector<8x8xf32>
    %cst_99 = arith.constant dense<0.000000e+00> : vector<168x8xf32>
    %122 = tpu.matmul %119, %121, %cst_99 {dimension_numbers = #tpu.dot_dimension_numbers<[1], [0], [0], [1], [0, 0, 1, 1], [], []>} : vector<168x8xf32>, vector<8x8xf32>, vector<168x8xf32> -> vector<168x8xf32>
    %123 = arith.addf %118, %122 : vector<168x8xf32>
    %c192_100 = arith.constant 192 : index
    %c0_101 = arith.constant 0 : index
    %124 = vector.load %arg12[%c192_100, %c0_101] : memref<384x8xf32, #tpu.memory_space<vmem>>, vector<168x8xf32>
    %c4_102 = arith.constant 4 : index
    %c0_103 = arith.constant 0 : index
    %c0_104 = arith.constant 0 : index
    %125 = vector.load %arg6[%c4_102, %c0_103, %c0_104] : memref<9x8x8xf32, #tpu.memory_space<vmem>>, vector<1x8x8xf32>
    %126 = vector.shape_cast %125 : vector<1x8x8xf32> to vector<8x8xf32>
    %cst_105 = arith.constant dense<0.000000e+00> : vector<168x8xf32>
    %127 = tpu.matmul %124, %126, %cst_105 {dimension_numbers = #tpu.dot_dimension_numbers<[1], [0], [0], [1], [0, 0, 1, 1], [], []>} : vector<168x8xf32>, vector<8x8xf32>, vector<168x8xf32> -> vector<168x8xf32>
    %128 = arith.addf %123, %127 : vector<168x8xf32>
    %c193 = arith.constant 193 : index
    %c0_106 = arith.constant 0 : index
    %129 = vector.load %arg12[%c193, %c0_106] : memref<384x8xf32, #tpu.memory_space<vmem>>, vector<168x8xf32>
    %c5_107 = arith.constant 5 : index
    %c0_108 = arith.constant 0 : index
    %c0_109 = arith.constant 0 : index
    %130 = vector.load %arg6[%c5_107, %c0_108, %c0_109] : memref<9x8x8xf32, #tpu.memory_space<vmem>>, vector<1x8x8xf32>
    %131 = vector.shape_cast %130 : vector<1x8x8xf32> to vector<8x8xf32>
    %cst_110 = arith.constant dense<0.000000e+00> : vector<168x8xf32>
    %132 = tpu.matmul %129, %131, %cst_110 {dimension_numbers = #tpu.dot_dimension_numbers<[1], [0], [0], [1], [0, 0, 1, 1], [], []>} : vector<168x8xf32>, vector<8x8xf32>, vector<168x8xf32> -> vector<168x8xf32>
    %133 = arith.addf %128, %132 : vector<168x8xf32>
    %c209 = arith.constant 209 : index
    %c0_111 = arith.constant 0 : index
    %134 = vector.load %arg12[%c209, %c0_111] : memref<384x8xf32, #tpu.memory_space<vmem>>, vector<168x8xf32>
    %c6_112 = arith.constant 6 : index
    %c0_113 = arith.constant 0 : index
    %c0_114 = arith.constant 0 : index
    %135 = vector.load %arg6[%c6_112, %c0_113, %c0_114] : memref<9x8x8xf32, #tpu.memory_space<vmem>>, vector<1x8x8xf32>
    %136 = vector.shape_cast %135 : vector<1x8x8xf32> to vector<8x8xf32>
    %cst_115 = arith.constant dense<0.000000e+00> : vector<168x8xf32>
    %137 = tpu.matmul %134, %136, %cst_115 {dimension_numbers = #tpu.dot_dimension_numbers<[1], [0], [0], [1], [0, 0, 1, 1], [], []>} : vector<168x8xf32>, vector<8x8xf32>, vector<168x8xf32> -> vector<168x8xf32>
    %138 = arith.addf %133, %137 : vector<168x8xf32>
    %c210 = arith.constant 210 : index
    %c0_116 = arith.constant 0 : index
    %139 = vector.load %arg12[%c210, %c0_116] : memref<384x8xf32, #tpu.memory_space<vmem>>, vector<168x8xf32>
    %c7_117 = arith.constant 7 : index
    %c0_118 = arith.constant 0 : index
    %c0_119 = arith.constant 0 : index
    %140 = vector.load %arg6[%c7_117, %c0_118, %c0_119] : memref<9x8x8xf32, #tpu.memory_space<vmem>>, vector<1x8x8xf32>
    %141 = vector.shape_cast %140 : vector<1x8x8xf32> to vector<8x8xf32>
    %cst_120 = arith.constant dense<0.000000e+00> : vector<168x8xf32>
    %142 = tpu.matmul %139, %141, %cst_120 {dimension_numbers = #tpu.dot_dimension_numbers<[1], [0], [0], [1], [0, 0, 1, 1], [], []>} : vector<168x8xf32>, vector<8x8xf32>, vector<168x8xf32> -> vector<168x8xf32>
    %143 = arith.addf %138, %142 : vector<168x8xf32>
    %c211 = arith.constant 211 : index
    %c0_121 = arith.constant 0 : index
    %144 = vector.load %arg12[%c211, %c0_121] : memref<384x8xf32, #tpu.memory_space<vmem>>, vector<168x8xf32>
    %c8_122 = arith.constant 8 : index
    %c0_123 = arith.constant 0 : index
    %c0_124 = arith.constant 0 : index
    %145 = vector.load %arg6[%c8_122, %c0_123, %c0_124] : memref<9x8x8xf32, #tpu.memory_space<vmem>>, vector<1x8x8xf32>
    %146 = vector.shape_cast %145 : vector<1x8x8xf32> to vector<8x8xf32>
    %cst_125 = arith.constant dense<0.000000e+00> : vector<168x8xf32>
    %147 = tpu.matmul %144, %146, %cst_125 {dimension_numbers = #tpu.dot_dimension_numbers<[1], [0], [0], [1], [0, 0, 1, 1], [], []>} : vector<168x8xf32>, vector<8x8xf32>, vector<168x8xf32> -> vector<168x8xf32>
    %148 = arith.addf %143, %147 : vector<168x8xf32>
    %c0_126 = arith.constant 0 : index
    %c168_127 = arith.constant 168 : index
    %c0_128 = arith.constant 0 : index
    %149 = vector.load %arg3[%c0_126, %c168_127, %c0_128] : memref<1x336x4xf32, #tpu.memory_space<vmem>>, vector<1x168x4xf32>
    %150 = vector.shape_cast %149 : vector<1x168x4xf32> to vector<168x4xf32>
    %cst_129 = arith.constant dense<0.000000e+00> : vector<168x8xf32>
    %151 = tpu.matmul %150, %5, %cst_129 {dimension_numbers = #tpu.dot_dimension_numbers<[1], [0], [0], [1], [0, 0, 1, 1], [], []>} : vector<168x4xf32>, vector<4x8xf32>, vector<168x8xf32> -> vector<168x8xf32>
    %152 = vector.broadcast %3 : vector<1x8xf32> to vector<168x8xf32>
    %153 = arith.addf %148, %152 : vector<168x8xf32>
    %154 = arith.addf %153, %151 : vector<168x8xf32>
    %155 = vector.broadcast %4 : vector<1x8xf32> to vector<168x8xf32>
    %156 = arith.addf %154, %155 : vector<168x8xf32>
    %157 = vector.broadcast %0 : f32 to vector<168x8xf32>
    %158 = arith.subf %156, %157 : vector<168x8xf32>
    %cst_130 = arith.constant 0.000000e+00 : f32
    %159 = vector.broadcast %cst_130 : f32 to vector<168x8xf32>
    %160 = arith.maximumf %158, %159 : vector<168x8xf32>
    %161 = vector.broadcast %0 : f32 to vector<168x8xf32>
    %162 = arith.addf %160, %161 : vector<168x8xf32>
    %c0_131 = arith.constant 0 : index
    %c168_132 = arith.constant 168 : index
    %c0_133 = arith.constant 0 : index
    %163 = vector.load %arg11[%c0_131, %c168_132, %c0_133] : memref<1x336x8xf32, #tpu.memory_space<vmem>>, vector<1x168x8xf32>
    %164 = vector.shape_cast %163 : vector<1x168x8xf32> to vector<168x8xf32>
    %165 = vector.shape_cast %162 : vector<168x8xf32> to vector<1x168x8xf32>
    tpu.vector_store %arg11[%c0_131, %c168_132, %c0_133], %165 {strides = array<i32>} : memref<1x336x8xf32, #tpu.memory_space<vmem>>, vector<1x168x8xf32>,
    return
  }
  func.func @transform_0(%arg0: i32) -> (i32, i32) {
    %c0_i32 = arith.constant 0 : i32
    %c0_i32_0 = arith.constant 0 : i32
    %c0_i32_1 = arith.constant 0 : i32
    return %c0_i32, %c0_i32_0 : i32, i32
  }
  func.func @transform_1(%arg0: i32) -> (i32, i32, i32) {
    %c0_i32 = arith.constant 0 : i32
    %c0_i32_0 = arith.constant 0 : i32
    %c0_i32_1 = arith.constant 0 : i32
    return %arg0, %c0_i32, %c0_i32_0 : i32, i32, i32
  }
  func.func @transform_2(%arg0: i32) -> (i32, i32, i32) {
    %c0_i32 = arith.constant 0 : i32
    %c0_i32_0 = arith.constant 0 : i32
    %c0_i32_1 = arith.constant 0 : i32
    return %arg0, %c0_i32, %c0_i32_0 : i32, i32, i32
  }
  func.func @transform_3(%arg0: i32) -> (i32, i32) {
    %c0_i32 = arith.constant 0 : i32
    %c0_i32_0 = arith.constant 0 : i32
    %c0_i32_1 = arith.constant 0 : i32
    return %c0_i32, %c0_i32_0 : i32, i32
  }
  func.func @transform_4(%arg0: i32) -> (i32, i32) {
    %c0_i32 = arith.constant 0 : i32
    %c0_i32_0 = arith.constant 0 : i32
    %c0_i32_1 = arith.constant 0 : i32
    return %c0_i32, %c0_i32_0 : i32, i32
  }
  func.func @transform_5(%arg0: i32) -> (i32, i32, i32) {
    %c0_i32 = arith.constant 0 : i32
    %c0_i32_0 = arith.constant 0 : i32
    %c0_i32_1 = arith.constant 0 : i32
    %c0_i32_2 = arith.constant 0 : i32
    return %c0_i32, %c0_i32_0, %c0_i32_1 : i32, i32, i32
  }
  func.func @transform_6(%arg0: i32) -> (i32, i32) {
    %c0_i32 = arith.constant 0 : i32
    %c0_i32_0 = arith.constant 0 : i32
    %c0_i32_1 = arith.constant 0 : i32
    return %c0_i32, %c0_i32_0 : i32, i32
  }
  func.func @transform_7(%arg0: i32) -> (i32, i32) {
    %c0_i32 = arith.constant 0 : i32
    %c0_i32_0 = arith.constant 0 : i32
    %c0_i32_1 = arith.constant 0 : i32
    return %c0_i32, %c0_i32_0 : i32, i32
  }
  func.func @transform_8(%arg0: i32) -> (i32, i32) {
    %c0_i32 = arith.constant 0 : i32
    %c0_i32_0 = arith.constant 0 : i32
    %c0_i32_1 = arith.constant 0 : i32
    return %c0_i32, %c0_i32_0 : i32, i32
  }
  func.func @transform_9(%arg0: i32) -> i32 {
    %c0_i32 = arith.constant 0 : i32
    %c0_i32_0 = arith.constant 0 : i32
    return %c0_i32 : i32
  }
  func.func @transform_10(%arg0: i32) -> (i32, i32, i32) {
    %c0_i32 = arith.constant 0 : i32
    %c0_i32_0 = arith.constant 0 : i32
    %c0_i32_1 = arith.constant 0 : i32
    return %arg0, %c0_i32, %c0_i32_0 : i32, i32, i32
  }
}

</mosaic_0001>

<bundles_post_ra>
// kernel: tpu_custom_call.1
= control target key start
LH: loop header
LB: loop body
LE: loop exit
PB: predicated region body
PF: predicated region fallthrough
CT: control target
= control target key end

     0   :  { %s9690_s15 = smov 0   ;;  %s12590_s0 = inlined_call_operand.vmem [shape: f32[336,1], index: 0, kind: input, shape index: {}]   ;;  %s12591_s1 = inlined_call_operand.vmem [shape: f32[2,336,36], index: 1, kind: input, shape index: {}]   ;;  %s12592_s2 = inlined_call_operand.vmem [shape: f32[2,336,4], index: 2, kind: input, shape index: {}]   ;;  %s12593_s3 = inlined_call_operand.vmem [shape: f32[36,8], index: 3, kind: input, shape index: {}]   ;;  %s12594_s4 = inlined_call_operand.vmem [shape: f32[1,8], index: 4, kind: input, shape index: {}]   ;;  %s12595_s5 = inlined_call_operand.vmem [shape: f32[9,8,8], index: 5, kind: input, shape index: {}]   ;;  %s12596_s6 = inlined_call_operand.vmem [shape: f32[1,8], index: 6, kind: input, shape index: {}]   ;;  %s12597_s7 = inlined_call_operand.vmem [shape: f32[4,8], index: 7, kind: input, shape index: {}]   ;;  %s12598_s8 = inlined_call_operand.vmem [shape: f32[1,8], index: 8, kind: input, shape index: {}]   ;;  %s12599_s9 = inlined_call_operand.<no memory space> [shape: f32[1], index: 9, kind: input, shape index: {}]   ;;  %s12600_s10 = inlined_call_operand.vmem [shape: f32[2,336,8], index: 10, kind: output, shape index: {}]  }
   0x1   :  { %15 = sst [smem:[#allocation3]] %s12599_s9 }
   0x2 LB: > { %s7157_s16 = sadd.s32 4294967295, %s9626_s15   ;;  %p7161_p0 = scmp.ge.s32.totalorder %s9626_s15, 1  ;;  %s9626_s15 = sphi %s9690_s15, %s21_s15  }
   0x3   : > { %p323_p1 = scmp.lt.s32.totalorder %s9626_s15, 3 }
   0x5   : > { %p324_p2 = pnand %p7161_p0, %p323_p1 }
   0x6   : > { %v382_v0 = vld [vmem:[%s12593_s3] sm:$0xff] (!%p324_p2)  ;;  %v383_v1 = vld [vmem:[%s12593_s3 + $0x8] sm:$0xff] (!%p324_p2)  ;;  %v384_v2 = vld [vmem:[%s12593_s3 + $0x10] sm:$0xff] (!%p324_p2)  ;;  %v9628_v3 = vmov (!%p324_p2), 0.0|0.0   ;;  %p366_p3 = scmp.lt.s32.totalorder (!%p324_p2), %s7157_s16, 1  ;;  %vm9629_vm0 = vmmov (!%p324_p2), 0  }
   0x7   : > { %327 = sbr.rel (%p324_p2) target bundleno = 1305 (0x519), region = 60  ;;  %9590 = vmatprep.subr.bf16.mxu0 (!%p324_p2), %v9628_v3  ;;  %9596 = vmatprep.subr.bf16.mxu1 (!%p324_p2), %v9628_v3  ;;  %v9591_v4 = vpack.c.bf16 (!%p324_p2), %v383_v1, %v382_v0  ;;  %v385_v5 = vld [vmem:[%s12593_s3 + $0x18] sm:$0xff] (!%p324_p2)  ;;  %v9630_v6 = vmov (!%p324_p2), 0.0   ;;  %v727_v8 = vld [vmem:[%s12590_s0] sm:$0xff] (!%p324_p2)  ;;  %v729_v9 = vld [vmem:[%s12590_s0 + $0x10] sm:$0xff] (!%p324_p2)  ;;  %v9631_v10 = vmov (!%p324_p2), 0  }
   0x8   : > { %8154 = vmatprep.mubr.msk.f32.mxu0 (!%p324_p2), %vm9629_vm0, %v9630_v6  ;;  %8227 = vmatprep.mubr.msk.f32.mxu1 (!%p324_p2), %vm9629_vm0, %v9630_v6  ;;  %v9594_v7 = vpack.c.bf16 (!%p324_p2), %v385_v5, %v384_v2  ;;  %v728_v11 = vld [vmem:[%s12590_s0 + $0x8] sm:$0xff] (!%p324_p2)  ;;  %v730_v12 = vld [vmem:[%s12590_s0 + $0x18] sm:$0xff] (!%p324_p2)  ;;  %v386_v13 = vld [vmem:[%s12593_s3 + $0x20] sm:$0xf] (!%p324_p2)  ;;  %vm489_vm1 = vcmask (!%p324_p2), 1043456   ;;  %vm425_vm2 = vcmask (!%p324_p2), 293888  }
   0x9   : > { %9592 = vmatpush3.bf16.msra.mxu0 (!%p324_p2), %v9591_v4  ;;  %9598 = vmatpush3.bf16.msra.mxu1 (!%p324_p2), %v9591_v4  ;;  %v731_v16 = vld [vmem:[%s12590_s0 + $0x20] sm:$0xff] (!%p324_p2)  ;;  %v732_v17 = vld [vmem:[%s12590_s0 + $0x28] sm:$0xff] (!%p324_p2)  ;;  %v733_v20 = vld [vmem:[%s12590_s0 + $0x30] sm:$0xff] (!%p324_p2)  ;;  %vm391_vm3 = vcmask (!%p324_p2), 64512   ;;  %s381_s30 = sld [smem:[#allocation3]] (!%p324_p2)  ;;  %vm3851_vm4 = vcmask (!%p324_p2), 31744  }
   0xa   : > { %9593 = vmatprep.subr.bf16.mxu0 (!%p324_p2), %v9628_v3  ;;  %9599 = vmatprep.subr.bf16.mxu1 (!%p324_p2), %v9628_v3  ;;  %v734_v21 = vld [vmem:[%s12590_s0 + $0x38] sm:$0xff] (!%p324_p2)  ;;  %v735_v24 = vld [vmem:[%s12590_s0 + $0x40] sm:$0xff] (!%p324_p2)  ;;  %v736_v25 = vld [vmem:[%s12590_s0 + $0x48] sm:$0xff] (!%p324_p2)  ;;  %392 = vst.msk [vmem:[#allocation2] sm:$0xff] (!%p324_p2), %vm391_vm3, %v9630_v6 }
   0xb   : > { %9615 = vset.pattern.permute.xlu0 (!%p324_p2), %v9631_v10  ;;  %9616 = vset.pattern.permute.xlu1 (!%p324_p2), %v9631_v10  ;;  %v737_v28 = vld [vmem:[%s12590_s0 + $0x50] sm:$0xff] (!%p324_p2)  ;;  %v738_v29 = vld [vmem:[%s12590_s0 + $0x58] sm:$0xff] (!%p324_p2)  ;;  %v739_v32 = vld [vmem:[%s12590_s0 + $0x60] sm:$0xff] (!%p324_p2)  ;;  %393 = vst.msk [vmem:[#allocation2 + $0x8] sm:$0xff] (!%p324_p2), %vm391_vm3, %v9630_v6 }
   0xc   : > { %750 = vperm.xlu0 (!%p324_p2), %9615, %v727_v8   ;;  %760 = vperm.xlu1 (!%p324_p2), %9616, %v729_v9   ;;  %v740_v33 = vld [vmem:[%s12590_s0 + $0x68] sm:$0xff] (!%p324_p2)  ;;  %v1401_v37 = vld [vmem:[%s12595_s5] sm:$0xff] (!%p324_p2)  ;;  %v741_v38 = vld [vmem:[%s12590_s0 + $0x70] sm:$0xff] (!%p324_p2)  ;;  %394 = vst.msk [vmem:[#allocation2 + $0x10] sm:$0xff] (!%p324_p2), %vm391_vm3, %v9630_v6 }
   0xd   : > { %9595 = vmatpush3.bf16.msra.mxu0 (!%p324_p2), %v9594_v7  ;;  %9601 = vmatpush3.bf16.msra.mxu1 (!%p324_p2), %v9594_v7  ;;  %v7210_v36 = vld [vmem:[%s12595_s5 + $0x8] sm:$0xff] (!%p324_p2)  ;;  %v742_v39 = vld [vmem:[%s12590_s0 + $0x78] sm:$0xff] (!%p324_p2)  ;;  %v743_v42 = vld [vmem:[%s12590_s0 + $0x80] sm:$0xff] (!%p324_p2)  ;;  %395 = vst.msk [vmem:[#allocation2 + $0x168] sm:$0xff] (!%p324_p2), %vm391_vm3, %v9630_v6 }
   0xe   : > { %s12602_s16 = smov (!%p366_p3, %s7157_s16), 1  ;;  %8152 = vmatprep.subr.mxu0 %v9630_v6  ;;  %8225 = vmatprep.subr.mxu1 %v9630_v6  ;;  %v744_v43 = vld [vmem:[%s12590_s0 + $0x88] sm:$0xff]  ;;  %v745_v46 = vld [vmem:[%s12590_s0 + $0x90] sm:$0xff]  ;;  %v746_v47 = vld [vmem:[%s12590_s0 + $0x98] sm:$0xff]  ;;  %396 = vst.msk [vmem:[#allocation2 + $0x170] sm:$0xff] %vm391_vm3, %v9630_v6 }
   0xf   : > { %s9720_s28 = smul.u32 336, %s12602_s16  ;;  %v747_v50 = vld [vmem:[%s12590_s0 + $0xa0] sm:$0xff]  ;;  %v1212_v51 = vld [vmem:[%s12590_s0 + $0xa8] sm:$0xff]  ;;  %v1213_v54 = vld [vmem:[%s12590_s0 + $0xb0] sm:$0xff]  ;;  %397 = vst.msk [vmem:[#allocation2 + $0x178] sm:$0xff] %vm391_vm3, %v9630_v6 }
  0x10   : > { %755 = vperm.xlu0 %9615, %v728_v11   ;;  %765 = vperm.xlu1 %9616, %v730_v12   ;;  %v1214_v55 = vld [vmem:[%s12590_s0 + $0xb8] sm:$0xff]  ;;  %v1215_v58 = vld [vmem:[%s12590_s0 + $0xc0] sm:$0xff]  ;;  %v1216_v59 = vld [vmem:[%s12590_s0 + $0xc8] sm:$0xff] }
  0x11   : > { %s9726_s11 = scalar_lea.vmem %s12591_s1, %s9720_s28  ;;  %8153 = vmatpush3.msk.msra.mxu0 %vm489_vm1, %v386_v13  ;;  %8226 = vmatpush3.msk.msra.mxu1 %vm489_vm1, %v386_v13  ;;  %v1217_v62 = vld [vmem:[%s12590_s0 + $0xd0] sm:$0xff]  ;;  %v1218_v63 = vld [vmem:[%s12590_s0 + $0xd8] sm:$0xff]  ;;  %v1219_v2 = vld [vmem:[%s12590_s0 + $0xe0] sm:$0xff]  ;;  %s10957_s27 = scalar_lea.vmem %s12592_s2, %s9720_s28 }
  0x12   : > { %v398_v14 = vld [vmem:[%s9726_s11] sm:$0xff]  ;;  %v895_v15 = vld [vmem:[%s9726_s11 + $0xa8] sm:$0xff]  ;;  %v896_v19 = vld [vmem:[%s9726_s11 + $0xb0] sm:$0xff]  ;;  %8290 = vmatprep.subr.mxu0 %v9630_v6  ;;  %8355 = vmatprep.subr.mxu1 %v9630_v6  ;;  %s11531_s29 = scalar_lea.vmem %s12600_s10, %s9720_s28 }
  0x13   : > { %8155 = vmatmul.mubr.msk.f32.vlgmr.msra.gmra.mrb[0].mxu0 %vm425_vm2, %v398_v14  ;;  %8228 = vmatmul.mubr.msk.f32.vlgmr.msra.gmra.mrb[0].mxu1 %vm425_vm2, %v895_v15  ;;  %v399_v18 = vld [vmem:[%s9726_s11 + $0x8] sm:$0xff]  ;;  %v400_v22 = vld [vmem:[%s9726_s11 + $0x10] sm:$0xff]  ;;  %v897_v23 = vld [vmem:[%s9726_s11 + $0xb8] sm:$0xff] }
  0x14   : > { %8157 = vmatprep.mubr.msk.f32.mxu0 %vm9629_vm0, %v9630_v6  ;;  %8230 = vmatprep.mubr.msk.f32.mxu1 %vm9629_vm0, %v9630_v6  ;;  %v401_v26 = vld [vmem:[%s9726_s11 + $0x18] sm:$0xff]  ;;  %v898_v27 = vld [vmem:[%s9726_s11 + $0xc0] sm:$0xff]  ;;  %v899_v31 = vld [vmem:[%s9726_s11 + $0xc8] sm:$0xff] }
  0x15   : > { %770 = vperm.xlu0 %9615, %v731_v16   ;;  %775 = vperm.xlu1 %9616, %v732_v17   ;;  %v402_v30 = vld [vmem:[%s9726_s11 + $0x20] sm:$0xff]  ;;  %v403_v34 = vld [vmem:[%s9726_s11 + $0x28] sm:$0xff]  ;;  %v900_v35 = vld [vmem:[%s9726_s11 + $0xd0] sm:$0xff] }
  0x16   : > { %8291 = vmatpush3.msra.mxu0 %v7210_v36  ;;  %8356 = vmatpush3.msra.mxu1 %v1401_v37  ;;  %v404_v40 = vld [vmem:[%s9726_s11 + $0x30] sm:$0xff]  ;;  %v901_v41 = vld [vmem:[%s9726_s11 + $0xd8] sm:$0xff]  ;;  %v902_v45 = vld [vmem:[%s9726_s11 + $0xe0] sm:$0xff] }
  0x17   : > { %8158 = vmatmul.mubr.msk.f32.gmra.mrb[2].mxu0 %vm425_vm2, %v399_v18  ;;  %8231 = vmatmul.mubr.msk.f32.gmra.mrb[2].mxu1 %vm425_vm2, %v896_v19  ;;  %v405_v44 = vld [vmem:[%s9726_s11 + $0x38] sm:$0xff]  ;;  %v406_v48 = vld [vmem:[%s9726_s11 + $0x40] sm:$0xff]  ;;  %v903_v49 = vld [vmem:[%s9726_s11 + $0xe8] sm:$0xff] }
  0x18   : > { %8160 = vmatprep.mubr.msk.f32.mxu0 %vm9629_vm0, %v9630_v6  ;;  %8233 = vmatprep.mubr.msk.f32.mxu1 %vm9629_vm0, %v9630_v6  ;;  %v407_v52 = vld [vmem:[%s9726_s11 + $0x48] sm:$0xff]  ;;  %v904_v53 = vld [vmem:[%s9726_s11 + $0xf0] sm:$0xff]  ;;  %v905_v57 = vld [vmem:[%s9726_s11 + $0xf8] sm:$0xff] }
  0x19   : > { %780 = vperm.xlu0 %9615, %v733_v20   ;;  %785 = vperm.xlu1 %9616, %v734_v21   ;;  %v408_v56 = vld [vmem:[%s9726_s11 + $0x50] sm:$0xff]  ;;  %v409_v60 = vld [vmem:[%s9726_s11 + $0x58] sm:$0xff]  ;;  %v906_v61 = vld [vmem:[%s9726_s11 + $0x100] sm:$0xff] }
  0x1a   : > { %8420 = vmatprep.subr.mxu0 %v9630_v6  ;;  %8485 = vmatprep.subr.mxu1 %v9630_v6  ;;  %v410_v0 = vld [vmem:[%s9726_s11 + $0x60] sm:$0xff]  ;;  %v907_v1 = vld [vmem:[%s9726_s11 + $0x108] sm:$0xff]  ;;  %v908_v5 = vld [vmem:[%s9726_s11 + $0x110] sm:$0xff] }
  0x1b   : > { %8161 = vmatmul.mubr.msk.f32.gmra.mrb[4].mxu0 %vm425_vm2, %v400_v22  ;;  %8234 = vmatmul.mubr.msk.f32.gmra.mrb[4].mxu1 %vm425_vm2, %v897_v23  ;;  %v1220_v3 = vld [vmem:[%s12590_s0 + $0xe8] sm:$0xff]  ;;  %v1221_v7 = vld [vmem:[%s12590_s0 + $0xf0] sm:$0xff]  ;;  %v1222_v8 = vld [vmem:[%s12590_s0 + $0xf8] sm:$0xff] }
  0x1c   : > { %8163 = vmatprep.mubr.msk.f32.mxu0 %vm9629_vm0, %v9630_v6  ;;  %8236 = vmatprep.mubr.msk.f32.mxu1 %vm9629_vm0, %v9630_v6  ;;  %v411_v4 = vld [vmem:[%s9726_s11 + $0x68] sm:$0xff]  ;;  %v412_v9 = vld [vmem:[%s9726_s11 + $0x70] sm:$0xff]  ;;  %v909_v10 = vld [vmem:[%s9726_s11 + $0x118] sm:$0xff] }
  0x1d   : > { %790 = vperm.xlu0 %9615, %v735_v24   ;;  %795 = vperm.xlu1 %9616, %v736_v25   ;;  %v1223_v11 = vld [vmem:[%s12590_s0 + $0x100] sm:$0xff]  ;;  %v1224_v12 = vld [vmem:[%s12590_s0 + $0x108] sm:$0xff]  ;;  %v413_v13 = vld [vmem:[%s9726_s11 + $0x78] sm:$0xff] }
  0x1e   : > { %v910_v14 = vld [vmem:[%s9726_s11 + $0x120] sm:$0xff]  ;;  %v1225_v15 = vld [vmem:[%s12590_s0 + $0x110] sm:$0xff]  ;;  %v1226_v16 = vld [vmem:[%s12590_s0 + $0x118] sm:$0xff] }
  0x1f   : > { %8164 = vmatmul.mubr.msk.f32.gmra.mrb[6].mxu0 %vm425_vm2, %v401_v26  ;;  %8237 = vmatmul.mubr.msk.f32.gmra.mrb[6].mxu1 %vm425_vm2, %v898_v27  ;;  %v414_v17 = vld [vmem:[%s9726_s11 + $0x80] sm:$0xff]  ;;  %v911_v18 = vld [vmem:[%s9726_s11 + $0x128] sm:$0xff]  ;;  %v912_v22 = vld [vmem:[%s9726_s11 + $0x130] sm:$0xff] }
  0x20   : > { %8166 = vmatprep.mubr.msk.f32.mxu0 %vm9629_vm0, %v9630_v6  ;;  %8239 = vmatprep.mubr.msk.f32.mxu1 %vm9629_vm0, %v9630_v6  ;;  %v1227_v19 = vld [vmem:[%s12590_s0 + $0x120] sm:$0xff]  ;;  %v1228_v20 = vld [vmem:[%s12590_s0 + $0x128] sm:$0xff]  ;;  %v1229_v23 = vld [vmem:[%s12590_s0 + $0x130] sm:$0xff] }
  0x21   : > { %800 = vperm.xlu0 %9615, %v737_v28   ;;  %805 = vperm.xlu1 %9616, %v738_v29   ;;  %v415_v21 = vld [vmem:[%s9726_s11 + $0x88] sm:$0xff]  ;;  %v1230_v24 = vld [vmem:[%s12590_s0 + $0x138] sm:$0xff]  ;;  %v416_v25 = vld [vmem:[%s9726_s11 + $0x90] sm:$0xff] }
  0x22   : > { %v913_v26 = vld [vmem:[%s9726_s11 + $0x138] sm:$0xff]  ;;  %v1231_v27 = vld [vmem:[%s12590_s0 + $0x140] sm:$0xff]  ;;  %v1232_v28 = vld [vmem:[%s12590_s0 + $0x148] sm:$0xff] }
  0x23   : > { %8167 = vmatmul.mubr.msk.f32.gmra.mrb[8].mxu0 %vm425_vm2, %v402_v30  ;;  %8240 = vmatmul.mubr.msk.f32.gmra.mrb[8].mxu1 %vm425_vm2, %v899_v31  ;;  %v417_v29 = vld [vmem:[%s9726_s11 + $0x98] sm:$0xff]  ;;  %v914_v30 = vld [vmem:[%s9726_s11 + $0x140] sm:$0xff]  ;;  %v1381_v36 = vld [vmem:[#allocation2 + $0xd] sm:$0xff] }
  0x24   : > { %8169 = vmatprep.mubr.msk.f32.mxu0 %vm9629_vm0, %v9630_v6  ;;  %8242 = vmatprep.mubr.msk.f32.mxu1 %vm9629_vm0, %v9630_v6  ;;  %v418_v31 = vld [vmem:[%s9726_s11 + $0xa0] sm:$0xff]  ;;  %v7253_v37 = vld [vmem:[%s12595_s5 + $0x10] sm:$0xff] }
  0x25   : > { %810 = vperm.xlu0 %9615, %v739_v32   ;;  %815 = vperm.xlu1 %9616, %v740_v33   ;;  %v915_v32 = vld [vmem:[%s9726_s11 + $0x148] sm:$0xff] }
  0x26   : > { %v1402_v33 = vld [vmem:[#allocation2 + $0x6] sm:$0xff] }
  0x27   : > { %8170 = vmatmul.mubr.msk.f32.gmra.mrb[10].mxu0 %vm425_vm2, %v403_v34  ;;  %8243 = vmatmul.mubr.msk.f32.gmra.mrb[10].mxu1 %vm425_vm2, %v900_v35  ;;  %v1380_v34 = vld [vmem:[#allocation2 + $0x5] sm:$0xff]  ;;  %v1403_v35 = vld [vmem:[#allocation2 + $0xe] sm:$0xff] }
  0x28   : > { %8172 = vmatprep.mubr.msk.f32.mxu0 %vm9629_vm0, %v9630_v6  ;;  %8245 = vmatprep.mubr.msk.f32.mxu1 %vm9629_vm0, %v9630_v6 }
  0x29   : > { %820 = vperm.xlu0 %9615, %v741_v38   ;;  %825 = vperm.xlu1 %9616, %v742_v39   ;;  %v7275_v38 = vld [vmem:[%s12595_s5 + $0x18] sm:$0xff] }
  0x2b   : > { %8173 = vmatmul.mubr.msk.f32.gmra.mrb[12].mxu0 %vm425_vm2, %v404_v40  ;;  %8246 = vmatmul.mubr.msk.f32.gmra.mrb[12].mxu1 %vm425_vm2, %v901_v41 }
  0x2c   : > { %8175 = vmatprep.mubr.msk.f32.mxu0 %vm9629_vm0, %v9630_v6  ;;  %8248 = vmatprep.mubr.msk.f32.mxu1 %vm9629_vm0, %v9630_v6 }
  0x2d   : > { %830 = vperm.xlu0 %9615, %v743_v42   ;;  %835 = vperm.xlu1 %9616, %v744_v43  }
  0x2f   : > { %8176 = vmatmul.mubr.msk.f32.gmra.mrb[14].mxu0 %vm425_vm2, %v405_v44  ;;  %8249 = vmatmul.mubr.msk.f32.gmra.mrb[14].mxu1 %vm425_vm2, %v902_v45 }
  0x30   : > { %8178 = vmatprep.mubr.msk.f32.mxu0 %vm9629_vm0, %v9630_v6  ;;  %8251 = vmatprep.mubr.msk.f32.mxu1 %vm9629_vm0, %v9630_v6 }
  0x31   : > { %840 = vperm.xlu0 %9615, %v745_v46   ;;  %845 = vperm.xlu1 %9616, %v746_v47  }
  0x33   : > { %8179 = vmatmul.mubr.msk.f32.gmra.mrb[16].mxu0 %vm425_vm2, %v406_v48  ;;  %8252 = vmatmul.mubr.msk.f32.gmra.mrb[16].mxu1 %vm425_vm2, %v903_v49 }
  0x34   : > { %8181 = vmatprep.mubr.msk.f32.mxu0 %vm9629_vm0, %v9630_v6  ;;  %8254 = vmatprep.mubr.msk.f32.mxu1 %vm9629_vm0, %v9630_v6 }
  0x35   : > { %850 = vperm.xlu0 %9615, %v747_v50   ;;  %1235 = vperm.xlu1 %9616, %v1212_v51  }
  0x37   : > { %8182 = vmatmul.mubr.msk.f32.gmra.mrb[18].mxu0 %vm425_vm2, %v407_v52  ;;  %8255 = vmatmul.mubr.msk.f32.gmra.mrb[18].mxu1 %vm425_vm2, %v904_v53 }
  0x38   : > { %8184 = vmatprep.mubr.msk.f32.mxu0 %vm9629_vm0, %v9630_v6  ;;  %8257 = vmatprep.mubr.msk.f32.mxu1 %vm9629_vm0, %v9630_v6 }
  0x39   : > { %1240 = vperm.xlu0 %9615, %v1213_v54   ;;  %1245 = vperm.xlu1 %9616, %v1214_v55  }
  0x3b   : > { %8185 = vmatmul.mubr.msk.f32.gmra.mrb[20].mxu0 %vm425_vm2, %v408_v56  ;;  %8258 = vmatmul.mubr.msk.f32.gmra.mrb[20].mxu1 %vm425_vm2, %v905_v57 }
  0x3c   : > { %8187 = vmatprep.mubr.msk.f32.mxu0 %vm9629_vm0, %v9630_v6  ;;  %8260 = vmatprep.mubr.msk.f32.mxu1 %vm9629_vm0, %v9630_v6 }
  0x3d   : > { %1250 = vperm.xlu0 %9615, %v1215_v58   ;;  %1255 = vperm.xlu1 %9616, %v1216_v59   ;;  %v10102_v58 = vld [vmem:[%s12594_s4] ss:$0 sm:$0xff] }
  0x3f   : > { %8188 = vmatmul.mubr.msk.f32.gmra.mrb[22].mxu0 %vm425_vm2, %v409_v60  ;;  %8261 = vmatmul.mubr.msk.f32.gmra.mrb[22].mxu1 %vm425_vm2, %v906_v61  ;;  %v10106_v61 = vstv %s381_s30 }
  0x40   : > { %8190 = vmatprep.mubr.msk.f32.mxu0 %vm9629_vm0, %v9630_v6  ;;  %8263 = vmatprep.mubr.msk.f32.mxu1 %vm9629_vm0, %v9630_v6 }
  0x41   : > { %1260 = vperm.xlu0 %9615, %v1217_v62   ;;  %1265 = vperm.xlu1 %9616, %v1218_v63  }
  0x43   : > { %8191 = vmatmul.mubr.msk.f32.gmra.mrb[24].mxu0 %vm425_vm2, %v410_v0  ;;  %8264 = vmatmul.mubr.msk.f32.gmra.mrb[24].mxu1 %vm425_vm2, %v907_v1 }
  0x44   : > { %8193 = vmatprep.mubr.msk.f32.mxu0 %vm9629_vm0, %v9630_v6  ;;  %8266 = vmatprep.mubr.msk.f32.mxu1 %vm9629_vm0, %v9630_v6 }
  0x45   : > { %1270 = vperm.xlu0 %9615, %v1219_v2   ;;  %1275 = vperm.xlu1 %9616, %v1220_v3  }
  0x47   : > { %8194 = vmatmul.mubr.msk.f32.gmra.mrb[26].mxu0 %vm425_vm2, %v411_v4  ;;  %8267 = vmatmul.mubr.msk.f32.gmra.mrb[26].mxu1 %vm425_vm2, %v908_v5 }
  0x48   : > { %8196 = vmatprep.mubr.msk.f32.mxu0 %vm9629_vm0, %v9630_v6  ;;  %8269 = vmatprep.mubr.msk.f32.mxu1 %vm9629_vm0, %v9630_v6 }
  0x49   : > { %1280 = vperm.xlu0 %9615, %v1221_v7   ;;  %1285 = vperm.xlu1 %9616, %v1222_v8  }
  0x4b   : > { %8197 = vmatmul.mubr.msk.f32.gmra.mrb[28].mxu0 %vm425_vm2, %v412_v9  ;;  %8270 = vmatmul.mubr.msk.f32.gmra.mrb[28].mxu1 %vm425_vm2, %v909_v10 }
  0x4c   : > { %8199 = vmatprep.mubr.msk.f32.mxu0 %vm9629_vm0, %v9630_v6  ;;  %8272 = vmatprep.mubr.msk.f32.mxu1 %vm9629_vm0, %v9630_v6 }
  0x4d   : > { %1290 = vperm.xlu0 %9615, %v1223_v11   ;;  %1295 = vperm.xlu1 %9616, %v1224_v12  }
  0x4f   : > { %8200 = vmatmul.mubr.msk.f32.gmra.mrb[30].mxu0 %vm425_vm2, %v413_v13  ;;  %8273 = vmatmul.mubr.msk.f32.gmra.mrb[30].mxu1 %vm425_vm2, %v910_v14 }
  0x50   : > { %8202 = vmatprep.mubr.msk.f32.mxu0 %vm9629_vm0, %v9630_v6  ;;  %8275 = vmatprep.mubr.msk.f32.mxu1 %vm9629_vm0, %v9630_v6 }
  0x51   : > { %1300 = vperm.xlu0 %9615, %v1225_v15   ;;  %1305 = vperm.xlu1 %9616, %v1226_v16  }
  0x53   : > { %8203 = vmatmul.mubr.msk.f32.gmra.mrb[32].mxu0 %vm425_vm2, %v414_v17  ;;  %8276 = vmatmul.mubr.msk.f32.gmra.mrb[32].mxu1 %vm425_vm2, %v911_v18 }
  0x54   : > { %8205 = vmatprep.mubr.msk.f32.mxu0 %vm9629_vm0, %v9630_v6  ;;  %8278 = vmatprep.mubr.msk.f32.mxu1 %vm9629_vm0, %v9630_v6 }
  0x55   : > { %1310 = vperm.xlu0 %9615, %v1227_v19   ;;  %1315 = vperm.xlu1 %9616, %v1228_v20  }
  0x57   : > { %8206 = vmatmul.mubr.msk.f32.gmra.mrb[34].mxu0 %vm425_vm2, %v415_v21  ;;  %8279 = vmatmul.mubr.msk.f32.gmra.mrb[34].mxu1 %vm425_vm2, %v912_v22 }
  0x58   : > { %8208 = vmatprep.mubr.msk.f32.mxu0 %vm9629_vm0, %v9630_v6  ;;  %8281 = vmatprep.mubr.msk.f32.mxu1 %vm9629_vm0, %v9630_v6 }
  0x59   : > { %1320 = vperm.xlu0 %9615, %v1229_v23   ;;  %1325 = vperm.xlu1 %9616, %v1230_v24  }
  0x5b   : > { %8209 = vmatmul.mubr.msk.f32.gmra.mrb[36].mxu0 %vm425_vm2, %v416_v25  ;;  %8282 = vmatmul.mubr.msk.f32.gmra.mrb[36].mxu1 %vm425_vm2, %v913_v26 }
  0x5c   : > { %8211 = vmatprep.mubr.msk.f32.mxu0 %vm9629_vm0, %v9630_v6  ;;  %8284 = vmatprep.mubr.msk.f32.mxu1 %vm9629_vm0, %v9630_v6 }
  0x5d   : > { %1330 = vperm.xlu0 %9615, %v1231_v27   ;;  %1335 = vperm.xlu1 %9616, %v1232_v28  }
  0x5f   : > { %8212 = vmatmul.mubr.msk.f32.gmra.mrb[38].mxu0 %vm425_vm2, %v417_v29  ;;  %8285 = vmatmul.mubr.msk.f32.gmra.mrb[38].mxu1 %vm425_vm2, %v914_v30 }
  0x60   : > { %8214 = vmatprep.mubr.msk.f32.mxu0 %vm9629_vm0, %v9630_v6  ;;  %8287 = vmatprep.mubr.msk.f32.mxu1 %vm9629_vm0, %v9630_v6 }
  0x63   : > { %8215 = vmatmul.mubr.msk.f32.gmra.mrb[40].mxu0 %vm425_vm2, %v418_v31  ;;  %8288 = vmatmul.mubr.msk.f32.gmra.mrb[40].mxu1 %vm425_vm2, %v915_v32 }
  0x64   : > { %8292 = vmatprep.mubr.msk.f32.mxu0 %vm9629_vm0, %v9630_v6  ;;  %8357 = vmatprep.mubr.msk.f32.mxu1 %vm9629_vm0, %v9630_v6 }
  0x67   : > { %8293 = vmatmul.mubr.msk.f32.vlgmr.msra.gmra.mrb[42].mxu0 %vm391_vm3, %v1402_v33  ;;  %8358 = vmatmul.mubr.msk.f32.vlgmr.msra.gmra.mrb[42].mxu1 %vm391_vm3, %v1380_v34 }
  0x68   : > { %8295 = vmatprep.mubr.msk.f32.mxu0 %vm9629_vm0, %v9630_v6  ;;  %8360 = vmatprep.mubr.msk.f32.mxu1 %vm9629_vm0, %v9630_v6 }
  0x69   : > { %8421 = vmatpush3.msra.mxu0 %v7253_v37  ;;  %8486 = vmatpush3.msra.mxu1 %v7275_v38 }
  0x6a   : > { %8550 = vmatprep.subr.mxu0 %v9630_v6  ;;  %8615 = vmatprep.subr.mxu1 %v9630_v6 }
  0x6b   : > { %8296 = vmatmul.mubr.msk.f32.gmra.mrb[44].mxu0 %vm391_vm3, %v1403_v35  ;;  %8361 = vmatmul.mubr.msk.f32.gmra.mrb[44].mxu1 %vm391_vm3, %v1381_v36 }
  0x6c   : > { %8298 = vmatprep.mubr.msk.f32.mxu0 %vm9629_vm0, %v9630_v6  ;;  %8363 = vmatprep.mubr.msk.f32.mxu1 %vm9629_vm0, %v9630_v6 }
  0x8b   : > { %v751_v39 = vpop.permute.xlu0 %750  ;;  %v10065_v40 = vpop.permute.xlu1 %760 }
  0x8f   : > { %v756_v41 = vpop.permute.xlu0 %755  ;;  %v10067_v42 = vpop.permute.xlu1 %765 }
  0x94   : > { %v10069_v43 = vpop.permute.xlu0 %770  ;;  %v10071_v44 = vpop.permute.xlu1 %775 }
  0x98   : > { %v10073_v45 = vpop.permute.xlu0 %780  ;;  %v10075_v46 = vpop.permute.xlu1 %785 }
  0x9c   : > { %v10077_v47 = vpop.permute.xlu0 %790  ;;  %v10079_v48 = vpop.permute.xlu1 %795 }
  0xa0   : > { %v10081_v49 = vpop.permute.xlu0 %800  ;;  %v10083_v50 = vpop.permute.xlu1 %805 }
  0xa4   : > { %v10085_v51 = vpop.permute.xlu0 %810  ;;  %v10087_v52 = vpop.permute.xlu1 %815 }
  0xa8   : > { %v10089_v53 = vpop.permute.xlu0 %820  ;;  %v10091_v54 = vpop.permute.xlu1 %825 }
  0xac   : > { %v10093_v55 = vpop.permute.xlu0 %830  ;;  %v10095_v56 = vpop.permute.xlu1 %835 }
  0xb0   : > { %v10097_v57 = vpop.permute.xlu0 %840  ;;  %v10104_v59 = vpop.permute.xlu1 %845 }
  0xb4   : > { %v10110_v3 = vpop.permute.xlu0 %850  ;;  %v1236_v15 = vpop.permute.xlu1 %1235 }
  0xb8   : > { %v1241_v30 = vpop.permute.xlu0 %1240 }
  0xe6   : > { %v559_v60 = vpop.f32.mrb[0].mxu0  ;;  %v1045_v62 = vpop.f32.mrb[0].mxu1 }
  0xe7   : > { %v560_v63 = vadd.f32 %v10102_v58, %v559_v60  ;;  %v8156_v0 = vpop.f32.mrb[1].mxu0  ;;  %v1046_v1 = vadd.f32 %v10102_v58, %v1045_v62  ;;  %v8229_v2 = vpop.f32.mrb[1].mxu1 }
  0xe8   : > { %v1246_v2 = vpop.permute.xlu1 %1245 }
  0xe9   : > { %v664_v4 = vsub.f32 %v560_v63, %v10106_v61  ;;  %v1149_v5 = vsub.f32 %v1046_v1, %v10106_v61 }
  0xea   : > { %v564_v7 = vpop.f32.mrb[2].mxu0  ;;  %v1050_v8 = vpop.f32.mrb[2].mxu1 }
  0xeb   : > { %v685_v9 = vmax.f32 %v664_v4, 0.0  ;;  %v1170_v10 = vmax.f32 %v1149_v5, 0.0  ;;  %v565_v11 = vadd.f32 %v10102_v58, %v564_v7  ;;  %v1051_v12 = vadd.f32 %v10102_v58, %v1050_v8  ;;  %v8159_v13 = vpop.f32.mrb[3].mxu0  ;;  %v8232_v14 = vpop.f32.mrb[3].mxu1 }
  0xed   : > { %v706_v16 = vadd.f32 %v685_v9, %v10106_v61  ;;  %v1191_v17 = vadd.f32 %v1170_v10, %v10106_v61  ;;  %v665_v18 = vsub.f32 %v565_v11, %v10106_v61  ;;  %v1150_v19 = vsub.f32 %v1051_v12, %v10106_v61 }
  0xee   : > { %v569_v20 = vpop.f32.mrb[4].mxu0  ;;  %v1055_v21 = vpop.f32.mrb[4].mxu1 }
  0xef   : > { %v853_v22 = vmul.f32 %v751_v39, %v706_v16  ;;  %v1338_v23 = vmul.f32 %v1236_v15, %v1191_v17  ;;  %v686_v24 = vmax.f32 %v665_v18, 0.0  ;;  %v1171_v25 = vmax.f32 %v1150_v19, 0.0  ;;  %v8162_v26 = vpop.f32.mrb[5].mxu0  ;;  %v8235_v27 = vpop.f32.mrb[5].mxu1 }
  0xf0   : > { %v570_v28 = vadd.f32 %v10102_v58, %v569_v20  ;;  %v1056_v29 = vadd.f32 %v10102_v58, %v1055_v21  ;;  %v1251_v20 = vpop.permute.xlu0 %1250 }
  0xf1   : > { %874 = vst.msk [vmem:[#allocation2 + $0x18] sm:$0xff] %vm391_vm3, %v853_v22  ;;  %1359 = vst.msk [vmem:[#allocation2 + $0xc0] sm:$0xff] %vm391_vm3, %v1338_v23  ;;  %v707_v31 = vadd.f32 %v686_v24, %v10106_v61  ;;  %v1192_v32 = vadd.f32 %v1171_v25, %v10106_v61 }
  0xf2   : > { %v666_v33 = vsub.f32 %v570_v28, %v10106_v61  ;;  %v1151_v34 = vsub.f32 %v1056_v29, %v10106_v61  ;;  %v574_v35 = vpop.f32.mrb[6].mxu0  ;;  %v1060_v36 = vpop.f32.mrb[6].mxu1 }
  0xf3   : > { %v854_v37 = vmul.f32 %v756_v41, %v707_v31  ;;  %v1339_v38 = vmul.f32 %v1241_v30, %v1192_v32  ;;  %v575_v39 = vadd.f32 %v10102_v58, %v574_v35  ;;  %v1061_v60 = vadd.f32 %v10102_v58, %v1060_v36  ;;  %v8165_v62 = vpop.f32.mrb[7].mxu0  ;;  %v8238_v63 = vpop.f32.mrb[7].mxu1 }
  0xf4   : > { %v687_v0 = vmax.f32 %v666_v33, 0.0  ;;  %v1172_v1 = vmax.f32 %v1151_v34, 0.0  ;;  %v1256_v36 = vpop.permute.xlu1 %1255 }
  0xf5   : > { %875 = vst.msk [vmem:[#allocation2 + $0x20] sm:$0xff] %vm391_vm3, %v854_v37  ;;  %1360 = vst.msk [vmem:[#allocation2 + $0xc8] sm:$0xff] %vm391_vm3, %v1339_v38  ;;  %v667_v4 = vsub.f32 %v575_v39, %v10106_v61  ;;  %v1152_v5 = vsub.f32 %v1061_v60, %v10106_v61 }
  0xf6   : > { %v708_v41 = vadd.f32 %v687_v0, %v10106_v61  ;;  %v1193_v7 = vadd.f32 %v1172_v1, %v10106_v61  ;;  %v579_v8 = vpop.f32.mrb[8].mxu0  ;;  %v1065_v9 = vpop.f32.mrb[8].mxu1 }
  0xf7   : > { %v688_v10 = vmax.f32 %v667_v4, 0.0  ;;  %v1173_v11 = vmax.f32 %v1152_v5, 0.0  ;;  %v580_v12 = vadd.f32 %v10102_v58, %v579_v8  ;;  %v1066_v13 = vadd.f32 %v10102_v58, %v1065_v9  ;;  %v8168_v14 = vpop.f32.mrb[9].mxu0  ;;  %v8241_v15 = vpop.f32.mrb[9].mxu1 }
  0xf8   : > { %v855_v16 = vmul.f32 %v10065_v40, %v708_v41  ;;  %v1340_v17 = vmul.f32 %v1246_v2, %v1193_v7  ;;  %v1404_v18 = vld [vmem:[#allocation2 + $0x16] sm:$0xff]  ;;  %v1261_v8 = vpop.permute.xlu0 %1260 }
  0xf9   : > { %v1382_v19 = vld [vmem:[#allocation2 + $0x15] sm:$0xff]  ;;  %v709_v21 = vadd.f32 %v688_v10, %v10106_v61  ;;  %v1194_v22 = vadd.f32 %v1173_v11, %v10106_v61  ;;  %v668_v23 = vsub.f32 %v580_v12, %v10106_v61  ;;  %v1153_v24 = vsub.f32 %v1066_v13, %v10106_v61  ;;  %8299 = vmatmul.mubr.msk.f32.gmra.mrb[46].mxu0 %vm391_vm3, %v1404_v18 }
  0xfa   : > { %876 = vst.msk [vmem:[#allocation2 + $0x28] sm:$0xff] %vm391_vm3, %v855_v16  ;;  %1361 = vst.msk [vmem:[#allocation2 + $0xd0] sm:$0xff] %vm391_vm3, %v1340_v17  ;;  %8364 = vmatmul.mubr.msk.f32.gmra.mrb[46].mxu1 %vm391_vm3, %v1382_v19  ;;  %v584_v40 = vpop.f32.mrb[10].mxu0  ;;  %v1070_v25 = vpop.f32.mrb[10].mxu1  ;;  %8301 = vmatprep.mubr.msk.f32.mxu0 %vm9629_vm0, %v9630_v6 }
  0xfb   : > { %v856_v26 = vmul.f32 %v10067_v42, %v709_v21  ;;  %v1341_v27 = vmul.f32 %v1251_v20, %v1194_v22  ;;  %v689_v28 = vmax.f32 %v668_v23, 0.0  ;;  %v1174_v29 = vmax.f32 %v1153_v24, 0.0  ;;  %v8171_v30 = vpop.f32.mrb[11].mxu0  ;;  %8366 = vmatprep.mubr.msk.f32.mxu1 %vm9629_vm0, %v9630_v6  ;;  %v8244_v31 = vpop.f32.mrb[11].mxu1 }
  0xfc   : > { %v585_v32 = vadd.f32 %v10102_v58, %v584_v40  ;;  %v1071_v33 = vadd.f32 %v10102_v58, %v1070_v25  ;;  %v1405_v34 = vld [vmem:[#allocation2 + $0x1e] sm:$0xff]  ;;  %v1266_v25 = vpop.permute.xlu1 %1265 }
  0xfd   : > { %v1383_v35 = vld [vmem:[#allocation2 + $0x1d] sm:$0xff]  ;;  %877 = vst.msk [vmem:[#allocation2 + $0x30] sm:$0xff] %vm391_vm3, %v856_v26  ;;  %1362 = vst.msk [vmem:[#allocation2 + $0xd8] sm:$0xff] %vm391_vm3, %v1341_v27  ;;  %v710_v42 = vadd.f32 %v689_v28, %v10106_v61  ;;  %v1195_v37 = vadd.f32 %v1174_v29, %v10106_v61  ;;  %8302 = vmatmul.mubr.msk.f32.gmra.mrb[48].mxu0 %vm391_vm3, %v1405_v34 }
  0xfe   : > { %v669_v38 = vsub.f32 %v585_v32, %v10106_v61  ;;  %v1154_v39 = vsub.f32 %v1071_v33, %v10106_v61  ;;  %8367 = vmatmul.mubr.msk.f32.gmra.mrb[48].mxu1 %vm391_vm3, %v1383_v35  ;;  %v589_v60 = vpop.f32.mrb[12].mxu0  ;;  %v1075_v62 = vpop.f32.mrb[12].mxu1  ;;  %8304 = vmatprep.mubr.msk.f32.mxu0 %vm9629_vm0, %v9630_v6 }
  0xff   : > { %v857_v63 = vmul.f32 %v10069_v43, %v710_v42  ;;  %v1342_v0 = vmul.f32 %v1256_v36, %v1195_v37  ;;  %v590_v1 = vadd.f32 %v10102_v58, %v589_v60  ;;  %v1076_v2 = vadd.f32 %v10102_v58, %v1075_v62  ;;  %v8174_v4 = vpop.f32.mrb[13].mxu0  ;;  %8369 = vmatprep.mubr.msk.f32.mxu1 %vm9629_vm0, %v9630_v6  ;;  %v8247_v5 = vpop.f32.mrb[13].mxu1 }
 0x100   : > { %v690_v41 = vmax.f32 %v669_v38, 0.0  ;;  %v1175_v7 = vmax.f32 %v1154_v39, 0.0  ;;  %v1271_v60 = vpop.permute.xlu0 %1270 }
 0x101   : > { %878 = vst.msk [vmem:[#allocation2 + $0x38] sm:$0xff] %vm391_vm3, %v857_v63  ;;  %1363 = vst.msk [vmem:[#allocation2 + $0xe0] sm:$0xff] %vm391_vm3, %v1342_v0  ;;  %v670_v9 = vsub.f32 %v590_v1, %v10106_v61  ;;  %v1155_v43 = vsub.f32 %v1076_v2, %v10106_v61  ;;  %v1406_v10 = vld [vmem:[#allocation2 + $0x26] sm:$0xff] }
 0x102   : > { %v1384_v11 = vld [vmem:[#allocation2 + $0x25] sm:$0xff]  ;;  %v711_v12 = vadd.f32 %v690_v41, %v10106_v61  ;;  %v1196_v13 = vadd.f32 %v1175_v7, %v10106_v61  ;;  %8305 = vmatmul.mubr.msk.f32.gmra.mrb[50].mxu0 %vm391_vm3, %v1406_v10  ;;  %v594_v14 = vpop.f32.mrb[14].mxu0  ;;  %v1080_v15 = vpop.f32.mrb[14].mxu1 }
 0x103   : > { %8370 = vmatmul.mubr.msk.f32.gmra.mrb[50].mxu1 %vm391_vm3, %v1384_v11  ;;  %v691_v16 = vmax.f32 %v670_v9, 0.0  ;;  %v1176_v17 = vmax.f32 %v1155_v43, 0.0  ;;  %v595_v18 = vadd.f32 %v10102_v58, %v594_v14  ;;  %v1081_v19 = vadd.f32 %v10102_v58, %v1080_v15  ;;  %v8177_v20 = vpop.f32.mrb[15].mxu0  ;;  %8307 = vmatprep.mubr.msk.f32.mxu0 %vm9629_vm0, %v9630_v6  ;;  %v8250_v21 = vpop.f32.mrb[15].mxu1 }
 0x104   : > { %8372 = vmatprep.mubr.msk.f32.mxu1 %vm9629_vm0, %v9630_v6  ;;  %v858_v22 = vmul.f32 %v10071_v44, %v711_v12  ;;  %v1343_v23 = vmul.f32 %v1261_v8, %v1196_v13  ;;  %v1407_v24 = vld [vmem:[#allocation2 + $0x2e] sm:$0xff]  ;;  %v1276_v11 = vpop.permute.xlu1 %1275 }
 0x105   : > { %v1385_v40 = vld [vmem:[#allocation2 + $0x2d] sm:$0xff]  ;;  %v712_v26 = vadd.f32 %v691_v16, %v10106_v61  ;;  %v1197_v27 = vadd.f32 %v1176_v17, %v10106_v61  ;;  %v671_v28 = vsub.f32 %v595_v18, %v10106_v61  ;;  %v1156_v29 = vsub.f32 %v1081_v19, %v10106_v61 }
 0x106   : > { %879 = vst.msk [vmem:[#allocation2 + $0x40] sm:$0xff] %vm391_vm3, %v858_v22  ;;  %1364 = vst.msk [vmem:[#allocation2 + $0xe8] sm:$0xff] %vm391_vm3, %v1343_v23  ;;  %8308 = vmatmul.mubr.msk.f32.gmra.mrb[52].mxu0 %vm391_vm3, %v1407_v24  ;;  %v599_v44 = vpop.f32.mrb[16].mxu0  ;;  %v1085_v30 = vpop.f32.mrb[16].mxu1 }
 0x107   : > { %8373 = vmatmul.mubr.msk.f32.gmra.mrb[52].mxu1 %vm391_vm3, %v1385_v40  ;;  %v859_v31 = vmul.f32 %v10073_v45, %v712_v26  ;;  %v1344_v32 = vmul.f32 %v1266_v25, %v1197_v27  ;;  %v692_v33 = vmax.f32 %v671_v28, 0.0  ;;  %v1177_v34 = vmax.f32 %v1156_v29, 0.0  ;;  %v8180_v35 = vpop.f32.mrb[17].mxu0  ;;  %8310 = vmatprep.mubr.msk.f32.mxu0 %vm9629_vm0, %v9630_v6  ;;  %v8253_v36 = vpop.f32.mrb[17].mxu1 }
 0x108   : > { %8375 = vmatprep.mubr.msk.f32.mxu1 %vm9629_vm0, %v9630_v6  ;;  %v600_v42 = vadd.f32 %v10102_v58, %v599_v44  ;;  %v1086_v37 = vadd.f32 %v10102_v58, %v1085_v30  ;;  %v1408_v38 = vld [vmem:[#allocation2 + $0x36] sm:$0xff]  ;;  %v1281_v28 = vpop.permute.xlu0 %1280 }
 0x109   : > { %v1386_v39 = vld [vmem:[#allocation2 + $0x35] sm:$0xff]  ;;  %880 = vst.msk [vmem:[#allocation2 + $0x48] sm:$0xff] %vm391_vm3, %v859_v31  ;;  %1365 = vst.msk [vmem:[#allocation2 + $0xf0] sm:$0xff] %vm391_vm3, %v1344_v32  ;;  %v713_v45 = vadd.f32 %v692_v33, %v10106_v61  ;;  %v1198_v62 = vadd.f32 %v1177_v34, %v10106_v61 }
 0x10a   : > { %v672_v63 = vsub.f32 %v600_v42, %v10106_v61  ;;  %v1157_v0 = vsub.f32 %v1086_v37, %v10106_v61  ;;  %8311 = vmatmul.mubr.msk.f32.gmra.mrb[54].mxu0 %vm391_vm3, %v1408_v38  ;;  %v604_v1 = vpop.f32.mrb[18].mxu0  ;;  %v1090_v2 = vpop.f32.mrb[18].mxu1 }
 0x10b   : > { %8376 = vmatmul.mubr.msk.f32.gmra.mrb[54].mxu1 %vm391_vm3, %v1386_v39  ;;  %v860_v4 = vmul.f32 %v10075_v46, %v713_v45  ;;  %v1345_v5 = vmul.f32 %v1271_v60, %v1198_v62  ;;  %v605_v41 = vadd.f32 %v10102_v58, %v604_v1  ;;  %v1091_v7 = vadd.f32 %v10102_v58, %v1090_v2  ;;  %v8183_v8 = vpop.f32.mrb[19].mxu0  ;;  %v8256_v9 = vpop.f32.mrb[19].mxu1 }
 0x10c   : > { %8313 = vmatprep.mubr.msk.f32.mxu0 %vm9629_vm0, %v9630_v6  ;;  %v693_v43 = vmax.f32 %v672_v63, 0.0  ;;  %v1178_v10 = vmax.f32 %v1157_v0, 0.0  ;;  %8378 = vmatprep.mubr.msk.f32.mxu1 %vm9629_vm0, %v9630_v6  ;;  %v1286_v62 = vpop.permute.xlu1 %1285 }
 0x10d   : > { %881 = vst.msk [vmem:[#allocation2 + $0x50] sm:$0xff] %vm391_vm3, %v860_v4  ;;  %1366 = vst.msk [vmem:[#allocation2 + $0xf8] sm:$0xff] %vm391_vm3, %v1345_v5  ;;  %v673_v46 = vsub.f32 %v605_v41, %v10106_v61  ;;  %v1158_v12 = vsub.f32 %v1091_v7, %v10106_v61  ;;  %v1409_v13 = vld [vmem:[#allocation2 + $0x3e] sm:$0xff] }
 0x10e   : > { %v1387_v14 = vld [vmem:[#allocation2 + $0x3d] sm:$0xff]  ;;  %v714_v15 = vadd.f32 %v693_v43, %v10106_v61  ;;  %v1199_v16 = vadd.f32 %v1178_v10, %v10106_v61  ;;  %8314 = vmatmul.mubr.msk.f32.gmra.mrb[56].mxu0 %vm391_vm3, %v1409_v13  ;;  %v609_v17 = vpop.f32.mrb[20].mxu0  ;;  %v1095_v18 = vpop.f32.mrb[20].mxu1 }
 0x10f   : > { %8379 = vmatmul.mubr.msk.f32.gmra.mrb[56].mxu1 %vm391_vm3, %v1387_v14  ;;  %v694_v19 = vmax.f32 %v673_v46, 0.0  ;;  %v1179_v20 = vmax.f32 %v1158_v12, 0.0  ;;  %v610_v21 = vadd.f32 %v10102_v58, %v609_v17  ;;  %v1096_v22 = vadd.f32 %v10102_v58, %v1095_v18  ;;  %v8186_v23 = vpop.f32.mrb[21].mxu0  ;;  %8316 = vmatprep.mubr.msk.f32.mxu0 %vm9629_vm0, %v9630_v6  ;;  %v8259_v24 = vpop.f32.mrb[21].mxu1 }
 0x110   : > { %8381 = vmatprep.mubr.msk.f32.mxu1 %vm9629_vm0, %v9630_v6  ;;  %v861_v40 = vmul.f32 %v10077_v47, %v714_v15  ;;  %v1346_v25 = vmul.f32 %v1276_v11, %v1199_v16  ;;  %v1410_v26 = vld [vmem:[#allocation2 + $0x46] sm:$0xff]  ;;  %v1291_v46 = vpop.permute.xlu0 %1290 }
 0x111   : > { %v1388_v27 = vld [vmem:[#allocation2 + $0x45] sm:$0xff]  ;;  %v715_v29 = vadd.f32 %v694_v19, %v10106_v61  ;;  %v1200_v44 = vadd.f32 %v1179_v20, %v10106_v61  ;;  %v674_v30 = vsub.f32 %v610_v21, %v10106_v61  ;;  %v1159_v31 = vsub.f32 %v1096_v22, %v10106_v61 }
 0x112   : > { %882 = vst.msk [vmem:[#allocation2 + $0x58] sm:$0xff] %vm391_vm3, %v861_v40  ;;  %1367 = vst.msk [vmem:[#allocation2 + $0x100] sm:$0xff] %vm391_vm3, %v1346_v25  ;;  %8317 = vmatmul.mubr.msk.f32.gmra.mrb[58].mxu0 %vm391_vm3, %v1410_v26  ;;  %v614_v47 = vpop.f32.mrb[22].mxu0  ;;  %v1100_v32 = vpop.f32.mrb[22].mxu1 }
 0x113   : > { %8382 = vmatmul.mubr.msk.f32.gmra.mrb[58].mxu1 %vm391_vm3, %v1388_v27  ;;  %v862_v33 = vmul.f32 %v10079_v48, %v715_v29  ;;  %v1347_v34 = vmul.f32 %v1281_v28, %v1200_v44  ;;  %v695_v35 = vmax.f32 %v674_v30, 0.0  ;;  %v1180_v36 = vmax.f32 %v1159_v31, 0.0  ;;  %v8189_v42 = vpop.f32.mrb[23].mxu0  ;;  %8319 = vmatprep.mubr.msk.f32.mxu0 %vm9629_vm0, %v9630_v6  ;;  %v8262_v37 = vpop.f32.mrb[23].mxu1 }
 0x114   : > { %8384 = vmatprep.mubr.msk.f32.mxu1 %vm9629_vm0, %v9630_v6  ;;  %v615_v38 = vadd.f32 %v10102_v58, %v614_v47  ;;  %v1101_v39 = vadd.f32 %v10102_v58, %v1100_v32  ;;  %v1411_v60 = vld [vmem:[#allocation2 + $0x4e] sm:$0xff]  ;;  %v1296_v28 = vpop.permute.xlu1 %1295 }
 0x115   : > { %v1389_v45 = vld [vmem:[#allocation2 + $0x4d] sm:$0xff]  ;;  %883 = vst.msk [vmem:[#allocation2 + $0x60] sm:$0xff] %vm391_vm3, %v862_v33  ;;  %1368 = vst.msk [vmem:[#allocation2 + $0x108] sm:$0xff] %vm391_vm3, %v1347_v34  ;;  %v716_v48 = vadd.f32 %v695_v35, %v10106_v61  ;;  %v1201_v63 = vadd.f32 %v1180_v36, %v10106_v61 }
 0x116   : > { %v675_v0 = vsub.f32 %v615_v38, %v10106_v61  ;;  %v1160_v1 = vsub.f32 %v1101_v39, %v10106_v61  ;;  %8320 = vmatmul.mubr.msk.f32.gmra.mrb[60].mxu0 %vm391_vm3, %v1411_v60  ;;  %v619_v2 = vpop.f32.mrb[24].mxu0  ;;  %v1105_v4 = vpop.f32.mrb[24].mxu1 }
 0x117   : > { %8385 = vmatmul.mubr.msk.f32.gmra.mrb[60].mxu1 %vm391_vm3, %v1389_v45  ;;  %v863_v5 = vmul.f32 %v10081_v49, %v716_v48  ;;  %v1348_v41 = vmul.f32 %v1286_v62, %v1201_v63  ;;  %v620_v7 = vadd.f32 %v10102_v58, %v619_v2  ;;  %v1106_v8 = vadd.f32 %v10102_v58, %v1105_v4  ;;  %v8192_v9 = vpop.f32.mrb[25].mxu0  ;;  %v8265_v43 = vpop.f32.mrb[25].mxu1 }
 0x118   : > { %8322 = vmatprep.mubr.msk.f32.mxu0 %vm9629_vm0, %v9630_v6  ;;  %v696_v10 = vmax.f32 %v675_v0, 0.0  ;;  %v1181_v11 = vmax.f32 %v1160_v1, 0.0  ;;  %8387 = vmatprep.mubr.msk.f32.mxu1 %vm9629_vm0, %v9630_v6  ;;  %v1301_v45 = vpop.permute.xlu0 %1300 }
 0x119   : > { %884 = vst.msk [vmem:[#allocation2 + $0x68] sm:$0xff] %vm391_vm3, %v863_v5  ;;  %1369 = vst.msk [vmem:[#allocation2 + $0x110] sm:$0xff] %vm391_vm3, %v1348_v41  ;;  %v676_v49 = vsub.f32 %v620_v7, %v10106_v61  ;;  %v1161_v12 = vsub.f32 %v1106_v8, %v10106_v61  ;;  %v1412_v13 = vld [vmem:[#allocation2 + $0x56] sm:$0xff] }
 0x11a   : > { %v1390_v14 = vld [vmem:[#allocation2 + $0x55] sm:$0xff]  ;;  %v717_v15 = vadd.f32 %v696_v10, %v10106_v61  ;;  %v1202_v16 = vadd.f32 %v1181_v11, %v10106_v61  ;;  %8323 = vmatmul.mubr.msk.f32.gmra.mrb[62].mxu0 %vm391_vm3, %v1412_v13  ;;  %v624_v17 = vpop.f32.mrb[26].mxu0  ;;  %v1110_v18 = vpop.f32.mrb[26].mxu1 }
 0x11b   : > { %8388 = vmatmul.mubr.msk.f32.gmra.mrb[62].mxu1 %vm391_vm3, %v1390_v14  ;;  %v697_v19 = vmax.f32 %v676_v49, 0.0  ;;  %v1182_v20 = vmax.f32 %v1161_v12, 0.0  ;;  %v625_v21 = vadd.f32 %v10102_v58, %v624_v17  ;;  %v1111_v22 = vadd.f32 %v10102_v58, %v1110_v18  ;;  %v8195_v23 = vpop.f32.mrb[27].mxu0  ;;  %8325 = vmatprep.mubr.msk.f32.mxu0 %vm9629_vm0, %v9630_v6  ;;  %v8268_v24 = vpop.f32.mrb[27].mxu1 }
 0x11c   : > { %8390 = vmatprep.mubr.msk.f32.mxu1 %vm9629_vm0, %v9630_v6  ;;  %v864_v40 = vmul.f32 %v10083_v50, %v717_v15  ;;  %v1349_v25 = vmul.f32 %v1291_v46, %v1202_v16  ;;  %v1413_v26 = vld [vmem:[#allocation2 + $0x5e] sm:$0xff]  ;;  %v1306_v10 = vpop.permute.xlu1 %1305 }
 0x11d   : > { %v1391_v27 = vld [vmem:[#allocation2 + $0x5d] sm:$0xff]  ;;  %v718_v29 = vadd.f32 %v697_v19, %v10106_v61  ;;  %v1203_v44 = vadd.f32 %v1182_v20, %v10106_v61  ;;  %v677_v30 = vsub.f32 %v625_v21, %v10106_v61  ;;  %v1162_v31 = vsub.f32 %v1111_v22, %v10106_v61 }
 0x11e   : > { %885 = vst.msk [vmem:[#allocation2 + $0x70] sm:$0xff] %vm391_vm3, %v864_v40  ;;  %1370 = vst.msk [vmem:[#allocation2 + $0x118] sm:$0xff] %vm391_vm3, %v1349_v25  ;;  %8326 = vmatmul.mubr.msk.f32.gmra.mrb[64].mxu0 %vm391_vm3, %v1413_v26  ;;  %v629_v50 = vpop.f32.mrb[28].mxu0  ;;  %v1115_v47 = vpop.f32.mrb[28].mxu1 }
 0x11f   : > { %8391 = vmatmul.mubr.msk.f32.gmra.mrb[64].mxu1 %vm391_vm3, %v1391_v27  ;;  %v865_v32 = vmul.f32 %v10085_v51, %v718_v29  ;;  %v1350_v33 = vmul.f32 %v1296_v28, %v1203_v44  ;;  %v698_v34 = vmax.f32 %v677_v30, 0.0  ;;  %v1183_v35 = vmax.f32 %v1162_v31, 0.0  ;;  %v8198_v36 = vpop.f32.mrb[29].mxu0  ;;  %8328 = vmatprep.mubr.msk.f32.mxu0 %vm9629_vm0, %v9630_v6  ;;  %v8271_v42 = vpop.f32.mrb[29].mxu1 }
 0x120   : > { %8393 = vmatprep.mubr.msk.f32.mxu1 %vm9629_vm0, %v9630_v6  ;;  %v630_v37 = vadd.f32 %v10102_v58, %v629_v50  ;;  %v1116_v38 = vadd.f32 %v10102_v58, %v1115_v47  ;;  %v1414_v39 = vld [vmem:[#allocation2 + $0x66] sm:$0xff]  ;;  %v1311_v25 = vpop.permute.xlu0 %1310 }
 0x121   : > { %v1392_v60 = vld [vmem:[#allocation2 + $0x65] sm:$0xff]  ;;  %886 = vst.msk [vmem:[#allocation2 + $0x78] sm:$0xff] %vm391_vm3, %v865_v32  ;;  %1371 = vst.msk [vmem:[#allocation2 + $0x120] sm:$0xff] %vm391_vm3, %v1350_v33  ;;  %v719_v51 = vadd.f32 %v698_v34, %v10106_v61  ;;  %v1204_v62 = vadd.f32 %v1183_v35, %v10106_v61 }
 0x122   : > { %v678_v48 = vsub.f32 %v630_v37, %v10106_v61  ;;  %v1163_v63 = vsub.f32 %v1116_v38, %v10106_v61  ;;  %8329 = vmatmul.mubr.msk.f32.gmra.mrb[66].mxu0 %vm391_vm3, %v1414_v39  ;;  %v634_v0 = vpop.f32.mrb[30].mxu0  ;;  %v1120_v1 = vpop.f32.mrb[30].mxu1 }
 0x123   : > { %8394 = vmatmul.mubr.msk.f32.gmra.mrb[66].mxu1 %vm391_vm3, %v1392_v60  ;;  %v866_v2 = vmul.f32 %v10087_v52, %v719_v51  ;;  %v1351_v4 = vmul.f32 %v1301_v45, %v1204_v62  ;;  %v635_v5 = vadd.f32 %v10102_v58, %v634_v0  ;;  %v1121_v41 = vadd.f32 %v10102_v58, %v1120_v1  ;;  %v8201_v7 = vpop.f32.mrb[31].mxu0  ;;  %v8274_v8 = vpop.f32.mrb[31].mxu1 }
 0x124   : > { %8331 = vmatprep.mubr.msk.f32.mxu0 %vm9629_vm0, %v9630_v6  ;;  %v699_v9 = vmax.f32 %v678_v48, 0.0  ;;  %v1184_v43 = vmax.f32 %v1163_v63, 0.0  ;;  %8396 = vmatprep.mubr.msk.f32.mxu1 %vm9629_vm0, %v9630_v6  ;;  %v1316_v37 = vpop.permute.xlu1 %1315 }
 0x125   : > { %887 = vst.msk [vmem:[#allocation2 + $0x80] sm:$0xff] %vm391_vm3, %v866_v2  ;;  %1372 = vst.msk [vmem:[#allocation2 + $0x128] sm:$0xff] %vm391_vm3, %v1351_v4  ;;  %v679_v52 = vsub.f32 %v635_v5, %v10106_v61  ;;  %v1164_v11 = vsub.f32 %v1121_v41, %v10106_v61  ;;  %v1415_v46 = vld [vmem:[#allocation2 + $0x6e] sm:$0xff]  ;;  %v1321_v41 = vpop.permute.xlu0 %1320 }
 0x126   : > { %v1393_v49 = vld [vmem:[#allocation2 + $0x6d] sm:$0xff]  ;;  %v720_v12 = vadd.f32 %v699_v9, %v10106_v61  ;;  %v1205_v13 = vadd.f32 %v1184_v43, %v10106_v61  ;;  %8332 = vmatmul.mubr.msk.f32.gmra.mrb[68].mxu0 %vm391_vm3, %v1415_v46  ;;  %v639_v14 = vpop.f32.mrb[32].mxu0  ;;  %v1125_v15 = vpop.f32.mrb[32].mxu1 }
 0x127   : > { %8397 = vmatmul.mubr.msk.f32.gmra.mrb[68].mxu1 %vm391_vm3, %v1393_v49  ;;  %v700_v16 = vmax.f32 %v679_v52, 0.0  ;;  %v1185_v17 = vmax.f32 %v1164_v11, 0.0  ;;  %v640_v18 = vadd.f32 %v10102_v58, %v639_v14  ;;  %v1126_v19 = vadd.f32 %v10102_v58, %v1125_v15  ;;  %v8204_v20 = vpop.f32.mrb[33].mxu0  ;;  %8334 = vmatprep.mubr.msk.f32.mxu0 %vm9629_vm0, %v9630_v6  ;;  %v8277_v21 = vpop.f32.mrb[33].mxu1 }
 0x128   : > { %8399 = vmatprep.mubr.msk.f32.mxu1 %vm9629_vm0, %v9630_v6  ;;  %v867_v22 = vmul.f32 %v10089_v53, %v720_v12  ;;  %v1352_v23 = vmul.f32 %v1306_v10, %v1205_v13  ;;  %v1416_v24 = vld [vmem:[#allocation2 + $0x76] sm:$0xff]  ;;  %v1326_v20 = vpop.permute.xlu1 %1325 }
 0x129   : > { %v1394_v40 = vld [vmem:[#allocation2 + $0x75] sm:$0xff]  ;;  %v721_v26 = vadd.f32 %v700_v16, %v10106_v61  ;;  %v1206_v27 = vadd.f32 %v1185_v17, %v10106_v61  ;;  %v680_v28 = vsub.f32 %v640_v18, %v10106_v61  ;;  %v1165_v29 = vsub.f32 %v1126_v19, %v10106_v61 }
 0x12a   : > { %888 = vst.msk [vmem:[#allocation2 + $0x88] sm:$0xff] %vm391_vm3, %v867_v22  ;;  %1373 = vst.msk [vmem:[#allocation2 + $0x130] sm:$0xff] %vm391_vm3, %v1352_v23  ;;  %8335 = vmatmul.mubr.msk.f32.gmra.mrb[70].mxu0 %vm391_vm3, %v1416_v24  ;;  %v644_v53 = vpop.f32.mrb[34].mxu0  ;;  %v1130_v44 = vpop.f32.mrb[34].mxu1 }
 0x12b   : > { %8400 = vmatmul.mubr.msk.f32.gmra.mrb[70].mxu1 %vm391_vm3, %v1394_v40  ;;  %v868_v30 = vmul.f32 %v10091_v54, %v721_v26  ;;  %v1353_v31 = vmul.f32 %v1311_v25, %v1206_v27  ;;  %v701_v50 = vmax.f32 %v680_v28, 0.0  ;;  %v1186_v47 = vmax.f32 %v1165_v29, 0.0  ;;  %v8207_v32 = vpop.f32.mrb[35].mxu0  ;;  %8337 = vmatprep.mubr.msk.f32.mxu0 %vm9629_vm0, %v9630_v6  ;;  %v8280_v33 = vpop.f32.mrb[35].mxu1 }
 0x12c   : > { %8402 = vmatprep.mubr.msk.f32.mxu1 %vm9629_vm0, %v9630_v6  ;;  %v645_v34 = vadd.f32 %v10102_v58, %v644_v53  ;;  %v1131_v35 = vadd.f32 %v10102_v58, %v1130_v44  ;;  %v1417_v36 = vld [vmem:[#allocation2 + $0x7e] sm:$0xff]  ;;  %v1331_v32 = vpop.permute.xlu0 %1330 }
 0x12d   : > { %v1395_v42 = vld [vmem:[#allocation2 + $0x7d] sm:$0xff]  ;;  %889 = vst.msk [vmem:[#allocation2 + $0x90] sm:$0xff] %vm391_vm3, %v868_v30  ;;  %1374 = vst.msk [vmem:[#allocation2 + $0x138] sm:$0xff] %vm391_vm3, %v1353_v31  ;;  %v722_v54 = vadd.f32 %v701_v50, %v10106_v61  ;;  %v1207_v38 = vadd.f32 %v1186_v47, %v10106_v61 }
 0x12e   : > { %v681_v39 = vsub.f32 %v645_v34, %v10106_v61  ;;  %v1166_v60 = vsub.f32 %v1131_v35, %v10106_v61  ;;  %8338 = vmatmul.mubr.msk.f32.gmra.mrb[72].mxu0 %vm391_vm3, %v1417_v36  ;;  %v649_v45 = vpop.f32.mrb[36].mxu0  ;;  %v1135_v51 = vpop.f32.mrb[36].mxu1 }
 0x12f   : > { %8403 = vmatmul.mubr.msk.f32.gmra.mrb[72].mxu1 %vm391_vm3, %v1395_v42  ;;  %v869_v62 = vmul.f32 %v10093_v55, %v722_v54  ;;  %v1354_v48 = vmul.f32 %v1316_v37, %v1207_v38  ;;  %v650_v63 = vadd.f32 %v10102_v58, %v649_v45  ;;  %v1136_v0 = vadd.f32 %v10102_v58, %v1135_v51  ;;  %v8210_v1 = vpop.f32.mrb[37].mxu0  ;;  %v8283_v2 = vpop.f32.mrb[37].mxu1 }
 0x130   : > { %8340 = vmatprep.mubr.msk.f32.mxu0 %vm9629_vm0, %v9630_v6  ;;  %v702_v4 = vmax.f32 %v681_v39, 0.0  ;;  %v1187_v5 = vmax.f32 %v1166_v60, 0.0  ;;  %8405 = vmatprep.mubr.msk.f32.mxu1 %vm9629_vm0, %v9630_v6  ;;  %v7319_v1 = vld [vmem:[%s12595_s5 + $0x28] sm:$0xff] }
 0x131   : > { %890 = vst.msk [vmem:[#allocation2 + $0x98] sm:$0xff] %vm391_vm3, %v869_v62  ;;  %1375 = vst.msk [vmem:[#allocation2 + $0x140] sm:$0xff] %vm391_vm3, %v1354_v48  ;;  %v682_v55 = vsub.f32 %v650_v63, %v10106_v61  ;;  %v1167_v7 = vsub.f32 %v1136_v0, %v10106_v61  ;;  %v1418_v8 = vld [vmem:[#allocation2 + $0x86] sm:$0xff]  ;;  %v2168_v0 = vld [vmem:[#allocation2 + $0x17] sm:$0xff] }
 0x132   : > { %v1396_v9 = vld [vmem:[#allocation2 + $0x85] sm:$0xff]  ;;  %v723_v43 = vadd.f32 %v702_v4, %v10106_v61  ;;  %v1208_v10 = vadd.f32 %v1187_v5, %v10106_v61  ;;  %8341 = vmatmul.mubr.msk.f32.gmra.mrb[74].mxu0 %vm391_vm3, %v1418_v8  ;;  %v654_v52 = vpop.f32.mrb[38].mxu0  ;;  %v1140_v11 = vpop.f32.mrb[38].mxu1 }
 0x133   : > { %8406 = vmatmul.mubr.msk.f32.gmra.mrb[74].mxu1 %vm391_vm3, %v1396_v9  ;;  %v703_v46 = vmax.f32 %v682_v55, 0.0  ;;  %v1188_v49 = vmax.f32 %v1167_v7, 0.0  ;;  %v655_v12 = vadd.f32 %v10102_v58, %v654_v52  ;;  %v1141_v13 = vadd.f32 %v10102_v58, %v1140_v11  ;;  %8343 = vmatprep.mubr.msk.f32.mxu0 %vm9629_vm0, %v9630_v6  ;;  %v8213_v14 = vpop.f32.mrb[39].mxu0  ;;  %v8286_v15 = vpop.f32.mrb[39].mxu1  ;;  %v1891_v48 = vld [vmem:[#allocation2 + $0x7] sm:$0xff]  ;;  %v1892_v55 = vld [vmem:[#allocation2 + $0xf] sm:$0xff] }
 0x134   : > { %8408 = vmatprep.mubr.msk.f32.mxu1 %vm9629_vm0, %v9630_v6  ;;  %v870_v16 = vmul.f32 %v10095_v56, %v723_v43  ;;  %v1355_v17 = vmul.f32 %v1321_v41, %v1208_v10  ;;  %v1419_v18 = vld [vmem:[#allocation2 + $0x8e] sm:$0xff]  ;;  %v2169_v8 = vld [vmem:[#allocation2 + $0x1f] sm:$0xff]  ;;  %v2176_v15 = vld [vmem:[#allocation2 + $0x57] sm:$0xff] }
 0x135   : > { %v1397_v19 = vld [vmem:[#allocation2 + $0x8d] sm:$0xff]  ;;  %v724_v21 = vadd.f32 %v703_v46, %v10106_v61  ;;  %v1209_v22 = vadd.f32 %v1188_v49, %v10106_v61  ;;  %v683_v23 = vsub.f32 %v655_v12, %v10106_v61  ;;  %v1168_v24 = vsub.f32 %v1141_v13, %v10106_v61  ;;  %v2172_v49 = vld [vmem:[#allocation2 + $0x37] sm:$0xff]  ;;  %v2173_v12 = vld [vmem:[#allocation2 + $0x3f] sm:$0xff] }
 0x136   : > { %891 = vst.msk [vmem:[#allocation2 + $0xa0] sm:$0xff] %vm391_vm3, %v870_v16  ;;  %1376 = vst.msk [vmem:[#allocation2 + $0x148] sm:$0xff] %vm391_vm3, %v1355_v17  ;;  %8344 = vmatmul.mubr.msk.f32.gmra.mrb[76].mxu0 %vm391_vm3, %v1419_v18  ;;  %v659_v56 = vpop.f32.mrb[40].mxu0  ;;  %v1145_v40 = vpop.f32.mrb[40].mxu1  ;;  %v2170_v11 = vld [vmem:[#allocation2 + $0x27] sm:$0xff]  ;;  %v2171_v46 = vld [vmem:[#allocation2 + $0x2f] sm:$0xff] }
 0x137   : > { %8409 = vmatmul.mubr.msk.f32.gmra.mrb[76].mxu1 %vm391_vm3, %v1397_v19  ;;  %v871_v25 = vmul.f32 %v10097_v57, %v724_v21  ;;  %v1356_v26 = vmul.f32 %v1326_v20, %v1209_v22  ;;  %v704_v27 = vmax.f32 %v683_v23, 0.0  ;;  %v1189_v28 = vmax.f32 %v1168_v24, 0.0  ;;  %8346 = vmatprep.mubr.msk.f32.mxu0 %vm9629_vm0, %v9630_v6  ;;  %v8216_v29 = vpop.f32.mrb[41].mxu0  ;;  %v8289_v53 = vpop.f32.mrb[41].mxu1  ;;  %v2174_v13 = vld [vmem:[#allocation2 + $0x47] sm:$0xff]  ;;  %v2175_v14 = vld [vmem:[#allocation2 + $0x4f] sm:$0xff] }
 0x138   : > { %8411 = vmatprep.mubr.msk.f32.mxu1 %vm9629_vm0, %v9630_v6  ;;  %v660_v44 = vadd.f32 %v10102_v58, %v659_v56  ;;  %v1146_v30 = vadd.f32 %v10102_v58, %v1145_v40  ;;  %v1420_v31 = vld [vmem:[#allocation2 + $0x96] sm:$0xff]  ;;  %v2177_v16 = vld [vmem:[#allocation2 + $0x5f] sm:$0xff]  ;;  %v2178_v17 = vld [vmem:[#allocation2 + $0x67] sm:$0xff] }
 0x139   : > { %v1398_v50 = vld [vmem:[#allocation2 + $0x95] sm:$0xff]  ;;  %892 = vst.msk [vmem:[#allocation2 + $0xa8] sm:$0xff] %vm391_vm3, %v871_v25  ;;  %1377 = vst.msk [vmem:[#allocation2 + $0x150] sm:$0xff] %vm391_vm3, %v1356_v26  ;;  %v725_v57 = vadd.f32 %v704_v27, %v10106_v61  ;;  %v1210_v47 = vadd.f32 %v1189_v28, %v10106_v61  ;;  %v2181_v20 = vld [vmem:[#allocation2 + $0x7f] sm:$0xff] }
 0x13a   : > { %v684_v33 = vsub.f32 %v660_v44, %v10106_v61  ;;  %v1169_v34 = vsub.f32 %v1146_v30, %v10106_v61  ;;  %8347 = vmatmul.mubr.msk.f32.gmra.mrb[78].mxu0 %vm391_vm3, %v1420_v31  ;;  %v1554_v63 = vpop.f32.mrb[42].mxu0  ;;  %v1787_v4 = vpop.f32.mrb[42].mxu1  ;;  %v2179_v18 = vld [vmem:[#allocation2 + $0x6f] sm:$0xff]  ;;  %v2180_v19 = vld [vmem:[#allocation2 + $0x77] sm:$0xff]  ;;  %v2182_v21 = vld [vmem:[#allocation2 + $0x87] sm:$0xff] }
 0x13b   : > { %8412 = vmatmul.mubr.msk.f32.gmra.mrb[78].mxu1 %vm391_vm3, %v1398_v50  ;;  %v872_v58 = vmul.f32 %v10104_v59, %v725_v57  ;;  %v1357_v35 = vmul.f32 %v1331_v32, %v1210_v47  ;;  %8349 = vmatprep.mubr.msk.f32.mxu0 %vm9629_vm0, %v9630_v6  ;;  %v1336_v59 = vpop.permute.xlu1 %1335  ;;  %v8294_v2 = vpop.f32.mrb[43].mxu0  ;;  %v10419_v5 = vadd.f32 %v1787_v4, %v1554_v63  ;;  %v2183_v22 = vld [vmem:[#allocation2 + $0x8f] sm:$0xff]  ;;  %v2184_v23 = vld [vmem:[#allocation2 + $0x97] sm:$0xff]  ;;  %v2446_v53 = vld [vmem:[#allocation2 + $0x20] sm:$0xff] }
 0x13c   : > { %8414 = vmatprep.mubr.msk.f32.mxu1 %vm9629_vm0, %v9630_v6  ;;  %v705_v36 = vmax.f32 %v684_v33, 0.0  ;;  %v1190_v42 = vmax.f32 %v1169_v34, 0.0  ;;  %v8359_v41 = vpop.f32.mrb[43].mxu1  ;;  %v7341_v26 = vld [vmem:[%s12595_s5 + $0x30] sm:$0xff]  ;;  %v2445_v27 = vld [vmem:[#allocation2 + $0x18] sm:$0xff]  ;;  %v2723_v44 = vld [vmem:[#allocation2 + $0x21] sm:$0xff] }
 0x13d   : > { %893 = vst.msk [vmem:[#allocation2 + $0xb0] sm:$0xff] %vm391_vm3, %v872_v58  ;;  %1378 = vst.msk [vmem:[#allocation2 + $0x158] sm:$0xff] %vm391_vm3, %v1357_v35  ;;  %v1421_v37 = vld [vmem:[#allocation2 + $0x9e] sm:$0xff]  ;;  %v2447_v30 = vld [vmem:[#allocation2 + $0x28] sm:$0xff] }
 0x13e   : > { %v1399_v54 = vld [vmem:[#allocation2 + $0x9d] sm:$0xff]  ;;  %v726_v38 = vadd.f32 %v705_v36, %v10106_v61  ;;  %v1211_v39 = vadd.f32 %v1190_v42, %v10106_v61  ;;  %8350 = vmatmul.mubr.msk.f32.gmra.mrb[80].mxu0 %vm391_vm3, %v1421_v37  ;;  %v1559_v7 = vpop.f32.mrb[44].mxu0  ;;  %v1792_v43 = vpop.f32.mrb[44].mxu1  ;;  %v10569_v31 = vld [vmem:[#allocation2 + $0x29] sm:$0xff]  ;;  %v10578_v57 = vld [vmem:[#allocation2 + $0x31] sm:$0xff] }
 0x13f   : > { %8415 = vmatmul.mubr.msk.f32.gmra.mrb[80].mxu1 %vm391_vm3, %v1399_v54  ;;  %8352 = vmatprep.mubr.msk.f32.mxu0 %vm9629_vm0, %v9630_v6  ;;  %v8297_v9 = vpop.f32.mrb[45].mxu0  ;;  %v10429_v10 = vadd.f32 %v1792_v43, %v1559_v7  ;;  %v8362_v52 = vpop.f32.mrb[45].mxu1  ;;  %v2185_v24 = vld [vmem:[#allocation2 + $0x9f] sm:$0xff]  ;;  %v2448_v50 = vld [vmem:[#allocation2 + $0x30] sm:$0xff]  ;;  %v2451_v58 = vld [vmem:[#allocation2 + $0x48] sm:$0xff] }
 0x140   : > { %8417 = vmatprep.mubr.msk.f32.mxu1 %vm9629_vm0, %v9630_v6  ;;  %v873_v60 = vmul.f32 %v10110_v3, %v726_v38  ;;  %v1358_v45 = vmul.f32 %v1336_v59, %v1211_v39  ;;  %v1422_v51 = vld [vmem:[#allocation2 + $0xa6] sm:$0xff]  ;;  %v2722_v28 = vld [vmem:[#allocation2 + $0x19] sm:$0xff]  ;;  %v2452_v36 = vld [vmem:[#allocation2 + $0x50] sm:$0xff] }
 0x141   : > { %v1400_v62 = vld [vmem:[#allocation2 + $0xa5] sm:$0xff]  ;;  %v7363_v29 = vld [vmem:[%s12595_s5 + $0x38] sm:$0xff] }
 0x142   : > { %894 = vst.msk [vmem:[#allocation2 + $0xb8] sm:$0xff] %vm391_vm3, %v873_v60  ;;  %1379 = vst.msk [vmem:[#allocation2 + $0x160] sm:$0xff] %vm391_vm3, %v1358_v45  ;;  %8353 = vmatmul.mubr.msk.f32.gmra.mrb[82].mxu0 %vm391_vm3, %v1422_v51  ;;  %v7297_v3 = vld [vmem:[%s12595_s5 + $0x20] sm:$0xff]  ;;  %v2449_v47 = vld [vmem:[#allocation2 + $0x38] sm:$0xff] }
 0x143   : > { %8418 = vmatmul.mubr.msk.f32.gmra.mrb[82].mxu1 %vm391_vm3, %v1400_v62  ;;  %8422 = vmatprep.mubr.msk.f32.mxu0 %vm9629_vm0, %v9630_v6  ;;  %v2186_v56 = vld [vmem:[#allocation2 + $0xa7] sm:$0xff]  ;;  %v10587_v32 = vld [vmem:[#allocation2 + $0x39] sm:$0xff]  ;;  %v10614_v42 = vld [vmem:[#allocation2 + $0x51] sm:$0xff] }
 0x144   : > { %8487 = vmatprep.mubr.msk.f32.mxu1 %vm9629_vm0, %v9630_v6  ;;  %v2187_v40 = vld [vmem:[#allocation2 + $0xaf] sm:$0xff]  ;;  %v2450_v33 = vld [vmem:[#allocation2 + $0x40] sm:$0xff]  ;;  %v2453_v37 = vld [vmem:[#allocation2 + $0x58] sm:$0xff] }
 0x145   : > { %v10596_v34 = vld [vmem:[#allocation2 + $0x41] sm:$0xff]  ;;  %v10605_v35 = vld [vmem:[#allocation2 + $0x49] sm:$0xff]  ;;  %v10623_v54 = vld [vmem:[#allocation2 + $0x59] sm:$0xff] }
 0x146   : > { %8423 = vmatmul.mubr.msk.f32.vlgmr.msra.gmra.mrb[84].mxu0 %vm391_vm3, %v1891_v48  ;;  %v2454_v38 = vld [vmem:[#allocation2 + $0x60] sm:$0xff]  ;;  %v2455_v59 = vld [vmem:[#allocation2 + $0x68] sm:$0xff]  ;;  %v2456_v45 = vld [vmem:[#allocation2 + $0x70] sm:$0xff] }
 0x147   : > { %8488 = vmatmul.mubr.msk.f32.vlgmr.msra.gmra.mrb[84].mxu1 %vm391_vm3, %v2168_v0  ;;  %8551 = vmatpush3.msra.mxu0 %v7297_v3  ;;  %v10632_v39 = vld [vmem:[#allocation2 + $0x61] sm:$0xff]  ;;  %v10641_v60 = vld [vmem:[#allocation2 + $0x69] sm:$0xff]  ;;  %v10650_v51 = vld [vmem:[#allocation2 + $0x71] sm:$0xff] }
 0x148   : > { %8425 = vmatprep.mubr.msk.f32.mxu0 %vm9629_vm0, %v9630_v6  ;;  %8490 = vmatprep.mubr.msk.f32.mxu1 %vm9629_vm0, %v9630_v6  ;;  %v2457_v62 = vld [vmem:[#allocation2 + $0x78] sm:$0xff]  ;;  %v10668_v2 = vld [vmem:[#allocation2 + $0x81] sm:$0xff]  ;;  %v10679_v43 = vld [vmem:[#allocation2 + $0x89] sm:$0xff] }
 0x149   : > { %8616 = vmatpush3.msra.mxu1 %v7319_v1  ;;  %8680 = vmatprep.subr.mxu0 %v9630_v6  ;;  %v2188_v25 = vld [vmem:[#allocation2 + $0xb7] sm:$0xff]  ;;  %v2458_v1 = vld [vmem:[#allocation2 + $0x80] sm:$0xff]  ;;  %v2459_v9 = vld [vmem:[#allocation2 + $0x88] sm:$0xff] }
 0x14a   : > { %8745 = vmatprep.subr.mxu1 %v9630_v6  ;;  %8426 = vmatmul.mubr.msk.f32.gmra.mrb[86].mxu0 %vm391_vm3, %v1892_v55  ;;  %v10659_v48 = vld [vmem:[#allocation2 + $0x79] sm:$0xff] }
 0x14b   : > { %8491 = vmatmul.mubr.msk.f32.gmra.mrb[86].mxu1 %vm391_vm3, %v2169_v8  ;;  %8428 = vmatprep.mubr.msk.f32.mxu0 %vm9629_vm0, %v9630_v6 }
 0x14c   : > { %8493 = vmatprep.mubr.msk.f32.mxu1 %vm9629_vm0, %v9630_v6 }
 0x14e   : > { %8429 = vmatmul.mubr.msk.f32.gmra.mrb[88].mxu0 %vm391_vm3, %v2168_v0 }
 0x14f   : > { %8494 = vmatmul.mubr.msk.f32.gmra.mrb[88].mxu1 %vm391_vm3, %v2170_v11  ;;  %8431 = vmatprep.mubr.msk.f32.mxu0 %vm9629_vm0, %v9630_v6 }
 0x150   : > { %8496 = vmatprep.mubr.msk.f32.mxu1 %vm9629_vm0, %v9630_v6 }
 0x152   : > { %8432 = vmatmul.mubr.msk.f32.gmra.mrb[90].mxu0 %vm391_vm3, %v2169_v8 }
 0x153   : > { %8497 = vmatmul.mubr.msk.f32.gmra.mrb[90].mxu1 %vm391_vm3, %v2171_v46  ;;  %8434 = vmatprep.mubr.msk.f32.mxu0 %vm9629_vm0, %v9630_v6 }
 0x154   : > { %8499 = vmatprep.mubr.msk.f32.mxu1 %vm9629_vm0, %v9630_v6 }
 0x156   : > { %8435 = vmatmul.mubr.msk.f32.gmra.mrb[92].mxu0 %vm391_vm3, %v2170_v11 }
 0x157   : > { %8500 = vmatmul.mubr.msk.f32.gmra.mrb[92].mxu1 %vm391_vm3, %v2172_v49  ;;  %8437 = vmatprep.mubr.msk.f32.mxu0 %vm9629_vm0, %v9630_v6 }
 0x158   : > { %8502 = vmatprep.mubr.msk.f32.mxu1 %vm9629_vm0, %v9630_v6 }
 0x15a   : > { %8438 = vmatmul.mubr.msk.f32.gmra.mrb[94].mxu0 %vm391_vm3, %v2171_v46 }
 0x15b   : > { %8503 = vmatmul.mubr.msk.f32.gmra.mrb[94].mxu1 %vm391_vm3, %v2173_v12  ;;  %8440 = vmatprep.mubr.msk.f32.mxu0 %vm9629_vm0, %v9630_v6 }
 0x15c   : > { %8505 = vmatprep.mubr.msk.f32.mxu1 %vm9629_vm0, %v9630_v6 }
 0x15e   : > { %8441 = vmatmul.mubr.msk.f32.gmra.mrb[96].mxu0 %vm391_vm3, %v2172_v49 }
 0x15f   : > { %8506 = vmatmul.mubr.msk.f32.gmra.mrb[96].mxu1 %vm391_vm3, %v2174_v13  ;;  %8443 = vmatprep.mubr.msk.f32.mxu0 %vm9629_vm0, %v9630_v6 }
 0x160   : > { %8508 = vmatprep.mubr.msk.f32.mxu1 %vm9629_vm0, %v9630_v6 }
 0x162   : > { %8444 = vmatmul.mubr.msk.f32.gmra.mrb[98].mxu0 %vm391_vm3, %v2173_v12  ;;  %v2460_v12 = vld [vmem:[#allocation2 + $0x90] sm:$0xff] }
 0x163   : > { %8509 = vmatmul.mubr.msk.f32.gmra.mrb[98].mxu1 %vm391_vm3, %v2175_v14  ;;  %8446 = vmatprep.mubr.msk.f32.mxu0 %vm9629_vm0, %v9630_v6 }
 0x164   : > { %8511 = vmatprep.mubr.msk.f32.mxu1 %vm9629_vm0, %v9630_v6 }
 0x166   : > { %8447 = vmatmul.mubr.msk.f32.gmra.mrb[100].mxu0 %vm391_vm3, %v2174_v13  ;;  %v10690_v13 = vld [vmem:[#allocation2 + $0x91] sm:$0xff] }
 0x167   : > { %8512 = vmatmul.mubr.msk.f32.gmra.mrb[100].mxu1 %vm391_vm3, %v2176_v15  ;;  %8449 = vmatprep.mubr.msk.f32.mxu0 %vm9629_vm0, %v9630_v6 }
 0x168   : > { %8514 = vmatprep.mubr.msk.f32.mxu1 %vm9629_vm0, %v9630_v6 }
 0x16a   : > { %8450 = vmatmul.mubr.msk.f32.gmra.mrb[102].mxu0 %vm391_vm3, %v2175_v14 }
 0x16b   : > { %8515 = vmatmul.mubr.msk.f32.gmra.mrb[102].mxu1 %vm391_vm3, %v2177_v16  ;;  %8452 = vmatprep.mubr.msk.f32.mxu0 %vm9629_vm0, %v9630_v6 }
 0x16c   : > { %8517 = vmatprep.mubr.msk.f32.mxu1 %vm9629_vm0, %v9630_v6 }
 0x16e   : > { %8453 = vmatmul.mubr.msk.f32.gmra.mrb[104].mxu0 %vm391_vm3, %v2176_v15 }
 0x16f   : > { %8518 = vmatmul.mubr.msk.f32.gmra.mrb[104].mxu1 %vm391_vm3, %v2178_v17  ;;  %8455 = vmatprep.mubr.msk.f32.mxu0 %vm9629_vm0, %v9630_v6 }
 0x170   : > { %8520 = vmatprep.mubr.msk.f32.mxu1 %vm9629_vm0, %v9630_v6 }
 0x172   : > { %8456 = vmatmul.mubr.msk.f32.gmra.mrb[106].mxu0 %vm391_vm3, %v2177_v16 }
 0x173   : > { %8521 = vmatmul.mubr.msk.f32.gmra.mrb[106].mxu1 %vm391_vm3, %v2179_v18  ;;  %8458 = vmatprep.mubr.msk.f32.mxu0 %vm9629_vm0, %v9630_v6 }
 0x174   : > { %8523 = vmatprep.mubr.msk.f32.mxu1 %vm9629_vm0, %v9630_v6 }
 0x176   : > { %8459 = vmatmul.mubr.msk.f32.gmra.mrb[108].mxu0 %vm391_vm3, %v2178_v17 }
 0x177   : > { %8524 = vmatmul.mubr.msk.f32.gmra.mrb[108].mxu1 %vm391_vm3, %v2180_v19  ;;  %8461 = vmatprep.mubr.msk.f32.mxu0 %vm9629_vm0, %v9630_v6 }
 0x178   : > { %8526 = vmatprep.mubr.msk.f32.mxu1 %vm9629_vm0, %v9630_v6 }
 0x17a   : > { %8462 = vmatmul.mubr.msk.f32.gmra.mrb[110].mxu0 %vm391_vm3, %v2179_v18 }
 0x17b   : > { %8527 = vmatmul.mubr.msk.f32.gmra.mrb[110].mxu1 %vm391_vm3, %v2181_v20  ;;  %8464 = vmatprep.mubr.msk.f32.mxu0 %vm9629_vm0, %v9630_v6 }
 0x17c   : > { %8529 = vmatprep.mubr.msk.f32.mxu1 %vm9629_vm0, %v9630_v6 }
 0x17e   : > { %8465 = vmatmul.mubr.msk.f32.gmra.mrb[112].mxu0 %vm391_vm3, %v2180_v19  ;;  %v2461_v19 = vld [vmem:[#allocation2 + $0x98] sm:$0xff] }
 0x17f   : > { %8530 = vmatmul.mubr.msk.f32.gmra.mrb[112].mxu1 %vm391_vm3, %v2182_v21  ;;  %8467 = vmatprep.mubr.msk.f32.mxu0 %vm9629_vm0, %v9630_v6 }
 0x180   : > { %8532 = vmatprep.mubr.msk.f32.mxu1 %vm9629_vm0, %v9630_v6 }
 0x182   : > { %8468 = vmatmul.mubr.msk.f32.gmra.mrb[114].mxu0 %vm391_vm3, %v2181_v20  ;;  %v10701_v20 = vld [vmem:[#allocation2 + $0x99] sm:$0xff] }
 0x183   : > { %8533 = vmatmul.mubr.msk.f32.gmra.mrb[114].mxu1 %vm391_vm3, %v2183_v22  ;;  %8470 = vmatprep.mubr.msk.f32.mxu0 %vm9629_vm0, %v9630_v6 }
 0x184   : > { %8535 = vmatprep.mubr.msk.f32.mxu1 %vm9629_vm0, %v9630_v6 }
 0x186   : > { %8471 = vmatmul.mubr.msk.f32.gmra.mrb[116].mxu0 %vm391_vm3, %v2182_v21 }
 0x187   : > { %8536 = vmatmul.mubr.msk.f32.gmra.mrb[116].mxu1 %vm391_vm3, %v2184_v23  ;;  %8473 = vmatprep.mubr.msk.f32.mxu0 %vm9629_vm0, %v9630_v6 }
 0x188   : > { %8538 = vmatprep.mubr.msk.f32.mxu1 %vm9629_vm0, %v9630_v6 }
 0x18a   : > { %8474 = vmatmul.mubr.msk.f32.gmra.mrb[118].mxu0 %vm391_vm3, %v2183_v22 }
 0x18b   : > { %8539 = vmatmul.mubr.msk.f32.gmra.mrb[118].mxu1 %vm391_vm3, %v2185_v24  ;;  %8476 = vmatprep.mubr.msk.f32.mxu0 %vm9629_vm0, %v9630_v6 }
 0x18c   : > { %8541 = vmatprep.mubr.msk.f32.mxu1 %vm9629_vm0, %v9630_v6 }
 0x18e   : > { %8477 = vmatmul.mubr.msk.f32.gmra.mrb[120].mxu0 %vm391_vm3, %v2184_v23 }
 0x18f   : > { %8542 = vmatmul.mubr.msk.f32.gmra.mrb[120].mxu1 %vm391_vm3, %v2186_v56  ;;  %8479 = vmatprep.mubr.msk.f32.mxu0 %vm9629_vm0, %v9630_v6 }
 0x190   : > { %8544 = vmatprep.mubr.msk.f32.mxu1 %vm9629_vm0, %v9630_v6 }
 0x192   : > { %8480 = vmatmul.mubr.msk.f32.gmra.mrb[122].mxu0 %vm391_vm3, %v2185_v24 }
 0x193   : > { %8545 = vmatmul.mubr.msk.f32.gmra.mrb[122].mxu1 %vm391_vm3, %v2187_v40  ;;  %8482 = vmatprep.mubr.msk.f32.mxu0 %vm9629_vm0, %v9630_v6  ;;  %v2462_v40 = vld [vmem:[#allocation2 + $0xa0] sm:$0xff] }
 0x194   : > { %8547 = vmatprep.mubr.msk.f32.mxu1 %vm9629_vm0, %v9630_v6 }
 0x196   : > { %8483 = vmatmul.mubr.msk.f32.gmra.mrb[124].mxu0 %vm391_vm3, %v2186_v56 }
 0x197   : > { %8548 = vmatmul.mubr.msk.f32.gmra.mrb[124].mxu1 %vm391_vm3, %v2188_v25  ;;  %8552 = vmatprep.mubr.msk.f32.mxu0 %vm9629_vm0, %v9630_v6  ;;  %v10712_v25 = vld [vmem:[#allocation2 + $0xa1] sm:$0xff] }
 0x198   : > { %8617 = vmatprep.mubr.msk.f32.mxu1 %vm9629_vm0, %v9630_v6 }
 0x19a   : > { %8553 = vmatmul.mubr.msk.f32.vlgmr.msra.gmra.mrb[126].mxu0 %vm391_vm3, %v2445_v27 }
 0x19b   : > { %8618 = vmatmul.mubr.msk.f32.vlgmr.msra.gmra.mrb[126].mxu1 %vm391_vm3, %v2722_v28  ;;  %8681 = vmatpush3.msra.mxu0 %v7341_v26 }
 0x19c   : > { %8555 = vmatprep.mubr.msk.f32.mxu0 %vm9629_vm0, %v9630_v6  ;;  %8620 = vmatprep.mubr.msk.f32.mxu1 %vm9629_vm0, %v9630_v6 }
 0x19d   : > { %8746 = vmatpush3.msra.mxu1 %v7363_v29  ;;  %8810 = vmatprep.subr.mxu0 %v9630_v6 }
 0x19e   : > { %8875 = vmatprep.subr.mxu1 %v9630_v6  ;;  %8556 = vmatmul.mubr.msk.f32.gmra.mrb[128].mxu0 %vm391_vm3, %v2446_v53 }
 0x19f   : > { %8621 = vmatmul.mubr.msk.f32.gmra.mrb[128].mxu1 %vm391_vm3, %v2723_v44  ;;  %8558 = vmatprep.mubr.msk.f32.mxu0 %vm9629_vm0, %v9630_v6  ;;  %v2463_v44 = vld [vmem:[#allocation2 + $0xa8] sm:$0xff] }
 0x1a0   : > { %8623 = vmatprep.mubr.msk.f32.mxu1 %vm9629_vm0, %v9630_v6 }
 0x1a2   : > { %8559 = vmatmul.mubr.msk.f32.gmra.mrb[130].mxu0 %vm391_vm3, %v2447_v30  ;;  %v10723_v30 = vld [vmem:[#allocation2 + $0xa9] sm:$0xff] }
 0x1a3   : > { %8624 = vmatmul.mubr.msk.f32.gmra.mrb[130].mxu1 %vm391_vm3, %v10569_v31  ;;  %8561 = vmatprep.mubr.msk.f32.mxu0 %vm9629_vm0, %v9630_v6 }
 0x1a4   : > { %8626 = vmatprep.mubr.msk.f32.mxu1 %vm9629_vm0, %v9630_v6 }
 0x1a6   : > { %8562 = vmatmul.mubr.msk.f32.gmra.mrb[132].mxu0 %vm391_vm3, %v2448_v50 }
 0x1a7   : > { %8627 = vmatmul.mubr.msk.f32.gmra.mrb[132].mxu1 %vm391_vm3, %v10578_v57  ;;  %8564 = vmatprep.mubr.msk.f32.mxu0 %vm9629_vm0, %v9630_v6 }
 0x1a8   : > { %8629 = vmatprep.mubr.msk.f32.mxu1 %vm9629_vm0, %v9630_v6 }
 0x1aa   : > { %8565 = vmatmul.mubr.msk.f32.gmra.mrb[134].mxu0 %vm391_vm3, %v2449_v47 }
 0x1ab   : > { %8630 = vmatmul.mubr.msk.f32.gmra.mrb[134].mxu1 %vm391_vm3, %v10587_v32  ;;  %8567 = vmatprep.mubr.msk.f32.mxu0 %vm9629_vm0, %v9630_v6 }
 0x1ac   : > { %8632 = vmatprep.mubr.msk.f32.mxu1 %vm9629_vm0, %v9630_v6 }
 0x1ae   : > { %8568 = vmatmul.mubr.msk.f32.gmra.mrb[136].mxu0 %vm391_vm3, %v2450_v33 }
 0x1af   : > { %8633 = vmatmul.mubr.msk.f32.gmra.mrb[136].mxu1 %vm391_vm3, %v10596_v34  ;;  %8570 = vmatprep.mubr.msk.f32.mxu0 %vm9629_vm0, %v9630_v6 }
 0x1b0   : > { %8635 = vmatprep.mubr.msk.f32.mxu1 %vm9629_vm0, %v9630_v6 }
 0x1b2   : > { %8571 = vmatmul.mubr.msk.f32.gmra.mrb[138].mxu0 %vm391_vm3, %v2451_v58 }
 0x1b3   : > { %8636 = vmatmul.mubr.msk.f32.gmra.mrb[138].mxu1 %vm391_vm3, %v10605_v35  ;;  %8573 = vmatprep.mubr.msk.f32.mxu0 %vm9629_vm0, %v9630_v6 }
 0x1b4   : > { %8638 = vmatprep.mubr.msk.f32.mxu1 %vm9629_vm0, %v9630_v6 }
 0x1b6   : > { %8574 = vmatmul.mubr.msk.f32.gmra.mrb[140].mxu0 %vm391_vm3, %v2452_v36 }
 0x1b7   : > { %8639 = vmatmul.mubr.msk.f32.gmra.mrb[140].mxu1 %vm391_vm3, %v10614_v42  ;;  %8576 = vmatprep.mubr.msk.f32.mxu0 %vm9629_vm0, %v9630_v6 }
 0x1b8   : > { %8641 = vmatprep.mubr.msk.f32.mxu1 %vm9629_vm0, %v9630_v6 }
 0x1ba   : > { %8577 = vmatmul.mubr.msk.f32.gmra.mrb[142].mxu0 %vm391_vm3, %v2453_v37  ;;  %v2464_v37 = vld [vmem:[#allocation2 + $0xb0] sm:$0xff] }
 0x1bb   : > { %8642 = vmatmul.mubr.msk.f32.gmra.mrb[142].mxu1 %vm391_vm3, %v10623_v54  ;;  %8579 = vmatprep.mubr.msk.f32.mxu0 %vm9629_vm0, %v9630_v6 }
 0x1bc   : > { %8644 = vmatprep.mubr.msk.f32.mxu1 %vm9629_vm0, %v9630_v6 }
 0x1be   : > { %8580 = vmatmul.mubr.msk.f32.gmra.mrb[144].mxu0 %vm391_vm3, %v2454_v38  ;;  %v10734_v38 = vld [vmem:[#allocation2 + $0xb1] sm:$0xff] }
 0x1bf   : > { %8645 = vmatmul.mubr.msk.f32.gmra.mrb[144].mxu1 %vm391_vm3, %v10632_v39  ;;  %8582 = vmatprep.mubr.msk.f32.mxu0 %vm9629_vm0, %v9630_v6 }
 0x1c0   : > { %8647 = vmatprep.mubr.msk.f32.mxu1 %vm9629_vm0, %v9630_v6 }
 0x1c2   : > { %8583 = vmatmul.mubr.msk.f32.gmra.mrb[146].mxu0 %vm391_vm3, %v2455_v59 }
 0x1c3   : > { %8648 = vmatmul.mubr.msk.f32.gmra.mrb[146].mxu1 %vm391_vm3, %v10641_v60  ;;  %8585 = vmatprep.mubr.msk.f32.mxu0 %vm9629_vm0, %v9630_v6 }
 0x1c4   : > { %8650 = vmatprep.mubr.msk.f32.mxu1 %vm9629_vm0, %v9630_v6 }
 0x1c6   : > { %8586 = vmatmul.mubr.msk.f32.gmra.mrb[148].mxu0 %vm391_vm3, %v2456_v45 }
 0x1c7   : > { %8651 = vmatmul.mubr.msk.f32.gmra.mrb[148].mxu1 %vm391_vm3, %v10650_v51  ;;  %8588 = vmatprep.mubr.msk.f32.mxu0 %vm9629_vm0, %v9630_v6 }
 0x1c8   : > { %8653 = vmatprep.mubr.msk.f32.mxu1 %vm9629_vm0, %v9630_v6 }
 0x1ca   : > { %8589 = vmatmul.mubr.msk.f32.gmra.mrb[150].mxu0 %vm391_vm3, %v2457_v62 }
 0x1cb   : > { %8654 = vmatmul.mubr.msk.f32.gmra.mrb[150].mxu1 %vm391_vm3, %v10659_v48  ;;  %8591 = vmatprep.mubr.msk.f32.mxu0 %vm9629_vm0, %v9630_v6 }
 0x1cc   : > { %8656 = vmatprep.mubr.msk.f32.mxu1 %vm9629_vm0, %v9630_v6  ;;  %v1564_v3 = vpop.f32.mrb[46].mxu0 }
 0x1cd   : > { %v1797_v63 = vpop.f32.mrb[46].mxu1  ;;  %v8300_v0 = vpop.f32.mrb[47].mxu0 }
 0x1ce   : > { %v10670_v4 = vadd.f32 %v1797_v63, %v1564_v3  ;;  %v8365_v41 = vpop.f32.mrb[47].mxu1  ;;  %8592 = vmatmul.mubr.msk.f32.gmra.mrb[152].mxu0 %vm391_vm3, %v2458_v1  ;;  %v2465_v0 = vld [vmem:[#allocation2 + $0xb8] sm:$0xff] }
 0x1cf   : > { %8657 = vmatmul.mubr.msk.f32.gmra.mrb[152].mxu1 %vm391_vm3, %v10668_v2  ;;  %8594 = vmatprep.mubr.msk.f32.mxu0 %vm9629_vm0, %v9630_v6  ;;  %v10745_v1 = vld [vmem:[#allocation2 + $0xb9] sm:$0xff] }
 0x1d0   : > { %8659 = vmatprep.mubr.msk.f32.mxu1 %vm9629_vm0, %v9630_v6  ;;  %v1569_v55 = vpop.f32.mrb[48].mxu0 }
 0x1d1   : > { %v1802_v7 = vpop.f32.mrb[48].mxu1  ;;  %v8303_v8 = vpop.f32.mrb[49].mxu0 }
 0x1d2   : > { %v10681_v52 = vadd.f32 %v1802_v7, %v1569_v55  ;;  %v8368_v11 = vpop.f32.mrb[49].mxu1  ;;  %8595 = vmatmul.mubr.msk.f32.gmra.mrb[154].mxu0 %vm391_vm3, %v2459_v9  ;;  %v7385_v8 = vld [vmem:[%s12595_s5 + $0x40] sm:$0xff] }
 0x1d3   : > { %8660 = vmatmul.mubr.msk.f32.gmra.mrb[154].mxu1 %vm391_vm3, %v10679_v43  ;;  %8597 = vmatprep.mubr.msk.f32.mxu0 %vm9629_vm0, %v9630_v6 }
 0x1d4   : > { %8662 = vmatprep.mubr.msk.f32.mxu1 %vm9629_vm0, %v9630_v6 }
 0x1d5   : > { %v1574_v46 = vpop.f32.mrb[50].mxu0 }
 0x1d6   : > { %v1807_v49 = vpop.f32.mrb[50].mxu1  ;;  %v8306_v15 = vpop.f32.mrb[51].mxu0  ;;  %8598 = vmatmul.mubr.msk.f32.gmra.mrb[156].mxu0 %vm391_vm3, %v2460_v12 }
 0x1d7   : > { %v10692_v14 = vadd.f32 %v1807_v49, %v1574_v46  ;;  %v8371_v16 = vpop.f32.mrb[51].mxu1  ;;  %8663 = vmatmul.mubr.msk.f32.gmra.mrb[156].mxu1 %vm391_vm3, %v10690_v13  ;;  %8600 = vmatprep.mubr.msk.f32.mxu0 %vm9629_vm0, %v9630_v6  ;;  %v3276_v46 = vld [vmem:[#allocation2 + $0x2a] sm:$0xff]  ;;  %v390_v49 = vld [vmem:[%s12597_s7] sm:$0xf] }
 0x1d8   : > { %8665 = vmatprep.mubr.msk.f32.mxu1 %vm9629_vm0, %v9630_v6 }
 0x1d9   : > { %v1579_v17 = vpop.f32.mrb[52].mxu0 }
 0x1da   : > { %v1812_v18 = vpop.f32.mrb[52].mxu1  ;;  %v8309_v22 = vpop.f32.mrb[53].mxu0  ;;  %8601 = vmatmul.mubr.msk.f32.gmra.mrb[158].mxu0 %vm391_vm3, %v2461_v19  ;;  %v3277_v19 = vld [vmem:[#allocation2 + $0x32] sm:$0xff] }
 0x1db   : > { %v10703_v21 = vadd.f32 %v1812_v18, %v1579_v17  ;;  %v8374_v23 = vpop.f32.mrb[53].mxu1  ;;  %8666 = vmatmul.mubr.msk.f32.gmra.mrb[158].mxu1 %vm391_vm3, %v10701_v20  ;;  %8603 = vmatprep.mubr.msk.f32.mxu0 %vm9629_vm0, %v9630_v6 }
 0x1dc   : > { %8668 = vmatprep.mubr.msk.f32.mxu1 %vm9629_vm0, %v9630_v6 }
 0x1dd   : > { %v1584_v24 = vpop.f32.mrb[54].mxu0 }
 0x1de   : > { %v1817_v56 = vpop.f32.mrb[54].mxu1  ;;  %v8312_v27 = vpop.f32.mrb[55].mxu0  ;;  %8604 = vmatmul.mubr.msk.f32.gmra.mrb[160].mxu0 %vm391_vm3, %v2462_v40  ;;  %v3278_v40 = vld [vmem:[#allocation2 + $0x3a] sm:$0xff] }
 0x1df   : > { %v10714_v26 = vadd.f32 %v1817_v56, %v1584_v24  ;;  %v8377_v28 = vpop.f32.mrb[55].mxu1  ;;  %8669 = vmatmul.mubr.msk.f32.gmra.mrb[160].mxu1 %vm391_vm3, %v10712_v25  ;;  %8606 = vmatprep.mubr.msk.f32.mxu0 %vm9629_vm0, %v9630_v6 }
 0x1e0   : > { %8671 = vmatprep.mubr.msk.f32.mxu1 %vm9629_vm0, %v9630_v6 }
 0x1e1   : > { %v1589_v29 = vpop.f32.mrb[56].mxu0 }
 0x1e2   : > { %v1822_v53 = vpop.f32.mrb[56].mxu1  ;;  %v8315_v47 = vpop.f32.mrb[57].mxu0  ;;  %8607 = vmatmul.mubr.msk.f32.gmra.mrb[162].mxu0 %vm391_vm3, %v2463_v44  ;;  %v3279_v44 = vld [vmem:[#allocation2 + $0x42] sm:$0xff] }
 0x1e3   : > { %v10725_v50 = vadd.f32 %v1822_v53, %v1589_v29  ;;  %v8380_v33 = vpop.f32.mrb[57].mxu1  ;;  %8672 = vmatmul.mubr.msk.f32.gmra.mrb[162].mxu1 %vm391_vm3, %v10723_v30  ;;  %8609 = vmatprep.mubr.msk.f32.mxu0 %vm9629_vm0, %v9630_v6 }
 0x1e4   : > { %8674 = vmatprep.mubr.msk.f32.mxu1 %vm9629_vm0, %v9630_v6 }
 0x1e5   : > { %v1594_v58 = vpop.f32.mrb[58].mxu0 }
 0x1e6   : > { %v1827_v36 = vpop.f32.mrb[58].mxu1  ;;  %v8318_v45 = vpop.f32.mrb[59].mxu0  ;;  %8610 = vmatmul.mubr.msk.f32.gmra.mrb[164].mxu0 %vm391_vm3, %v2464_v37  ;;  %v3280_v37 = vld [vmem:[#allocation2 + $0x4a] sm:$0xff] }
 0x1e7   : > { %v10736_v59 = vadd.f32 %v1827_v36, %v1594_v58  ;;  %v8383_v62 = vpop.f32.mrb[59].mxu1  ;;  %8675 = vmatmul.mubr.msk.f32.gmra.mrb[164].mxu1 %vm391_vm3, %v10734_v38  ;;  %8612 = vmatprep.mubr.msk.f32.mxu0 %vm9629_vm0, %v9630_v6 }
 0x1e8   : > { %8677 = vmatprep.mubr.msk.f32.mxu1 %vm9629_vm0, %v9630_v6 }
 0x1e9   : > { %v1599_v3 = vpop.f32.mrb[60].mxu0 }
 0x1ea   : > { %v1832_v63 = vpop.f32.mrb[60].mxu1  ;;  %v8321_v55 = vpop.f32.mrb[61].mxu0  ;;  %8613 = vmatmul.mubr.msk.f32.gmra.mrb[166].mxu0 %vm391_vm3, %v2465_v0  ;;  %v3281_v0 = vld [vmem:[#allocation2 + $0x52] sm:$0xff] }
 0x1eb   : > { %v10747_v41 = vadd.f32 %v1832_v63, %v1599_v3  ;;  %v8386_v7 = vpop.f32.mrb[61].mxu1  ;;  %8678 = vmatmul.mubr.msk.f32.gmra.mrb[166].mxu1 %vm391_vm3, %v10745_v1  ;;  %8682 = vmatprep.mubr.msk.f32.mxu0 %vm9629_vm0, %v9630_v6 }
 0x1ec   : > { %8747 = vmatprep.mubr.msk.f32.mxu1 %vm9629_vm0, %v9630_v6 }
 0x1ed   : > { %v1604_v9 = vpop.f32.mrb[62].mxu0 }
 0x1ee   : > { %v1837_v11 = vpop.f32.mrb[62].mxu1  ;;  %v8324_v15 = vpop.f32.mrb[63].mxu0  ;;  %8683 = vmatmul.mubr.msk.f32.vlgmr.msra.gmra.mrb[168].mxu0 %vm391_vm3, %v10569_v31 }
 0x1ef   : > { %v10762_v12 = vadd.f32 %v1837_v11, %v1604_v9  ;;  %v8389_v16 = vpop.f32.mrb[63].mxu1  ;;  %8748 = vmatmul.mubr.msk.f32.vlgmr.msra.gmra.mrb[168].mxu1 %vm391_vm3, %v3276_v46  ;;  %8811 = vmatpush3.msra.mxu0 %v7385_v8  ;;  %v3282_v11 = vld [vmem:[#allocation2 + $0x5a] sm:$0xff] }
 0x1f0   : > { %8685 = vmatprep.mubr.msk.f32.mxu0 %vm9629_vm0, %v9630_v6  ;;  %8750 = vmatprep.mubr.msk.f32.mxu1 %vm9629_vm0, %v9630_v6 }
 0x1f1   : > { %8876 = vmatpush3.msk.msra.mxu1 %vm489_vm1, %v390_v49  ;;  %v1609_v17 = vpop.f32.mrb[64].mxu0  ;;  %8940 = vmatprep.subr.mxu0 %v9630_v6 }
 0x1f2   : > { %v1842_v18 = vpop.f32.mrb[64].mxu1  ;;  %9005 = vmatprep.subr.mxu1 %v9630_v6  ;;  %v8327_v31 = vpop.f32.mrb[65].mxu0  ;;  %8686 = vmatmul.mubr.msk.f32.gmra.mrb[170].mxu0 %vm391_vm3, %v10578_v57 }
 0x1f3   : > { %v10774_v22 = vadd.f32 %v1842_v18, %v1609_v17  ;;  %v8392_v23 = vpop.f32.mrb[65].mxu1  ;;  %8751 = vmatmul.mubr.msk.f32.gmra.mrb[170].mxu1 %vm391_vm3, %v3277_v19  ;;  %8688 = vmatprep.mubr.msk.f32.mxu0 %vm9629_vm0, %v9630_v6  ;;  %v3283_v17 = vld [vmem:[#allocation2 + $0x62] sm:$0xff] }
 0x1f4   : > { %8753 = vmatprep.mubr.msk.f32.mxu1 %vm9629_vm0, %v9630_v6 }
 0x1f5   : > { %v1614_v24 = vpop.f32.mrb[66].mxu0 }
 0x1f6   : > { %v1847_v56 = vpop.f32.mrb[66].mxu1  ;;  %v8330_v28 = vpop.f32.mrb[67].mxu0  ;;  %8689 = vmatmul.mubr.msk.f32.gmra.mrb[172].mxu0 %vm391_vm3, %v10587_v32 }
 0x1f7   : > { %v10783_v27 = vadd.f32 %v1847_v56, %v1614_v24  ;;  %v8395_v29 = vpop.f32.mrb[67].mxu1  ;;  %8754 = vmatmul.mubr.msk.f32.gmra.mrb[172].mxu1 %vm391_vm3, %v3278_v40  ;;  %8691 = vmatprep.mubr.msk.f32.mxu0 %vm9629_vm0, %v9630_v6  ;;  %v3284_v24 = vld [vmem:[#allocation2 + $0x6a] sm:$0xff] }
 0x1f8   : > { %8756 = vmatprep.mubr.msk.f32.mxu1 %vm9629_vm0, %v9630_v6 }
 0x1f9   : > { %v1619_v57 = vpop.f32.mrb[68].mxu0 }
 0x1fa   : > { %v1852_v53 = vpop.f32.mrb[68].mxu1  ;;  %v8333_v33 = vpop.f32.mrb[69].mxu0  ;;  %8692 = vmatmul.mubr.msk.f32.gmra.mrb[174].mxu0 %vm391_vm3, %v10596_v34 }
 0x1fb   : > { %v10792_v47 = vadd.f32 %v1852_v53, %v1619_v57  ;;  %v8398_v58 = vpop.f32.mrb[69].mxu1  ;;  %8757 = vmatmul.mubr.msk.f32.gmra.mrb[174].mxu1 %vm391_vm3, %v3279_v44  ;;  %8694 = vmatprep.mubr.msk.f32.mxu0 %vm9629_vm0, %v9630_v6  ;;  %v3285_v57 = vld [vmem:[#allocation2 + $0x72] sm:$0xff] }
 0x1fc   : > { %8759 = vmatprep.mubr.msk.f32.mxu1 %vm9629_vm0, %v9630_v6 }
 0x1fd   : > { %v1624_v32 = vpop.f32.mrb[70].mxu0 }
 0x1fe   : > { %v1857_v36 = vpop.f32.mrb[70].mxu1  ;;  %v8336_v62 = vpop.f32.mrb[71].mxu0  ;;  %8695 = vmatmul.mubr.msk.f32.gmra.mrb[176].mxu0 %vm391_vm3, %v10605_v35 }
 0x1ff   : > { %v10801_v45 = vadd.f32 %v1857_v36, %v1624_v32  ;;  %v8401_v3 = vpop.f32.mrb[71].mxu1  ;;  %8760 = vmatmul.mubr.msk.f32.gmra.mrb[176].mxu1 %vm391_vm3, %v3280_v37  ;;  %8697 = vmatprep.mubr.msk.f32.mxu0 %vm9629_vm0, %v9630_v6  ;;  %v3286_v32 = vld [vmem:[#allocation2 + $0x7a] sm:$0xff] }
 0x200   : > { %8762 = vmatprep.mubr.msk.f32.mxu1 %vm9629_vm0, %v9630_v6 }
 0x201   : > { %v1629_v34 = vpop.f32.mrb[72].mxu0 }
 0x202   : > { %v1862_v63 = vpop.f32.mrb[72].mxu1  ;;  %v8339_v7 = vpop.f32.mrb[73].mxu0  ;;  %8698 = vmatmul.mubr.msk.f32.gmra.mrb[178].mxu0 %vm391_vm3, %v10614_v42 }
 0x203   : > { %v10810_v55 = vadd.f32 %v1862_v63, %v1629_v34  ;;  %v8404_v8 = vpop.f32.mrb[73].mxu1  ;;  %8763 = vmatmul.mubr.msk.f32.gmra.mrb[178].mxu1 %vm391_vm3, %v3281_v0  ;;  %8700 = vmatprep.mubr.msk.f32.mxu0 %vm9629_vm0, %v9630_v6  ;;  %v3287_v34 = vld [vmem:[#allocation2 + $0x82] sm:$0xff] }
 0x204   : > { %8765 = vmatprep.mubr.msk.f32.mxu1 %vm9629_vm0, %v9630_v6 }
 0x205   : > { %v1634_v35 = vpop.f32.mrb[74].mxu0 }
 0x206   : > { %v1867_v9 = vpop.f32.mrb[74].mxu1  ;;  %v8342_v49 = vpop.f32.mrb[75].mxu0  ;;  %8701 = vmatmul.mubr.msk.f32.gmra.mrb[180].mxu0 %vm391_vm3, %v10623_v54 }
 0x207   : > { %v10819_v46 = vadd.f32 %v1867_v9, %v1634_v35  ;;  %v8407_v15 = vpop.f32.mrb[75].mxu1  ;;  %8766 = vmatmul.mubr.msk.f32.gmra.mrb[180].mxu1 %vm391_vm3, %v3282_v11  ;;  %8703 = vmatprep.mubr.msk.f32.mxu0 %vm9629_vm0, %v9630_v6  ;;  %v3288_v9 = vld [vmem:[#allocation2 + $0x8a] sm:$0xff] }
 0x208   : > { %8768 = vmatprep.mubr.msk.f32.mxu1 %vm9629_vm0, %v9630_v6 }
 0x209   : > { %v1639_v42 = vpop.f32.mrb[76].mxu0 }
 0x20a   : > { %v1872_v16 = vpop.f32.mrb[76].mxu1  ;;  %v8345_v19 = vpop.f32.mrb[77].mxu0  ;;  %8704 = vmatmul.mubr.msk.f32.gmra.mrb[182].mxu0 %vm391_vm3, %v10632_v39 }
 0x20b   : > { %v10828_v18 = vadd.f32 %v1872_v16, %v1639_v42  ;;  %v8410_v31 = vpop.f32.mrb[77].mxu1  ;;  %8769 = vmatmul.mubr.msk.f32.gmra.mrb[182].mxu1 %vm391_vm3, %v3283_v17  ;;  %8706 = vmatprep.mubr.msk.f32.mxu0 %vm9629_vm0, %v9630_v6  ;;  %v3289_v16 = vld [vmem:[#allocation2 + $0x92] sm:$0xff] }
 0x20c   : > { %8771 = vmatprep.mubr.msk.f32.mxu1 %vm9629_vm0, %v9630_v6 }
 0x20d   : > { %v1644_v54 = vpop.f32.mrb[78].mxu0 }
 0x20e   : > { %v1877_v23 = vpop.f32.mrb[78].mxu1  ;;  %v8348_v40 = vpop.f32.mrb[79].mxu0  ;;  %8707 = vmatmul.mubr.msk.f32.gmra.mrb[184].mxu0 %vm391_vm3, %v10641_v60 }
 0x20f   : > { %v10837_v56 = vadd.f32 %v1877_v23, %v1644_v54  ;;  %v8413_v28 = vpop.f32.mrb[79].mxu1  ;;  %8772 = vmatmul.mubr.msk.f32.gmra.mrb[184].mxu1 %vm391_vm3, %v3284_v24  ;;  %8709 = vmatprep.mubr.msk.f32.mxu0 %vm9629_vm0, %v9630_v6  ;;  %v3290_v23 = vld [vmem:[#allocation2 + $0x9a] sm:$0xff] }
 0x210   : > { %8774 = vmatprep.mubr.msk.f32.mxu1 %vm9629_vm0, %v9630_v6 }
 0x211   : > { %v1649_v39 = vpop.f32.mrb[80].mxu0 }
 0x212   : > { %v1882_v29 = vpop.f32.mrb[80].mxu1  ;;  %v8351_v44 = vpop.f32.mrb[81].mxu0  ;;  %8710 = vmatmul.mubr.msk.f32.gmra.mrb[186].mxu0 %vm391_vm3, %v10650_v51 }
 0x213   : > { %v10846_v53 = vadd.f32 %v1882_v29, %v1649_v39  ;;  %v8416_v33 = vpop.f32.mrb[81].mxu1  ;;  %8775 = vmatmul.mubr.msk.f32.gmra.mrb[186].mxu1 %vm391_vm3, %v3285_v57  ;;  %8712 = vmatprep.mubr.msk.f32.mxu0 %vm9629_vm0, %v9630_v6  ;;  %v3291_v29 = vld [vmem:[#allocation2 + $0xa2] sm:$0xff] }
 0x214   : > { %8777 = vmatprep.mubr.msk.f32.mxu1 %vm9629_vm0, %v9630_v6 }
 0x215   : > { %v1654_v60 = vpop.f32.mrb[82].mxu0 }
 0x216   : > { %v1887_v58 = vpop.f32.mrb[82].mxu1  ;;  %v8354_v37 = vpop.f32.mrb[83].mxu0  ;;  %8713 = vmatmul.mubr.msk.f32.gmra.mrb[188].mxu0 %vm391_vm3, %v10659_v48 }
 0x217   : > { %v10855_v36 = vadd.f32 %v1887_v58, %v1654_v60  ;;  %v8419_v62 = vpop.f32.mrb[83].mxu1  ;;  %8778 = vmatmul.mubr.msk.f32.gmra.mrb[188].mxu1 %vm391_vm3, %v3286_v32  ;;  %8715 = vmatprep.mubr.msk.f32.mxu0 %vm9629_vm0, %v9630_v6  ;;  %v3292_v58 = vld [vmem:[#allocation2 + $0xaa] sm:$0xff] }
 0x218   : > { %8780 = vmatprep.mubr.msk.f32.mxu1 %vm9629_vm0, %v9630_v6 }
 0x219   : > { %v2043_v51 = vpop.f32.mrb[84].mxu0 }
 0x21a   : > { %v2320_v3 = vpop.f32.mrb[84].mxu1  ;;  %v2147_v63 = vadd.f32 %v2043_v51, %v10419_v5  ;;  %v8424_v0 = vpop.f32.mrb[85].mxu0  ;;  %8716 = vmatmul.mubr.msk.f32.gmra.mrb[190].mxu0 %vm391_vm3, %v10668_v2 }
 0x21b   : > { %v8489_v7 = vpop.f32.mrb[85].mxu1  ;;  %8781 = vmatmul.mubr.msk.f32.gmra.mrb[190].mxu1 %vm391_vm3, %v3287_v34  ;;  %8718 = vmatprep.mubr.msk.f32.mxu0 %vm9629_vm0, %v9630_v6 }
 0x21c   : > { %8783 = vmatprep.mubr.msk.f32.mxu1 %vm9629_vm0, %v9630_v6  ;;  %v10872_v48 = vadd.f32 %v2320_v3, %v2147_v63  ;;  %v3293_v3 = vld [vmem:[#allocation2 + $0xb2] sm:$0xff] }
 0x21d   : > { %v2048_v8 = vpop.f32.mrb[86].mxu0 }
 0x21e   : > { %v2325_v35 = vpop.f32.mrb[86].mxu1  ;;  %v2148_v5 = vadd.f32 %v2048_v8, %v10429_v10  ;;  %v8427_v11 = vpop.f32.mrb[87].mxu0  ;;  %8719 = vmatmul.mubr.msk.f32.gmra.mrb[192].mxu0 %vm391_vm3, %v10679_v43  ;;  %v3294_v8 = vld [vmem:[#allocation2 + $0xba] sm:$0xff] }
 0x21f   : > { %v8492_v49 = vpop.f32.mrb[87].mxu1  ;;  %8784 = vmatmul.mubr.msk.f32.gmra.mrb[192].mxu1 %vm391_vm3, %v3288_v9  ;;  %8721 = vmatprep.mubr.msk.f32.mxu0 %vm9629_vm0, %v9630_v6 }
 0x220   : > { %8786 = vmatprep.mubr.msk.f32.mxu1 %vm9629_vm0, %v9630_v6  ;;  %v10882_v2 = vadd.f32 %v2325_v35, %v2148_v5  ;;  %v3018_v49 = vld [vmem:[#allocation2 + $0xc1] sm:$0xff] }
 0x221   : > { %v2053_v15 = vpop.f32.mrb[88].mxu0 }
 0x222   : > { %v2330_v42 = vpop.f32.mrb[88].mxu1  ;;  %v2149_v10 = vadd.f32 %v2053_v15, %v10670_v4  ;;  %v8430_v17 = vpop.f32.mrb[89].mxu0  ;;  %8722 = vmatmul.mubr.msk.f32.gmra.mrb[194].mxu0 %vm391_vm3, %v10690_v13 }
 0x223   : > { %v8495_v19 = vpop.f32.mrb[89].mxu1  ;;  %8787 = vmatmul.mubr.msk.f32.gmra.mrb[194].mxu1 %vm391_vm3, %v3289_v16  ;;  %8724 = vmatprep.mubr.msk.f32.mxu0 %vm9629_vm0, %v9630_v6  ;;  %v3019_v17 = vld [vmem:[#allocation2 + $0xc9] sm:$0xff] }
 0x224   : > { %8789 = vmatprep.mubr.msk.f32.mxu1 %vm9629_vm0, %v9630_v6  ;;  %v10892_v43 = vadd.f32 %v2330_v42, %v2149_v10  ;;  %v3296_v19 = vld [vmem:[#allocation2 + $0xca] sm:$0xff] }
 0x225   : > { %v2058_v31 = vpop.f32.mrb[90].mxu0 }
 0x226   : > { %v2335_v54 = vpop.f32.mrb[90].mxu1  ;;  %v2150_v4 = vadd.f32 %v2058_v31, %v10681_v52  ;;  %v8433_v24 = vpop.f32.mrb[91].mxu0  ;;  %8725 = vmatmul.mubr.msk.f32.gmra.mrb[196].mxu0 %vm391_vm3, %v10701_v20 }
 0x227   : > { %v8498_v40 = vpop.f32.mrb[91].mxu1  ;;  %8790 = vmatmul.mubr.msk.f32.gmra.mrb[196].mxu1 %vm391_vm3, %v3290_v23  ;;  %8727 = vmatprep.mubr.msk.f32.mxu0 %vm9629_vm0, %v9630_v6 }
 0x228   : > { %8792 = vmatprep.mubr.msk.f32.mxu1 %vm9629_vm0, %v9630_v6  ;;  %v10902_v13 = vadd.f32 %v2335_v54, %v2150_v4  ;;  %v3830_v4 = vld [vmem:[%s10957_s27] sm:$0xff] }
 0x229   : > { %v2063_v28 = vpop.f32.mrb[92].mxu0 }
 0x22a   : > { %v2340_v39 = vpop.f32.mrb[92].mxu1  ;;  %v2151_v52 = vadd.f32 %v2063_v28, %v10692_v14  ;;  %v8436_v57 = vpop.f32.mrb[93].mxu0  ;;  %8728 = vmatmul.mubr.msk.f32.gmra.mrb[198].mxu0 %vm391_vm3, %v10712_v25 }
 0x22b   : > { %v8501_v44 = vpop.f32.mrb[93].mxu1  ;;  %8793 = vmatmul.mubr.msk.f32.gmra.mrb[198].mxu1 %vm391_vm3, %v3291_v29  ;;  %8730 = vmatprep.mubr.msk.f32.mxu0 %vm9629_vm0, %v9630_v6  ;;  %v4268_v29 = vld [vmem:[%s12595_s5] sm:$0xff] }
 0x22c   : > { %8795 = vmatprep.mubr.msk.f32.mxu1 %vm9629_vm0, %v9630_v6  ;;  %v10912_v20 = vadd.f32 %v2340_v39, %v2151_v52  ;;  %v3553_v39 = vld [vmem:[#allocation2 + $0x2b] sm:$0xff] }
 0x22d   : > { %v2068_v33 = vpop.f32.mrb[94].mxu0 }
 0x22e   : > { %v2345_v60 = vpop.f32.mrb[94].mxu1  ;;  %v2152_v14 = vadd.f32 %v2068_v33, %v10703_v21  ;;  %v8439_v32 = vpop.f32.mrb[95].mxu0  ;;  %8731 = vmatmul.mubr.msk.f32.gmra.mrb[200].mxu0 %vm391_vm3, %v10723_v30  ;;  %v3831_v33 = vld [vmem:[%s10957_s27 + $0x8] sm:$0xff] }
 0x22f   : > { %v8504_v37 = vpop.f32.mrb[95].mxu1  ;;  %8796 = vmatmul.mubr.msk.f32.gmra.mrb[200].mxu1 %vm391_vm3, %v3292_v58  ;;  %8733 = vmatprep.mubr.msk.f32.mxu0 %vm9629_vm0, %v9630_v6 }
 0x230   : > { %8798 = vmatprep.mubr.msk.f32.mxu1 %vm9629_vm0, %v9630_v6  ;;  %v10922_v25 = vadd.f32 %v2345_v60, %v2152_v14  ;;  %v3554_v14 = vld [vmem:[#allocation2 + $0x33] sm:$0xff] }
 0x231   : > { %v2073_v62 = vpop.f32.mrb[96].mxu0 }
 0x232   : > { %v2350_v51 = vpop.f32.mrb[96].mxu1  ;;  %v2153_v21 = vadd.f32 %v2073_v62, %v10714_v26  ;;  %v8442_v34 = vpop.f32.mrb[97].mxu0  ;;  %8734 = vmatmul.mubr.msk.f32.gmra.mrb[202].mxu0 %vm391_vm3, %v10734_v38 }
 0x233   : > { %v8507_v63 = vpop.f32.mrb[97].mxu1  ;;  %8799 = vmatmul.mubr.msk.f32.gmra.mrb[202].mxu1 %vm391_vm3, %v3293_v3  ;;  %8736 = vmatprep.mubr.msk.f32.mxu0 %vm9629_vm0, %v9630_v6 }
 0x234   : > { %8801 = vmatprep.mubr.msk.f32.mxu1 %vm9629_vm0, %v9630_v6  ;;  %v10932_v30 = vadd.f32 %v2350_v51, %v2153_v21  ;;  %v3832_v51 = vld [vmem:[%s10957_s27 + $0x10] sm:$0xff]  ;;  %v3555_v63 = vld [vmem:[#allocation2 + $0x3b] sm:$0xff] }
 0x235   : > { %v2078_v0 = vpop.f32.mrb[98].mxu0 }
 0x236   : > { %v2355_v7 = vpop.f32.mrb[98].mxu1  ;;  %v2154_v26 = vadd.f32 %v2078_v0, %v10725_v50  ;;  %v8445_v35 = vpop.f32.mrb[99].mxu0  ;;  %8737 = vmatmul.mubr.msk.f32.gmra.mrb[204].mxu0 %vm391_vm3, %v10745_v1  ;;  %v3295_v50 = vld [vmem:[#allocation2 + $0xc2] sm:$0xff] }
 0x237   : > { %v8510_v9 = vpop.f32.mrb[99].mxu1  ;;  %8802 = vmatmul.mubr.msk.f32.gmra.mrb[204].mxu1 %vm391_vm3, %v3294_v8  ;;  %8739 = vmatprep.mubr.msk.f32.mxu0 %vm9629_vm0, %v9630_v6  ;;  %v3833_v8 = vld [vmem:[%s10957_s27 + $0x18] sm:$0xff] }
 0x238   : > { %8804 = vmatprep.mubr.msk.f32.mxu1 %vm9629_vm0, %v9630_v6  ;;  %v10942_v38 = vadd.f32 %v2355_v7, %v2154_v26 }
 0x239   : > { %v2083_v5 = vpop.f32.mrb[100].mxu0 }
 0x23a   : > { %v2360_v11 = vpop.f32.mrb[100].mxu1  ;;  %v2155_v15 = vadd.f32 %v2083_v5, %v10736_v59  ;;  %v8448_v42 = vpop.f32.mrb[101].mxu0  ;;  %8740 = vmatmul.mubr.msk.f32.gmra.mrb[206].mxu0 %vm391_vm3, %v3018_v49  ;;  %v3556_v5 = vld [vmem:[#allocation2 + $0x43] sm:$0xff] }
 0x23b   : > { %v8513_v16 = vpop.f32.mrb[101].mxu1  ;;  %8805 = vmatmul.mubr.msk.f32.gmra.mrb[206].mxu1 %vm391_vm3, %v3295_v50  ;;  %8742 = vmatprep.mubr.msk.f32.mxu0 %vm9629_vm0, %v9630_v6  ;;  %v3834_v50 = vld [vmem:[%s10957_s27 + $0x20] sm:$0xff] }
 0x23c   : > { %8807 = vmatprep.mubr.msk.f32.mxu1 %vm9629_vm0, %v9630_v6  ;;  %v10951_v1 = vadd.f32 %v2360_v11, %v2155_v15 }
 0x23d   : > { %v2088_v59 = vpop.f32.mrb[102].mxu0 }
 0x23e   : > { %v2365_v10 = vpop.f32.mrb[102].mxu1  ;;  %v2156_v31 = vadd.f32 %v2088_v59, %v10747_v41  ;;  %v8451_v54 = vpop.f32.mrb[103].mxu0  ;;  %8743 = vmatmul.mubr.msk.f32.gmra.mrb[208].mxu0 %vm391_vm3, %v3019_v17  ;;  %v7431_v41 = vld [vmem:[%s12595_s5 + $0x8] sm:$0xff] }
 0x23f   : > { %v8516_v23 = vpop.f32.mrb[103].mxu1  ;;  %8808 = vmatmul.mubr.msk.f32.gmra.mrb[208].mxu1 %vm391_vm3, %v3296_v19  ;;  %8812 = vmatprep.mubr.msk.f32.mxu0 %vm9629_vm0, %v9630_v6  ;;  %v3557_v59 = vld [vmem:[#allocation2 + $0x4b] sm:$0xff] }
 0x240   : > { %8877 = vmatprep.mubr.msk.f32.mxu1 %vm9629_vm0, %v9630_v6  ;;  %v10967_v24 = vadd.f32 %v2365_v10, %v2156_v31  ;;  %v3835_v19 = vld [vmem:[%s10957_s27 + $0x28] sm:$0xff] }
 0x241   : > { %v2093_v40 = vpop.f32.mrb[104].mxu0 }
 0x242   : > { %v2370_v28 = vpop.f32.mrb[104].mxu1  ;;  %v2157_v52 = vadd.f32 %v2093_v40, %v10762_v12  ;;  %v8454_v57 = vpop.f32.mrb[105].mxu0  ;;  %8813 = vmatmul.mubr.msk.f32.vlgmr.msra.gmra.mrb[210].mxu0 %vm391_vm3, %v3553_v39 }
 0x243   : > { %v8519_v44 = vpop.f32.mrb[105].mxu1  ;;  %8878 = vmatmul.mubr.msk.f32.vlgmr.msra.gmra.mrb[210].mxu1 %vm3851_vm4, %v3830_v4  ;;  %8941 = vmatpush3.msra.mxu0 %v7431_v41  ;;  %v3558_v4 = vld [vmem:[#allocation2 + $0x53] sm:$0xff]  ;;  %v3559_v57 = vld [vmem:[#allocation2 + $0x5b] sm:$0xff] }
 0x244   : > { %8815 = vmatprep.mubr.msk.f32.mxu0 %vm9629_vm0, %v9630_v6  ;;  %v10981_v60 = vadd.f32 %v2370_v28, %v2157_v52  ;;  %8880 = vmatprep.mubr.msk.f32.mxu1 %vm9629_vm0, %v9630_v6  ;;  %v3836_v28 = vld [vmem:[%s10957_s27 + $0x30] sm:$0xff] }
 0x245   : > { %9006 = vmatpush3.msra.mxu1 %v4268_v29  ;;  %v2098_v58 = vpop.f32.mrb[106].mxu0  ;;  %9070 = vmatprep.subr.mxu0 %v9630_v6 }
 0x246   : > { %v2375_v12 = vpop.f32.mrb[106].mxu1  ;;  %9135 = vmatprep.subr.mxu1 %v9630_v6  ;;  %v2158_v32 = vadd.f32 %v2098_v58, %v10774_v22  ;;  %v8457_v37 = vpop.f32.mrb[107].mxu0  ;;  %8816 = vmatmul.mubr.msk.f32.gmra.mrb[212].mxu0 %vm391_vm3, %v3554_v14  ;;  %v3837_v58 = vld [vmem:[%s10957_s27 + $0x38] sm:$0xff] }
 0x247   : > { %v8522_v62 = vpop.f32.mrb[107].mxu1  ;;  %8881 = vmatmul.mubr.msk.f32.gmra.mrb[212].mxu1 %vm3851_vm4, %v3831_v33  ;;  %8818 = vmatprep.mubr.msk.f32.mxu0 %vm9629_vm0, %v9630_v6  ;;  %v3560_v37 = vld [vmem:[#allocation2 + $0x63] sm:$0xff] }
 0x248   : > { %8883 = vmatprep.mubr.msk.f32.mxu1 %vm9629_vm0, %v9630_v6  ;;  %v10995_v3 = vadd.f32 %v2375_v12, %v2158_v32 }
 0x249   : > { %v2103_v21 = vpop.f32.mrb[108].mxu0 }
 0x24a   : > { %v2380_v34 = vpop.f32.mrb[108].mxu1  ;;  %v2159_v22 = vadd.f32 %v2103_v21, %v10783_v27  ;;  %v8460_v0 = vpop.f32.mrb[109].mxu0  ;;  %8819 = vmatmul.mubr.msk.f32.gmra.mrb[214].mxu0 %vm391_vm3, %v3555_v63  ;;  %v3838_v21 = vld [vmem:[%s10957_s27 + $0x40] sm:$0xff] }
 0x24b   : > { %v8525_v7 = vpop.f32.mrb[109].mxu1  ;;  %8884 = vmatmul.mubr.msk.f32.gmra.mrb[214].mxu1 %vm3851_vm4, %v3832_v51  ;;  %8821 = vmatprep.mubr.msk.f32.mxu0 %vm9629_vm0, %v9630_v6  ;;  %v3561_v0 = vld [vmem:[#allocation2 + $0x6b] sm:$0xff] }
 0x24c   : > { %8886 = vmatprep.mubr.msk.f32.mxu1 %vm9629_vm0, %v9630_v6  ;;  %v11005_v26 = vadd.f32 %v2380_v34, %v2159_v22 }
 0x24d   : > { %v2108_v35 = vpop.f32.mrb[110].mxu0 }
 0x24e   : > { %v2385_v9 = vpop.f32.mrb[110].mxu1  ;;  %v2160_v27 = vadd.f32 %v2108_v35, %v10792_v47  ;;  %v8463_v11 = vpop.f32.mrb[111].mxu0  ;;  %8822 = vmatmul.mubr.msk.f32.gmra.mrb[216].mxu0 %vm391_vm3, %v3556_v5  ;;  %v3839_v35 = vld [vmem:[%s10957_s27 + $0x48] sm:$0xff] }
 0x24f   : > { %v8528_v49 = vpop.f32.mrb[111].mxu1  ;;  %8887 = vmatmul.mubr.msk.f32.gmra.mrb[216].mxu1 %vm3851_vm4, %v3833_v8  ;;  %8824 = vmatprep.mubr.msk.f32.mxu0 %vm9629_vm0, %v9630_v6  ;;  %v3562_v11 = vld [vmem:[#allocation2 + $0x73] sm:$0xff] }
 0x250   : > { %8889 = vmatprep.mubr.msk.f32.mxu1 %vm9629_vm0, %v9630_v6  ;;  %v11015_v15 = vadd.f32 %v2385_v9, %v2160_v27 }
 0x251   : > { %v2113_v42 = vpop.f32.mrb[112].mxu0 }
 0x252   : > { %v2390_v16 = vpop.f32.mrb[112].mxu1  ;;  %v2161_v47 = vadd.f32 %v2113_v42, %v10801_v45  ;;  %v8466_v10 = vpop.f32.mrb[113].mxu0  ;;  %8825 = vmatmul.mubr.msk.f32.gmra.mrb[218].mxu0 %vm391_vm3, %v3557_v59  ;;  %v3840_v42 = vld [vmem:[%s10957_s27 + $0x50] sm:$0xff] }
 0x253   : > { %v8531_v17 = vpop.f32.mrb[113].mxu1  ;;  %8890 = vmatmul.mubr.msk.f32.gmra.mrb[218].mxu1 %vm3851_vm4, %v3834_v50  ;;  %8827 = vmatprep.mubr.msk.f32.mxu0 %vm9629_vm0, %v9630_v6  ;;  %v3563_v10 = vld [vmem:[#allocation2 + $0x7b] sm:$0xff] }
 0x254   : > { %8892 = vmatprep.mubr.msk.f32.mxu1 %vm9629_vm0, %v9630_v6  ;;  %v11025_v31 = vadd.f32 %v2390_v16, %v2161_v47 }
 0x255   : > { %v2118_v54 = vpop.f32.mrb[114].mxu0 }
 0x256   : > { %v2395_v23 = vpop.f32.mrb[114].mxu1  ;;  %v2162_v45 = vadd.f32 %v2118_v54, %v10810_v55  ;;  %v8469_v41 = vpop.f32.mrb[115].mxu0  ;;  %8828 = vmatmul.mubr.msk.f32.gmra.mrb[220].mxu0 %vm391_vm3, %v3558_v4  ;;  %v3841_v54 = vld [vmem:[%s10957_s27 + $0x58] sm:$0xff] }
 0x257   : > { %v8534_v40 = vpop.f32.mrb[115].mxu1  ;;  %8893 = vmatmul.mubr.msk.f32.gmra.mrb[220].mxu1 %vm3851_vm4, %v3835_v19  ;;  %8830 = vmatprep.mubr.msk.f32.mxu0 %vm9629_vm0, %v9630_v6  ;;  %v3564_v41 = vld [vmem:[#allocation2 + $0x83] sm:$0xff] }
 0x258   : > { %8895 = vmatprep.mubr.msk.f32.mxu1 %vm9629_vm0, %v9630_v6  ;;  %v11035_v39 = vadd.f32 %v2395_v23, %v2162_v45 }
 0x259   : > { %v2123_v29 = vpop.f32.mrb[116].mxu0 }
 0x25a   : > { %v2400_v52 = vpop.f32.mrb[116].mxu1  ;;  %v2163_v55 = vadd.f32 %v2123_v29, %v10819_v46  ;;  %v8472_v44 = vpop.f32.mrb[117].mxu0  ;;  %8831 = vmatmul.mubr.msk.f32.gmra.mrb[222].mxu0 %vm391_vm3, %v3559_v57  ;;  %v3842_v29 = vld [vmem:[%s10957_s27 + $0x60] sm:$0xff] }
 0x25b   : > { %v8537_v33 = vpop.f32.mrb[117].mxu1  ;;  %8896 = vmatmul.mubr.msk.f32.gmra.mrb[222].mxu1 %vm3851_vm4, %v3836_v28  ;;  %8833 = vmatprep.mubr.msk.f32.mxu0 %vm9629_vm0, %v9630_v6  ;;  %v3565_v44 = vld [vmem:[#allocation2 + $0x8b] sm:$0xff] }
 0x25c   : > { %8898 = vmatprep.mubr.msk.f32.mxu1 %vm9629_vm0, %v9630_v6  ;;  %v11045_v12 = vadd.f32 %v2400_v52, %v2163_v55 }
 0x25d   : > { %v2128_v14 = vpop.f32.mrb[118].mxu0 }
 0x25e   : > { %v2405_v32 = vpop.f32.mrb[118].mxu1  ;;  %v2164_v46 = vadd.f32 %v2128_v14, %v10828_v18  ;;  %v8475_v62 = vpop.f32.mrb[119].mxu0  ;;  %8834 = vmatmul.mubr.msk.f32.gmra.mrb[224].mxu0 %vm391_vm3, %v3560_v37  ;;  %v3843_v14 = vld [vmem:[%s10957_s27 + $0x68] sm:$0xff] }
 0x25f   : > { %v8540_v51 = vpop.f32.mrb[119].mxu1  ;;  %8899 = vmatmul.mubr.msk.f32.gmra.mrb[224].mxu1 %vm3851_vm4, %v3837_v58  ;;  %8836 = vmatprep.mubr.msk.f32.mxu0 %vm9629_vm0, %v9630_v6  ;;  %v3566_v62 = vld [vmem:[#allocation2 + $0x93] sm:$0xff] }
 0x260   : > { %8901 = vmatprep.mubr.msk.f32.mxu1 %vm9629_vm0, %v9630_v6  ;;  %v11055_v34 = vadd.f32 %v2405_v32, %v2164_v46 }
 0x261   : > { %v2133_v63 = vpop.f32.mrb[120].mxu0 }
 0x262   : > { %v2410_v22 = vpop.f32.mrb[120].mxu1  ;;  %v2165_v18 = vadd.f32 %v2133_v63, %v10837_v56  ;;  %v8478_v7 = vpop.f32.mrb[121].mxu0  ;;  %8837 = vmatmul.mubr.msk.f32.gmra.mrb[226].mxu0 %vm391_vm3, %v3561_v0  ;;  %v3844_v63 = vld [vmem:[%s10957_s27 + $0x70] sm:$0xff] }
 0x263   : > { %v8543_v8 = vpop.f32.mrb[121].mxu1  ;;  %8902 = vmatmul.mubr.msk.f32.gmra.mrb[226].mxu1 %vm3851_vm4, %v3838_v21  ;;  %8839 = vmatprep.mubr.msk.f32.mxu0 %vm9629_vm0, %v9630_v6  ;;  %v3567_v7 = vld [vmem:[#allocation2 + $0x9b] sm:$0xff] }
 0x264   : > { %8904 = vmatprep.mubr.msk.f32.mxu1 %vm9629_vm0, %v9630_v6  ;;  %v11065_v9 = vadd.f32 %v2410_v22, %v2165_v18 }
 0x265   : > { %v2138_v5 = vpop.f32.mrb[122].mxu0 }
 0x266   : > { %v2415_v27 = vpop.f32.mrb[122].mxu1  ;;  %v2166_v56 = vadd.f32 %v2138_v5, %v10846_v53  ;;  %v8481_v49 = vpop.f32.mrb[123].mxu0  ;;  %8840 = vmatmul.mubr.msk.f32.gmra.mrb[228].mxu0 %vm391_vm3, %v3562_v11  ;;  %v3845_v5 = vld [vmem:[%s10957_s27 + $0x78] sm:$0xff] }
 0x267   : > { %v8546_v50 = vpop.f32.mrb[123].mxu1  ;;  %8905 = vmatmul.mubr.msk.f32.gmra.mrb[228].mxu1 %vm3851_vm4, %v3839_v35  ;;  %8842 = vmatprep.mubr.msk.f32.mxu0 %vm9629_vm0, %v9630_v6  ;;  %v3568_v49 = vld [vmem:[#allocation2 + $0xa3] sm:$0xff] }
 0x268   : > { %8907 = vmatprep.mubr.msk.f32.mxu1 %vm9629_vm0, %v9630_v6  ;;  %v11075_v16 = vadd.f32 %v2415_v27, %v2166_v56 }
 0x269   : > { %v2143_v59 = vpop.f32.mrb[124].mxu0 }
 0x26a   : > { %v2420_v47 = vpop.f32.mrb[124].mxu1  ;;  %v2167_v53 = vadd.f32 %v2143_v59, %v10855_v36  ;;  %v8484_v17 = vpop.f32.mrb[125].mxu0  ;;  %8843 = vmatmul.mubr.msk.f32.gmra.mrb[230].mxu0 %vm391_vm3, %v3563_v10  ;;  %v3846_v59 = vld [vmem:[%s10957_s27 + $0x80] sm:$0xff] }
 0x26b   : > { %v8549_v19 = vpop.f32.mrb[125].mxu1  ;;  %8908 = vmatmul.mubr.msk.f32.gmra.mrb[230].mxu1 %vm3851_vm4, %v3840_v42  ;;  %8845 = vmatprep.mubr.msk.f32.mxu0 %vm9629_vm0, %v9630_v6  ;;  %v3569_v17 = vld [vmem:[#allocation2 + $0xab] sm:$0xff] }
 0x26c   : > { %8910 = vmatprep.mubr.msk.f32.mxu1 %vm9629_vm0, %v9630_v6  ;;  %v11085_v23 = vadd.f32 %v2420_v47, %v2167_v53 }
 0x26d   : > { %v2597_v4 = vpop.f32.mrb[126].mxu0 }
 0x26e   : > { %v2874_v45 = vpop.f32.mrb[126].mxu1  ;;  %v2701_v36 = vadd.f32 %v2597_v4, %v10872_v48  ;;  %v8554_v40 = vpop.f32.mrb[127].mxu0  ;;  %8846 = vmatmul.mubr.msk.f32.gmra.mrb[232].mxu0 %vm391_vm3, %v3564_v41  ;;  %v3847_v4 = vld [vmem:[%s10957_s27 + $0x88] sm:$0xff] }
 0x26f   : > { %v8619_v28 = vpop.f32.mrb[127].mxu1  ;;  %8911 = vmatmul.mubr.msk.f32.gmra.mrb[232].mxu1 %vm3851_vm4, %v3841_v54  ;;  %8848 = vmatprep.mubr.msk.f32.mxu0 %vm9629_vm0, %v9630_v6  ;;  %v3570_v40 = vld [vmem:[#allocation2 + $0xb3] sm:$0xff] }
 0x270   : > { %8913 = vmatprep.mubr.msk.f32.mxu1 %vm9629_vm0, %v9630_v6  ;;  %v11095_v52 = vadd.f32 %v2874_v45, %v2701_v36 }
 0x271   : > { %v2602_v57 = vpop.f32.mrb[128].mxu0 }
 0x272   : > { %v2879_v55 = vpop.f32.mrb[128].mxu1  ;;  %v2702_v48 = vadd.f32 %v2602_v57, %v10882_v2  ;;  %v8557_v33 = vpop.f32.mrb[129].mxu0  ;;  %8849 = vmatmul.mubr.msk.f32.gmra.mrb[234].mxu0 %vm391_vm3, %v3565_v44  ;;  %v3848_v57 = vld [vmem:[%s10957_s27 + $0x90] sm:$0xff] }
 0x273   : > { %v8622_v58 = vpop.f32.mrb[129].mxu1  ;;  %8914 = vmatmul.mubr.msk.f32.gmra.mrb[234].mxu1 %vm3851_vm4, %v3842_v29  ;;  %8851 = vmatprep.mubr.msk.f32.mxu0 %vm9629_vm0, %v9630_v6  ;;  %v3571_v33 = vld [vmem:[#allocation2 + $0xbb] sm:$0xff] }
 0x274   : > { %8916 = vmatprep.mubr.msk.f32.mxu1 %vm9629_vm0, %v9630_v6  ;;  %v11105_v32 = vadd.f32 %v2879_v55, %v2702_v48 }
 0x275   : > { %v2607_v37 = vpop.f32.mrb[130].mxu0 }
 0x276   : > { %v2884_v46 = vpop.f32.mrb[130].mxu1  ;;  %v2703_v2 = vadd.f32 %v2607_v37, %v10892_v43  ;;  %v8560_v51 = vpop.f32.mrb[131].mxu0  ;;  %8852 = vmatmul.mubr.msk.f32.gmra.mrb[236].mxu0 %vm391_vm3, %v3566_v62  ;;  %v3849_v37 = vld [vmem:[%s10957_s27 + $0x98] sm:$0xff] }
 0x277   : > { %v8625_v21 = vpop.f32.mrb[131].mxu1  ;;  %8917 = vmatmul.mubr.msk.f32.gmra.mrb[236].mxu1 %vm3851_vm4, %v3843_v14  ;;  %8854 = vmatprep.mubr.msk.f32.mxu0 %vm9629_vm0, %v9630_v6  ;;  %v3572_v51 = vld [vmem:[#allocation2 + $0xc3] sm:$0xff] }
 0x278   : > { %8919 = vmatprep.mubr.msk.f32.mxu1 %vm9629_vm0, %v9630_v6  ;;  %v11115_v22 = vadd.f32 %v2884_v46, %v2703_v2 }
 0x279   : > { %v2612_v0 = vpop.f32.mrb[132].mxu0 }
 0x27a   : > { %v2889_v18 = vpop.f32.mrb[132].mxu1  ;;  %v2704_v43 = vadd.f32 %v2612_v0, %v10902_v13  ;;  %v8563_v8 = vpop.f32.mrb[133].mxu0  ;;  %8855 = vmatmul.mubr.msk.f32.gmra.mrb[238].mxu0 %vm391_vm3, %v3567_v7  ;;  %v3850_v0 = vld [vmem:[%s10957_s27 + $0xa0] sm:$0xff] }
 0x27b   : > { %v8628_v35 = vpop.f32.mrb[133].mxu1  ;;  %8920 = vmatmul.mubr.msk.f32.gmra.mrb[238].mxu1 %vm3851_vm4, %v3844_v63  ;;  %8857 = vmatprep.mubr.msk.f32.mxu0 %vm9629_vm0, %v9630_v6  ;;  %v3573_v8 = vld [vmem:[#allocation2 + $0xcb] sm:$0xff] }
 0x27c   : > { %8922 = vmatprep.mubr.msk.f32.mxu1 %vm9629_vm0, %v9630_v6  ;;  %v11125_v27 = vadd.f32 %v2889_v18, %v2704_v43 }
 0x27d   : > { %v2617_v11 = vpop.f32.mrb[134].mxu0 }
 0x27e   : > { %v2894_v56 = vpop.f32.mrb[134].mxu1  ;;  %v2705_v13 = vadd.f32 %v2617_v11, %v10912_v20  ;;  %v8566_v50 = vpop.f32.mrb[135].mxu0  ;;  %8858 = vmatmul.mubr.msk.f32.gmra.mrb[240].mxu0 %vm391_vm3, %v3568_v49 }
 0x27f   : > { %v8631_v42 = vpop.f32.mrb[135].mxu1  ;;  %8923 = vmatmul.mubr.msk.f32.gmra.mrb[240].mxu1 %vm3851_vm4, %v3845_v5  ;;  %8860 = vmatprep.mubr.msk.f32.mxu0 %vm9629_vm0, %v9630_v6  ;;  %v4247_v50 = vld [vmem:[#allocation2 + $0xad] sm:$0xff] }
 0x280   : > { %8925 = vmatprep.mubr.msk.f32.mxu1 %vm9629_vm0, %v9630_v6  ;;  %v11135_v47 = vadd.f32 %v2894_v56, %v2705_v13  ;;  %v7474_v56 = vld [vmem:[%s12595_s5 + $0x10] sm:$0xff]  ;;  %v7496_v42 = vld [vmem:[%s12595_s5 + $0x18] sm:$0xff] }
 0x281   : > { %v2622_v10 = vpop.f32.mrb[136].mxu0  ;;  %v4269_v13 = vld [vmem:[#allocation2 + $0xae] sm:$0xff] }
 0x282   : > { %v2899_v53 = vpop.f32.mrb[136].mxu1  ;;  %v2706_v20 = vadd.f32 %v2622_v10, %v10922_v25  ;;  %v8569_v19 = vpop.f32.mrb[137].mxu0  ;;  %8861 = vmatmul.mubr.msk.f32.gmra.mrb[242].mxu0 %vm391_vm3, %v3569_v17 }
 0x283   : > { %v8634_v54 = vpop.f32.mrb[137].mxu1  ;;  %8926 = vmatmul.mubr.msk.f32.gmra.mrb[242].mxu1 %vm3851_vm4, %v3846_v59  ;;  %8863 = vmatprep.mubr.msk.f32.mxu0 %vm9629_vm0, %v9630_v6 }
 0x284   : > { %8928 = vmatprep.mubr.msk.f32.mxu1 %vm9629_vm0, %v9630_v6  ;;  %v11145_v45 = vadd.f32 %v2899_v53, %v2706_v20  ;;  %v4270_v54 = vld [vmem:[#allocation2 + $0xb6] sm:$0xff] }
 0x285   : > { %v2627_v41 = vpop.f32.mrb[138].mxu0 }
 0x286   : > { %v2904_v36 = vpop.f32.mrb[138].mxu1  ;;  %v2707_v25 = vadd.f32 %v2627_v41, %v10932_v30  ;;  %v8572_v28 = vpop.f32.mrb[139].mxu0  ;;  %8864 = vmatmul.mubr.msk.f32.gmra.mrb[244].mxu0 %vm391_vm3, %v3570_v40 }
 0x287   : > { %v8637_v29 = vpop.f32.mrb[139].mxu1  ;;  %8929 = vmatmul.mubr.msk.f32.gmra.mrb[244].mxu1 %vm3851_vm4, %v3847_v4  ;;  %8866 = vmatprep.mubr.msk.f32.mxu0 %vm9629_vm0, %v9630_v6 }
 0x288   : > { %8931 = vmatprep.mubr.msk.f32.mxu1 %vm9629_vm0, %v9630_v6  ;;  %v11155_v55 = vadd.f32 %v2904_v36, %v2707_v25  ;;  %v4271_v29 = vld [vmem:[#allocation2 + $0xbe] sm:$0xff] }
 0x289   : > { %v2632_v44 = vpop.f32.mrb[140].mxu0 }
 0x28a   : > { %v2909_v48 = vpop.f32.mrb[140].mxu1  ;;  %v2708_v30 = vadd.f32 %v2632_v44, %v10942_v38  ;;  %v8575_v58 = vpop.f32.mrb[141].mxu0  ;;  %8867 = vmatmul.mubr.msk.f32.gmra.mrb[246].mxu0 %vm391_vm3, %v3571_v33 }
 0x28b   : > { %v8640_v14 = vpop.f32.mrb[141].mxu1  ;;  %8932 = vmatmul.mubr.msk.f32.gmra.mrb[246].mxu1 %vm3851_vm4, %v3848_v57  ;;  %8869 = vmatprep.mubr.msk.f32.mxu0 %vm9629_vm0, %v9630_v6  ;;  %v4249_v57 = vld [vmem:[#allocation2 + $0xbd] sm:$0xff] }
 0x28c   : > { %8934 = vmatprep.mubr.msk.f32.mxu1 %vm9629_vm0, %v9630_v6  ;;  %v11165_v46 = vadd.f32 %v2909_v48, %v2708_v30  ;;  %v4272_v14 = vld [vmem:[#allocation2 + $0xc6] sm:$0xff] }
 0x28d   : > { %v2637_v62 = vpop.f32.mrb[142].mxu0 }
 0x28e   : > { %v2914_v2 = vpop.f32.mrb[142].mxu1  ;;  %v2709_v38 = vadd.f32 %v2637_v62, %v10951_v1  ;;  %v8578_v21 = vpop.f32.mrb[143].mxu0  ;;  %8870 = vmatmul.mubr.msk.f32.gmra.mrb[248].mxu0 %vm391_vm3, %v3572_v51 }
 0x28f   : > { %v8643_v63 = vpop.f32.mrb[143].mxu1  ;;  %8935 = vmatmul.mubr.msk.f32.gmra.mrb[248].mxu1 %vm3851_vm4, %v3849_v37  ;;  %8872 = vmatprep.mubr.msk.f32.mxu0 %vm9629_vm0, %v9630_v6  ;;  %v4250_v37 = vld [vmem:[#allocation2 + $0xc5] sm:$0xff] }
 0x290   : > { %8937 = vmatprep.mubr.msk.f32.mxu1 %vm9629_vm0, %v9630_v6  ;;  %v11175_v18 = vadd.f32 %v2914_v2, %v2709_v38  ;;  %v4273_v63 = vld [vmem:[#allocation2 + $0xce] sm:$0xff] }
 0x291   : > { %v2642_v7 = vpop.f32.mrb[144].mxu0 }
 0x292   : > { %v2919_v43 = vpop.f32.mrb[144].mxu1  ;;  %v2710_v1 = vadd.f32 %v2642_v7, %v10967_v24  ;;  %v8581_v35 = vpop.f32.mrb[145].mxu0  ;;  %8873 = vmatmul.mubr.msk.f32.gmra.mrb[250].mxu0 %vm391_vm3, %v3573_v8 }
 0x293   : > { %v8646_v5 = vpop.f32.mrb[145].mxu1  ;;  %8938 = vmatmul.mubr.msk.f32.gmra.mrb[250].mxu1 %vm3851_vm4, %v3850_v0  ;;  %8942 = vmatprep.mubr.msk.f32.mxu0 %vm9629_vm0, %v9630_v6  ;;  %v4251_v0 = vld [vmem:[#allocation2 + $0xcd] sm:$0xff] }
 0x294   : > { %9007 = vmatprep.mubr.msk.f32.mxu1 %vm9629_vm0, %v9630_v6  ;;  %v11184_v11 = vadd.f32 %v2919_v43, %v2710_v1  ;;  %v4274_v5 = vld [vmem:[#allocation2 + $0xd6] sm:$0xff] }
 0x295   : > { %v2647_v49 = vpop.f32.mrb[146].mxu0 }
 0x296   : > { %v2924_v24 = vpop.f32.mrb[146].mxu1  ;;  %v2711_v59 = vadd.f32 %v2647_v49, %v10981_v60  ;;  %v8584_v10 = vpop.f32.mrb[147].mxu0  ;;  %8943 = vmatmul.mubr.msk.f32.vlgmr.msra.gmra.mrb[252].mxu0 %vm391_vm3, %v4269_v13  ;;  %v4248_v60 = vld [vmem:[#allocation2 + $0xb5] sm:$0xff] }
 0x297   : > { %v8649_v53 = vpop.f32.mrb[147].mxu1  ;;  %9008 = vmatmul.mubr.msk.f32.vlgmr.msra.gmra.mrb[252].mxu1 %vm391_vm3, %v4247_v50  ;;  %9071 = vmatpush3.msra.mxu0 %v7474_v56  ;;  %v4252_v56 = vld [vmem:[#allocation2 + $0xd5] sm:$0xff]  ;;  %v4253_v10 = vld [vmem:[#allocation2 + $0xdd] sm:$0xff] }
 0x298   : > { %8945 = vmatprep.mubr.msk.f32.mxu0 %vm9629_vm0, %v9630_v6  ;;  %v11197_v17 = vadd.f32 %v2924_v24, %v2711_v59  ;;  %9010 = vmatprep.mubr.msk.f32.mxu1 %vm9629_vm0, %v9630_v6  ;;  %v4275_v59 = vld [vmem:[#allocation2 + $0xde] sm:$0xff] }
 0x299   : > { %9136 = vmatpush3.msra.mxu1 %v7496_v42  ;;  %v2652_v20 = vpop.f32.mrb[148].mxu0  ;;  %9200 = vmatprep.subr.mxu0 %v9630_v6 }
 0x29a   : > { %v2929_v19 = vpop.f32.mrb[148].mxu1  ;;  %9265 = vmatprep.subr.mxu1 %v9630_v6  ;;  %v2712_v4 = vadd.f32 %v2652_v20, %v10995_v3  ;;  %v8587_v41 = vpop.f32.mrb[149].mxu0  ;;  %8946 = vmatmul.mubr.msk.f32.gmra.mrb[254].mxu0 %vm391_vm3, %v4270_v54 }
 0x29b   : > { %v8652_v36 = vpop.f32.mrb[149].mxu1  ;;  %9011 = vmatmul.mubr.msk.f32.gmra.mrb[254].mxu1 %vm391_vm3, %v4248_v60  ;;  %8948 = vmatprep.mubr.msk.f32.mxu0 %vm9629_vm0, %v9630_v6  ;;  %v4254_v41 = vld [vmem:[#allocation2 + $0xe5] sm:$0xff] }
 0x29c   : > { %9013 = vmatprep.mubr.msk.f32.mxu1 %vm9629_vm0, %v9630_v6  ;;  %v11210_v40 = vadd.f32 %v2929_v19, %v2712_v4  ;;  %v4276_v4 = vld [vmem:[#allocation2 + $0xe6] sm:$0xff] }
 0x29d   : > { %v2657_v25 = vpop.f32.mrb[150].mxu0 }
 0x29e   : > { %v2934_v28 = vpop.f32.mrb[150].mxu1  ;;  %v2713_v3 = vadd.f32 %v2657_v25, %v11005_v26  ;;  %v8590_v44 = vpop.f32.mrb[151].mxu0  ;;  %8949 = vmatmul.mubr.msk.f32.gmra.mrb[0].mxu0 %vm391_vm3, %v4271_v29 }
 0x29f   : > { %v8655_v48 = vpop.f32.mrb[151].mxu1  ;;  %9014 = vmatmul.mubr.msk.f32.gmra.mrb[0].mxu1 %vm391_vm3, %v4249_v57  ;;  %8951 = vmatprep.mubr.msk.f32.mxu0 %vm9629_vm0, %v9630_v6  ;;  %v4255_v44 = vld [vmem:[#allocation2 + $0xed] sm:$0xff] }
 0x2a0   : > { %9016 = vmatprep.mubr.msk.f32.mxu1 %vm9629_vm0, %v9630_v6  ;;  %v11219_v33 = vadd.f32 %v2934_v28, %v2713_v3  ;;  %v4277_v3 = vld [vmem:[#allocation2 + $0xee] sm:$0xff] }
 0x2a1   : > { %v2662_v30 = vpop.f32.mrb[152].mxu0 }
 0x2a2   : > { %v2939_v58 = vpop.f32.mrb[152].mxu1  ;;  %v2714_v26 = vadd.f32 %v2662_v30, %v11015_v15  ;;  %v8593_v62 = vpop.f32.mrb[153].mxu0  ;;  %8952 = vmatmul.mubr.msk.f32.gmra.mrb[2].mxu0 %vm391_vm3, %v4272_v14 }
 0x2a3   : > { %v8658_v2 = vpop.f32.mrb[153].mxu1  ;;  %9017 = vmatmul.mubr.msk.f32.gmra.mrb[2].mxu1 %vm391_vm3, %v4250_v37  ;;  %8954 = vmatprep.mubr.msk.f32.mxu0 %vm9629_vm0, %v9630_v6  ;;  %v4256_v62 = vld [vmem:[#allocation2 + $0xf5] sm:$0xff] }
 0x2a4   : > { %9019 = vmatprep.mubr.msk.f32.mxu1 %vm9629_vm0, %v9630_v6  ;;  %v11228_v51 = vadd.f32 %v2939_v58, %v2714_v26  ;;  %v4278_v26 = vld [vmem:[#allocation2 + $0xf6] sm:$0xff] }
 0x2a5   : > { %v2667_v38 = vpop.f32.mrb[154].mxu0 }
 0x2a6   : > { %v2944_v21 = vpop.f32.mrb[154].mxu1  ;;  %v2715_v15 = vadd.f32 %v2667_v38, %v11025_v31  ;;  %v8596_v7 = vpop.f32.mrb[155].mxu0  ;;  %8955 = vmatmul.mubr.msk.f32.gmra.mrb[4].mxu0 %vm391_vm3, %v4273_v63 }
 0x2a7   : > { %v8661_v43 = vpop.f32.mrb[155].mxu1  ;;  %9020 = vmatmul.mubr.msk.f32.gmra.mrb[4].mxu1 %vm391_vm3, %v4251_v0  ;;  %8957 = vmatprep.mubr.msk.f32.mxu0 %vm9629_vm0, %v9630_v6  ;;  %v4257_v7 = vld [vmem:[#allocation2 + $0xfd] sm:$0xff] }
 0x2a8   : > { %9022 = vmatprep.mubr.msk.f32.mxu1 %vm9629_vm0, %v9630_v6  ;;  %v11237_v8 = vadd.f32 %v2944_v21, %v2715_v15  ;;  %v4279_v15 = vld [vmem:[#allocation2 + $0xfe] sm:$0xff] }
 0x2a9   : > { %v2672_v1 = vpop.f32.mrb[156].mxu0 }
 0x2aa   : > { %v2949_v35 = vpop.f32.mrb[156].mxu1  ;;  %v2716_v31 = vadd.f32 %v2672_v1, %v11035_v39  ;;  %v8599_v49 = vpop.f32.mrb[157].mxu0  ;;  %8958 = vmatmul.mubr.msk.f32.gmra.mrb[6].mxu0 %vm391_vm3, %v4274_v5 }
 0x2ab   : > { %v8664_v24 = vpop.f32.mrb[157].mxu1  ;;  %9023 = vmatmul.mubr.msk.f32.gmra.mrb[6].mxu1 %vm391_vm3, %v4252_v56  ;;  %8960 = vmatprep.mubr.msk.f32.mxu0 %vm9629_vm0, %v9630_v6  ;;  %v4258_v49 = vld [vmem:[#allocation2 + $0x105] sm:$0xff] }
 0x2ac   : > { %9025 = vmatprep.mubr.msk.f32.mxu1 %vm9629_vm0, %v9630_v6  ;;  %v11246_v13 = vadd.f32 %v2949_v35, %v2716_v31  ;;  %v4280_v31 = vld [vmem:[#allocation2 + $0x106] sm:$0xff] }
 0x2ad   : > { %v2677_v50 = vpop.f32.mrb[158].mxu0 }
 0x2ae   : > { %v2954_v42 = vpop.f32.mrb[158].mxu1  ;;  %v2717_v39 = vadd.f32 %v2677_v50, %v11045_v12  ;;  %v8602_v53 = vpop.f32.mrb[159].mxu0  ;;  %8961 = vmatmul.mubr.msk.f32.gmra.mrb[8].mxu0 %vm391_vm3, %v4275_v59 }
 0x2af   : > { %v8667_v20 = vpop.f32.mrb[159].mxu1  ;;  %9026 = vmatmul.mubr.msk.f32.gmra.mrb[8].mxu1 %vm391_vm3, %v4253_v10  ;;  %8963 = vmatprep.mubr.msk.f32.mxu0 %vm9629_vm0, %v9630_v6  ;;  %v4259_v53 = vld [vmem:[#allocation2 + $0x10d] sm:$0xff] }
 0x2b0   : > { %9028 = vmatprep.mubr.msk.f32.mxu1 %vm9629_vm0, %v9630_v6  ;;  %v11255_v19 = vadd.f32 %v2954_v42, %v2717_v39  ;;  %v4281_v39 = vld [vmem:[#allocation2 + $0x10e] sm:$0xff] }
 0x2b1   : > { %v2682_v54 = vpop.f32.mrb[160].mxu0 }
 0x2b2   : > { %v2959_v60 = vpop.f32.mrb[160].mxu1  ;;  %v2718_v12 = vadd.f32 %v2682_v54, %v11055_v34  ;;  %v8605_v36 = vpop.f32.mrb[161].mxu0  ;;  %8964 = vmatmul.mubr.msk.f32.gmra.mrb[10].mxu0 %vm391_vm3, %v4276_v4 }
 0x2b3   : > { %v8670_v25 = vpop.f32.mrb[161].mxu1  ;;  %9029 = vmatmul.mubr.msk.f32.gmra.mrb[10].mxu1 %vm391_vm3, %v4254_v41  ;;  %8966 = vmatprep.mubr.msk.f32.mxu0 %vm9629_vm0, %v9630_v6  ;;  %v4260_v36 = vld [vmem:[#allocation2 + $0x115] sm:$0xff] }
 0x2b4   : > { %9031 = vmatprep.mubr.msk.f32.mxu1 %vm9629_vm0, %v9630_v6  ;;  %v11264_v28 = vadd.f32 %v2959_v60, %v2718_v12  ;;  %v4282_v12 = vld [vmem:[#allocation2 + $0x116] sm:$0xff] }
 0x2b5   : > { %v2687_v29 = vpop.f32.mrb[162].mxu0 }
 0x2b6   : > { %v2964_v57 = vpop.f32.mrb[162].mxu1  ;;  %v2719_v34 = vadd.f32 %v2687_v29, %v11065_v9  ;;  %v8608_v48 = vpop.f32.mrb[163].mxu0  ;;  %8967 = vmatmul.mubr.msk.f32.gmra.mrb[12].mxu0 %vm391_vm3, %v4277_v3 }
 0x2b7   : > { %v8673_v30 = vpop.f32.mrb[163].mxu1  ;;  %9032 = vmatmul.mubr.msk.f32.gmra.mrb[12].mxu1 %vm391_vm3, %v4255_v44  ;;  %8969 = vmatprep.mubr.msk.f32.mxu0 %vm9629_vm0, %v9630_v6  ;;  %v4261_v48 = vld [vmem:[#allocation2 + $0x11d] sm:$0xff] }
 0x2b8   : > { %9034 = vmatprep.mubr.msk.f32.mxu1 %vm9629_vm0, %v9630_v6  ;;  %v11273_v58 = vadd.f32 %v2964_v57, %v2719_v34  ;;  %v4283_v34 = vld [vmem:[#allocation2 + $0x11e] sm:$0xff] }
 0x2b9   : > { %v2692_v14 = vpop.f32.mrb[164].mxu0 }
 0x2ba   : > { %v2969_v37 = vpop.f32.mrb[164].mxu1  ;;  %v2720_v9 = vadd.f32 %v2692_v14, %v11075_v16  ;;  %v8611_v2 = vpop.f32.mrb[165].mxu0  ;;  %8970 = vmatmul.mubr.msk.f32.gmra.mrb[14].mxu0 %vm391_vm3, %v4278_v26 }
 0x2bb   : > { %v8676_v38 = vpop.f32.mrb[165].mxu1  ;;  %9035 = vmatmul.mubr.msk.f32.gmra.mrb[14].mxu1 %vm391_vm3, %v4256_v62  ;;  %8972 = vmatprep.mubr.msk.f32.mxu0 %vm9629_vm0, %v9630_v6  ;;  %v4262_v2 = vld [vmem:[#allocation2 + $0x125] sm:$0xff] }
 0x2bc   : > { %9037 = vmatprep.mubr.msk.f32.mxu1 %vm9629_vm0, %v9630_v6  ;;  %v11282_v21 = vadd.f32 %v2969_v37, %v2720_v9  ;;  %v4284_v9 = vld [vmem:[#allocation2 + $0x126] sm:$0xff] }
 0x2bd   : > { %v2697_v63 = vpop.f32.mrb[166].mxu0 }
 0x2be   : > { %v2974_v0 = vpop.f32.mrb[166].mxu1  ;;  %v2721_v16 = vadd.f32 %v2697_v63, %v11085_v23  ;;  %v8614_v43 = vpop.f32.mrb[167].mxu0  ;;  %8973 = vmatmul.mubr.msk.f32.gmra.mrb[16].mxu0 %vm391_vm3, %v4279_v15 }
 0x2bf   : > { %v8679_v1 = vpop.f32.mrb[167].mxu1  ;;  %9038 = vmatmul.mubr.msk.f32.gmra.mrb[16].mxu1 %vm391_vm3, %v4257_v7  ;;  %8975 = vmatprep.mubr.msk.f32.mxu0 %vm9629_vm0, %v9630_v6  ;;  %v4263_v43 = vld [vmem:[#allocation2 + $0x12d] sm:$0xff] }
 0x2c0   : > { %9040 = vmatprep.mubr.msk.f32.mxu1 %vm9629_vm0, %v9630_v6  ;;  %v11291_v35 = vadd.f32 %v2974_v0, %v2721_v16  ;;  %v4285_v16 = vld [vmem:[#allocation2 + $0x12e] sm:$0xff] }
 0x2c1   : > { %v3151_v5 = vpop.f32.mrb[168].mxu0 }
 0x2c2   : > { %v3428_v56 = vpop.f32.mrb[168].mxu1  ;;  %v3255_v23 = vadd.f32 %v3151_v5, %v11095_v52  ;;  %v8684_v24 = vpop.f32.mrb[169].mxu0  ;;  %8976 = vmatmul.mubr.msk.f32.gmra.mrb[18].mxu0 %vm391_vm3, %v4280_v31 }
 0x2c3   : > { %v8749_v50 = vpop.f32.mrb[169].mxu1  ;;  %9041 = vmatmul.mubr.msk.f32.gmra.mrb[18].mxu1 %vm391_vm3, %v4258_v49  ;;  %8978 = vmatprep.mubr.msk.f32.mxu0 %vm9629_vm0, %v9630_v6  ;;  %v4264_v24 = vld [vmem:[#allocation2 + $0x135] sm:$0xff] }
 0x2c4   : > { %9043 = vmatprep.mubr.msk.f32.mxu1 %vm9629_vm0, %v9630_v6  ;;  %v11300_v42 = vadd.f32 %v3428_v56, %v3255_v23  ;;  %v4286_v23 = vld [vmem:[#allocation2 + $0x136] sm:$0xff] }
 0x2c5   : > { %v3156_v59 = vpop.f32.mrb[170].mxu0 }
 0x2c6   : > { %v3433_v10 = vpop.f32.mrb[170].mxu1  ;;  %v3256_v52 = vadd.f32 %v3156_v59, %v11105_v32  ;;  %v8687_v20 = vpop.f32.mrb[171].mxu0  ;;  %8979 = vmatmul.mubr.msk.f32.gmra.mrb[20].mxu0 %vm391_vm3, %v4281_v39 }
 0x2c7   : > { %v8752_v54 = vpop.f32.mrb[171].mxu1  ;;  %9044 = vmatmul.mubr.msk.f32.gmra.mrb[20].mxu1 %vm391_vm3, %v4259_v53  ;;  %8981 = vmatprep.mubr.msk.f32.mxu0 %vm9629_vm0, %v9630_v6  ;;  %v4265_v20 = vld [vmem:[#allocation2 + $0x13d] sm:$0xff] }
 0x2c8   : > { %9046 = vmatprep.mubr.msk.f32.mxu1 %vm9629_vm0, %v9630_v6  ;;  %v11309_v60 = vadd.f32 %v3433_v10, %v3256_v52  ;;  %v4287_v52 = vld [vmem:[#allocation2 + $0x13e] sm:$0xff] }
 0x2c9   : > { %v3161_v4 = vpop.f32.mrb[172].mxu0 }
 0x2ca   : > { %v3438_v41 = vpop.f32.mrb[172].mxu1  ;;  %v3257_v32 = vadd.f32 %v3161_v4, %v11115_v22  ;;  %v8690_v25 = vpop.f32.mrb[173].mxu0  ;;  %8982 = vmatmul.mubr.msk.f32.gmra.mrb[22].mxu0 %vm391_vm3, %v4282_v12 }
 0x2cb   : > { %v8755_v29 = vpop.f32.mrb[173].mxu1  ;;  %9047 = vmatmul.mubr.msk.f32.gmra.mrb[22].mxu1 %vm391_vm3, %v4260_v36  ;;  %8984 = vmatprep.mubr.msk.f32.mxu0 %vm9629_vm0, %v9630_v6  ;;  %v4266_v25 = vld [vmem:[#allocation2 + $0x145] sm:$0xff] }
 0x2cc   : > { %9049 = vmatprep.mubr.msk.f32.mxu1 %vm9629_vm0, %v9630_v6  ;;  %v11318_v57 = vadd.f32 %v3438_v41, %v3257_v32  ;;  %v4288_v32 = vld [vmem:[#allocation2 + $0x146] sm:$0xff] }
 0x2cd   : > { %v3166_v3 = vpop.f32.mrb[174].mxu0 }
 0x2ce   : > { %v3443_v44 = vpop.f32.mrb[174].mxu1  ;;  %v3258_v22 = vadd.f32 %v3166_v3, %v11125_v27  ;;  %v8693_v30 = vpop.f32.mrb[175].mxu0  ;;  %8985 = vmatmul.mubr.msk.f32.gmra.mrb[24].mxu0 %vm391_vm3, %v4283_v34 }
 0x2cf   : > { %v8758_v14 = vpop.f32.mrb[175].mxu1  ;;  %9050 = vmatmul.mubr.msk.f32.gmra.mrb[24].mxu1 %vm391_vm3, %v4261_v48  ;;  %8987 = vmatprep.mubr.msk.f32.mxu0 %vm9629_vm0, %v9630_v6  ;;  %v4267_v30 = vld [vmem:[#allocation2 + $0x14d] sm:$0xff] }
 0x2d0   : > { %9052 = vmatprep.mubr.msk.f32.mxu1 %vm9629_vm0, %v9630_v6  ;;  %v11327_v37 = vadd.f32 %v3443_v44, %v3258_v22  ;;  %v4289_v22 = vld [vmem:[#allocation2 + $0x14e] sm:$0xff] }
 0x2d1   : > { %v3171_v26 = vpop.f32.mrb[176].mxu0 }
 0x2d2   : > { %v3448_v62 = vpop.f32.mrb[176].mxu1  ;;  %v3259_v27 = vadd.f32 %v3171_v26, %v11135_v47  ;;  %v8696_v38 = vpop.f32.mrb[177].mxu0  ;;  %8988 = vmatmul.mubr.msk.f32.gmra.mrb[26].mxu0 %vm391_vm3, %v4284_v9 }
 0x2d3   : > { %v8761_v63 = vpop.f32.mrb[177].mxu1  ;;  %9053 = vmatmul.mubr.msk.f32.gmra.mrb[26].mxu1 %vm391_vm3, %v4262_v2  ;;  %8990 = vmatprep.mubr.msk.f32.mxu0 %vm9629_vm0, %v9630_v6  ;;  %v5033_v38 = vld [vmem:[#allocation2 + $0xbf] sm:$0xff] }
 0x2d4   : > { %9055 = vmatprep.mubr.msk.f32.mxu1 %vm9629_vm0, %v9630_v6  ;;  %v11336_v0 = vadd.f32 %v3448_v62, %v3259_v27  ;;  %v7518_v62 = vld [vmem:[%s12595_s5 + $0x20] sm:$0xff]  ;;  %v4757_v27 = vld [vmem:[#allocation2 + $0xaf] sm:$0xff] }
 0x2d5   : > { %v3176_v15 = vpop.f32.mrb[178].mxu0  ;;  %v7540_v63 = vld [vmem:[%s12595_s5 + $0x28] sm:$0xff] }
 0x2d6   : > { %v3453_v7 = vpop.f32.mrb[178].mxu1  ;;  %v3260_v47 = vadd.f32 %v3176_v15, %v11145_v45  ;;  %v8699_v1 = vpop.f32.mrb[179].mxu0  ;;  %8991 = vmatmul.mubr.msk.f32.gmra.mrb[28].mxu0 %vm391_vm3, %v4285_v16 }
 0x2d7   : > { %v8764_v5 = vpop.f32.mrb[179].mxu1  ;;  %9056 = vmatmul.mubr.msk.f32.gmra.mrb[28].mxu1 %vm391_vm3, %v4263_v43  ;;  %8993 = vmatprep.mubr.msk.f32.mxu0 %vm9629_vm0, %v9630_v6 }
 0x2d8   : > { %9058 = vmatprep.mubr.msk.f32.mxu1 %vm9629_vm0, %v9630_v6  ;;  %v11345_v56 = vadd.f32 %v3453_v7, %v3260_v47  ;;  %v4758_v5 = vld [vmem:[#allocation2 + $0xb7] sm:$0xff] }
 0x2d9   : > { %v3181_v31 = vpop.f32.mrb[180].mxu0 }
 0x2da   : > { %v3458_v49 = vpop.f32.mrb[180].mxu1  ;;  %v3261_v45 = vadd.f32 %v3181_v31, %v11155_v55  ;;  %v8702_v50 = vpop.f32.mrb[181].mxu0  ;;  %8994 = vmatmul.mubr.msk.f32.gmra.mrb[30].mxu0 %vm391_vm3, %v4286_v23 }
 0x2db   : > { %v8767_v59 = vpop.f32.mrb[181].mxu1  ;;  %9059 = vmatmul.mubr.msk.f32.gmra.mrb[30].mxu1 %vm391_vm3, %v4264_v24  ;;  %8996 = vmatprep.mubr.msk.f32.mxu0 %vm9629_vm0, %v9630_v6 }
 0x2dc   : > { %9061 = vmatprep.mubr.msk.f32.mxu1 %vm9629_vm0, %v9630_v6  ;;  %v11354_v10 = vadd.f32 %v3458_v49, %v3261_v45  ;;  %v5035_v59 = vld [vmem:[#allocation2 + $0xcf] sm:$0xff] }
 0x2dd   : > { %v3186_v39 = vpop.f32.mrb[182].mxu0 }
 0x2de   : > { %v3463_v53 = vpop.f32.mrb[182].mxu1  ;;  %v3262_v55 = vadd.f32 %v3186_v39, %v11165_v46  ;;  %v8705_v54 = vpop.f32.mrb[183].mxu0  ;;  %8997 = vmatmul.mubr.msk.f32.gmra.mrb[32].mxu0 %vm391_vm3, %v4287_v52 }
 0x2df   : > { %v8770_v4 = vpop.f32.mrb[183].mxu1  ;;  %9062 = vmatmul.mubr.msk.f32.gmra.mrb[32].mxu1 %vm391_vm3, %v4265_v20  ;;  %8999 = vmatprep.mubr.msk.f32.mxu0 %vm9629_vm0, %v9630_v6  ;;  %v5036_v54 = vld [vmem:[#allocation2 + $0xd7] sm:$0xff] }
 0x2e0   : > { %9064 = vmatprep.mubr.msk.f32.mxu1 %vm9629_vm0, %v9630_v6  ;;  %v11363_v41 = vadd.f32 %v3463_v53, %v3262_v55 }
 0x2e1   : > { %v3191_v12 = vpop.f32.mrb[184].mxu0 }
 0x2e2   : > { %v3468_v36 = vpop.f32.mrb[184].mxu1  ;;  %v3263_v46 = vadd.f32 %v3191_v12, %v11175_v18  ;;  %v8708_v29 = vpop.f32.mrb[185].mxu0  ;;  %9000 = vmatmul.mubr.msk.f32.gmra.mrb[34].mxu0 %vm391_vm3, %v4288_v32 }
 0x2e3   : > { %v8773_v3 = vpop.f32.mrb[185].mxu1  ;;  %9065 = vmatmul.mubr.msk.f32.gmra.mrb[34].mxu1 %vm391_vm3, %v4266_v25  ;;  %9002 = vmatprep.mubr.msk.f32.mxu0 %vm9629_vm0, %v9630_v6 }
 0x2e4   : > { %9067 = vmatprep.mubr.msk.f32.mxu1 %vm9629_vm0, %v9630_v6  ;;  %v11372_v44 = vadd.f32 %v3468_v36, %v3263_v46  ;;  %v5037_v46 = vld [vmem:[#allocation2 + $0xdf] sm:$0xff] }
 0x2e5   : > { %v3196_v34 = vpop.f32.mrb[186].mxu0 }
 0x2e6   : > { %v3473_v48 = vpop.f32.mrb[186].mxu1  ;;  %v3264_v18 = vadd.f32 %v3196_v34, %v11184_v11  ;;  %v8711_v14 = vpop.f32.mrb[187].mxu0  ;;  %9003 = vmatmul.mubr.msk.f32.gmra.mrb[36].mxu0 %vm391_vm3, %v4289_v22 }
 0x2e7   : > { %v8776_v26 = vpop.f32.mrb[187].mxu1  ;;  %9068 = vmatmul.mubr.msk.f32.gmra.mrb[36].mxu1 %vm391_vm3, %v4267_v30  ;;  %9072 = vmatprep.mubr.msk.f32.mxu0 %vm9629_vm0, %v9630_v6  ;;  %v5038_v30 = vld [vmem:[#allocation2 + $0xe7] sm:$0xff] }
 0x2e8   : > { %9137 = vmatprep.mubr.msk.f32.mxu1 %vm9629_vm0, %v9630_v6  ;;  %v11384_v9 = vadd.f32 %v3473_v48, %v3264_v18 }
 0x2e9   : > { %v3201_v2 = vpop.f32.mrb[188].mxu0 }
 0x2ea   : > { %v3478_v11 = vpop.f32.mrb[188].mxu1  ;;  %v3265_v15 = vadd.f32 %v3201_v2, %v11197_v17  ;;  %v8714_v7 = vpop.f32.mrb[189].mxu0  ;;  %9073 = vmatmul.mubr.msk.f32.vlgmr.msra.gmra.mrb[38].mxu0 %vm391_vm3, %v4757_v27  ;;  %v5034_v17 = vld [vmem:[#allocation2 + $0xc7] sm:$0xff] }
 0x2eb   : > { %v8779_v16 = vpop.f32.mrb[189].mxu1  ;;  %9138 = vmatmul.mubr.msk.f32.vlgmr.msra.gmra.mrb[38].mxu1 %vm391_vm3, %v5033_v38  ;;  %9201 = vmatpush3.msra.mxu0 %v7518_v62 }
 0x2ec   : > { %9075 = vmatprep.mubr.msk.f32.mxu0 %vm9629_vm0, %v9630_v6  ;;  %9140 = vmatprep.mubr.msk.f32.mxu1 %vm9629_vm0, %v9630_v6  ;;  %v11396_v43 = vadd.f32 %v3478_v11, %v3265_v15  ;;  %v5039_v11 = vld [vmem:[#allocation2 + $0xef] sm:$0xff]  ;;  %v5040_v16 = vld [vmem:[#allocation2 + $0xf7] sm:$0xff] }
 0x2ed   : > { %9266 = vmatpush3.msra.mxu1 %v7540_v63  ;;  %v3206_v47 = vpop.f32.mrb[190].mxu0  ;;  %9330 = vmatprep.subr.mxu0 %v9630_v6 }
 0x2ee   : > { %v3483_v1 = vpop.f32.mrb[190].mxu1  ;;  %9395 = vmatprep.subr.mxu1 %v9630_v6  ;;  %v3266_v31 = vadd.f32 %v3206_v47, %v11210_v40  ;;  %v8717_v49 = vpop.f32.mrb[191].mxu0  ;;  %9076 = vmatmul.mubr.msk.f32.gmra.mrb[40].mxu0 %vm391_vm3, %v4758_v5 }
 0x2ef   : > { %v8782_v23 = vpop.f32.mrb[191].mxu1  ;;  %9141 = vmatmul.mubr.msk.f32.gmra.mrb[40].mxu1 %vm391_vm3, %v5034_v17  ;;  %9078 = vmatprep.mubr.msk.f32.mxu0 %vm9629_vm0, %v9630_v6  ;;  %v5041_v49 = vld [vmem:[#allocation2 + $0xff] sm:$0xff] }
 0x2f0   : > { %9143 = vmatprep.mubr.msk.f32.mxu1 %vm9629_vm0, %v9630_v6  ;;  %v11407_v24 = vadd.f32 %v3483_v1, %v3266_v31 }
 0x2f1   : > { %v3211_v45 = vpop.f32.mrb[192].mxu0 }
 0x2f2   : > { %v3488_v50 = vpop.f32.mrb[192].mxu1  ;;  %v3267_v39 = vadd.f32 %v3211_v45, %v11219_v33  ;;  %v8720_v40 = vpop.f32.mrb[193].mxu0  ;;  %9079 = vmatmul.mubr.msk.f32.gmra.mrb[42].mxu0 %vm391_vm3, %v5033_v38 }
 0x2f3   : > { %v8785_v53 = vpop.f32.mrb[193].mxu1  ;;  %9144 = vmatmul.mubr.msk.f32.gmra.mrb[42].mxu1 %vm391_vm3, %v5035_v59  ;;  %9081 = vmatprep.mubr.msk.f32.mxu0 %vm9629_vm0, %v9630_v6  ;;  %v5042_v40 = vld [vmem:[#allocation2 + $0x107] sm:$0xff] }
 0x2f4   : > { %9146 = vmatprep.mubr.msk.f32.mxu1 %vm9629_vm0, %v9630_v6  ;;  %v11416_v52 = vadd.f32 %v3488_v50, %v3267_v39 }
 0x2f5   : > { %v3216_v20 = vpop.f32.mrb[194].mxu0 }
 0x2f6   : > { %v3493_v55 = vpop.f32.mrb[194].mxu1  ;;  %v3268_v4 = vadd.f32 %v3216_v20, %v11228_v51  ;;  %v8723_v33 = vpop.f32.mrb[195].mxu0  ;;  %9082 = vmatmul.mubr.msk.f32.gmra.mrb[44].mxu0 %vm391_vm3, %v5034_v17 }
 0x2f7   : > { %v8788_v12 = vpop.f32.mrb[195].mxu1  ;;  %9147 = vmatmul.mubr.msk.f32.gmra.mrb[44].mxu1 %vm391_vm3, %v5036_v54  ;;  %9084 = vmatprep.mubr.msk.f32.mxu0 %vm9629_vm0, %v9630_v6  ;;  %v5043_v33 = vld [vmem:[#allocation2 + $0x10f] sm:$0xff] }
 0x2f8   : > { %9149 = vmatprep.mubr.msk.f32.mxu1 %vm9629_vm0, %v9630_v6  ;;  %v11425_v36 = vadd.f32 %v3493_v55, %v3268_v4 }
 0x2f9   : > { %v3221_v32 = vpop.f32.mrb[196].mxu0 }
 0x2fa   : > { %v3498_v25 = vpop.f32.mrb[196].mxu1  ;;  %v3269_v29 = vadd.f32 %v3221_v32, %v11237_v8  ;;  %v8726_v51 = vpop.f32.mrb[197].mxu0  ;;  %9085 = vmatmul.mubr.msk.f32.gmra.mrb[46].mxu0 %vm391_vm3, %v5035_v59 }
 0x2fb   : > { %v8791_v3 = vpop.f32.mrb[197].mxu1  ;;  %9150 = vmatmul.mubr.msk.f32.gmra.mrb[46].mxu1 %vm391_vm3, %v5037_v46  ;;  %9087 = vmatprep.mubr.msk.f32.mxu0 %vm9629_vm0, %v9630_v6 }
 0x2fc   : > { %9152 = vmatprep.mubr.msk.f32.mxu1 %vm9629_vm0, %v9630_v6  ;;  %v11434_v34 = vadd.f32 %v3498_v25, %v3269_v29  ;;  %v5044_v29 = vld [vmem:[#allocation2 + $0x117] sm:$0xff] }
 0x2fd   : > { %v3226_v48 = vpop.f32.mrb[198].mxu0 }
 0x2fe   : > { %v3503_v22 = vpop.f32.mrb[198].mxu1  ;;  %v3270_v18 = vadd.f32 %v3226_v48, %v11246_v13  ;;  %v8729_v8 = vpop.f32.mrb[199].mxu0  ;;  %9088 = vmatmul.mubr.msk.f32.gmra.mrb[48].mxu0 %vm391_vm3, %v5036_v54 }
 0x2ff   : > { %v8794_v14 = vpop.f32.mrb[199].mxu1  ;;  %9153 = vmatmul.mubr.msk.f32.gmra.mrb[48].mxu1 %vm391_vm3, %v5038_v30  ;;  %9090 = vmatprep.mubr.msk.f32.mxu0 %vm9629_vm0, %v9630_v6  ;;  %v5045_v8 = vld [vmem:[#allocation2 + $0x11f] sm:$0xff] }
 0x300   : > { %9155 = vmatprep.mubr.msk.f32.mxu1 %vm9629_vm0, %v9630_v6  ;;  %v11443_v26 = vadd.f32 %v3503_v22, %v3270_v18  ;;  %v11506_v18 = vld [vmem:[%s12598_s8] ss:$0 sm:$0xff] }
 0x301   : > { %v3231_v62 = vpop.f32.mrb[200].mxu0 }
 0x302   : > { %v3508_v2 = vpop.f32.mrb[200].mxu1  ;;  %v3271_v27 = vadd.f32 %v3231_v62, %v11255_v19  ;;  %v8732_v13 = vpop.f32.mrb[201].mxu0  ;;  %9091 = vmatmul.mubr.msk.f32.gmra.mrb[50].mxu0 %vm391_vm3, %v5037_v46 }
 0x303   : > { %v8797_v38 = vpop.f32.mrb[201].mxu1  ;;  %9156 = vmatmul.mubr.msk.f32.gmra.mrb[50].mxu1 %vm391_vm3, %v5039_v11  ;;  %9093 = vmatprep.mubr.msk.f32.mxu0 %vm9629_vm0, %v9630_v6 }
 0x304   : > { %9158 = vmatprep.mubr.msk.f32.mxu1 %vm9629_vm0, %v9630_v6  ;;  %v11452_v63 = vadd.f32 %v3508_v2, %v3271_v27 }
 0x305   : > { %v3236_v15 = vpop.f32.mrb[202].mxu0 }
 0x306   : > { %v3513_v7 = vpop.f32.mrb[202].mxu1  ;;  %v3272_v47 = vadd.f32 %v3236_v15, %v11264_v28  ;;  %v8735_v19 = vpop.f32.mrb[203].mxu0  ;;  %9094 = vmatmul.mubr.msk.f32.gmra.mrb[52].mxu0 %vm391_vm3, %v5038_v30 }
 0x307   : > { %v8800_v1 = vpop.f32.mrb[203].mxu1  ;;  %9159 = vmatmul.mubr.msk.f32.gmra.mrb[52].mxu1 %vm391_vm3, %v5040_v16  ;;  %9096 = vmatprep.mubr.msk.f32.mxu0 %vm9629_vm0, %v9630_v6 }
 0x308   : > { %9161 = vmatprep.mubr.msk.f32.mxu1 %vm9629_vm0, %v9630_v6  ;;  %v11461_v5 = vadd.f32 %v3513_v7, %v3272_v47  ;;  %v5046_v7 = vld [vmem:[#allocation2 + $0x127] sm:$0xff] }
 0x309   : > { %v3241_v17 = vpop.f32.mrb[204].mxu0 }
 0x30a   : > { %v3518_v31 = vpop.f32.mrb[204].mxu1  ;;  %v3273_v23 = vadd.f32 %v3241_v17, %v11273_v58  ;;  %v8738_v28 = vpop.f32.mrb[205].mxu0  ;;  %9097 = vmatmul.mubr.msk.f32.gmra.mrb[54].mxu0 %vm391_vm3, %v5039_v11 }
 0x30b   : > { %v8803_v45 = vpop.f32.mrb[205].mxu1  ;;  %9162 = vmatmul.mubr.msk.f32.gmra.mrb[54].mxu1 %vm391_vm3, %v5041_v49  ;;  %9099 = vmatprep.mubr.msk.f32.mxu0 %vm9629_vm0, %v9630_v6 }
 0x30c   : > { %9164 = vmatprep.mubr.msk.f32.mxu1 %vm9629_vm0, %v9630_v6  ;;  %v11470_v50 = vadd.f32 %v3518_v31, %v3273_v23 }
 0x30d   : > { %v3246_v59 = vpop.f32.mrb[206].mxu0 }
 0x30e   : > { %v3523_v39 = vpop.f32.mrb[206].mxu1  ;;  %v3274_v53 = vadd.f32 %v3246_v59, %v11282_v21  ;;  %v8741_v58 = vpop.f32.mrb[207].mxu0  ;;  %9100 = vmatmul.mubr.msk.f32.gmra.mrb[56].mxu0 %vm391_vm3, %v5040_v16 }
 0x30f   : > { %v8806_v20 = vpop.f32.mrb[207].mxu1  ;;  %9165 = vmatmul.mubr.msk.f32.gmra.mrb[56].mxu1 %vm391_vm3, %v5042_v40  ;;  %9102 = vmatprep.mubr.msk.f32.mxu0 %vm9629_vm0, %v9630_v6  ;;  %v5047_v58 = vld [vmem:[#allocation2 + $0x12f] sm:$0xff] }
 0x310   : > { %9167 = vmatprep.mubr.msk.f32.mxu1 %vm9629_vm0, %v9630_v6  ;;  %v11479_v55 = vadd.f32 %v3523_v39, %v3274_v53 }
 0x311   : > { %v3251_v54 = vpop.f32.mrb[208].mxu0 }
 0x312   : > { %v3528_v4 = vpop.f32.mrb[208].mxu1  ;;  %v3275_v12 = vadd.f32 %v3251_v54, %v11291_v35  ;;  %v8744_v21 = vpop.f32.mrb[209].mxu0  ;;  %9103 = vmatmul.mubr.msk.f32.gmra.mrb[58].mxu0 %vm391_vm3, %v5041_v49  ;;  %v11493_v35 = vld [vmem:[%s12596_s6] ss:$0 sm:$0xff] }
 0x313   : > { %v8809_v32 = vpop.f32.mrb[209].mxu1  ;;  %9168 = vmatmul.mubr.msk.f32.gmra.mrb[58].mxu1 %vm391_vm3, %v5043_v33  ;;  %9105 = vmatprep.mubr.msk.f32.mxu0 %vm9629_vm0, %v9630_v6 }
 0x314   : > { %9170 = vmatprep.mubr.msk.f32.mxu1 %vm9629_vm0, %v9630_v6  ;;  %v11488_v25 = vadd.f32 %v3528_v4, %v3275_v12 }
 0x315   : > { %v3705_v46 = vpop.f32.mrb[210].mxu0 }
 0x316   : > { %v3984_v51 = vpop.f32.mrb[210].mxu1  ;;  %v3809_v3 = vadd.f32 %v3705_v46, %v11300_v42  ;;  %v8814_v48 = vpop.f32.mrb[211].mxu0  ;;  %9106 = vmatmul.mubr.msk.f32.gmra.mrb[60].mxu0 %vm391_vm3, %v5042_v40 }
 0x317   : > { %9171 = vmatmul.mubr.msk.f32.gmra.mrb[60].mxu1 %vm391_vm3, %v5044_v29  ;;  %v8879_v22 = vpop.f32.mrb[211].mxu1  ;;  %9108 = vmatprep.mubr.msk.f32.mxu0 %vm9629_vm0, %v9630_v6 }
 0x318   : > { %9173 = vmatprep.mubr.msk.f32.mxu1 %vm9629_vm0, %v9630_v6  ;;  %v4094_v30 = vadd.f32 %v11493_v35, %v3809_v3  ;;  %v5048_v3 = vld [vmem:[#allocation2 + $0x137] sm:$0xff] }
 0x319   : > { %v3710_v42 = vpop.f32.mrb[212].mxu0 }
 0x31a   : > { %v3989_v14 = vpop.f32.mrb[212].mxu1  ;;  %v4115_v62 = vadd.f32 %v4094_v30, %v3984_v51  ;;  %v3810_v2 = vadd.f32 %v3710_v42, %v11309_v60  ;;  %v8817_v11 = vpop.f32.mrb[213].mxu0  ;;  %9109 = vmatmul.mubr.msk.f32.gmra.mrb[62].mxu0 %vm391_vm3, %v5043_v33 }
 0x31b   : > { %9174 = vmatmul.mubr.msk.f32.gmra.mrb[62].mxu1 %vm391_vm3, %v5045_v8  ;;  %v8882_v27 = vpop.f32.mrb[213].mxu1  ;;  %9111 = vmatprep.mubr.msk.f32.mxu0 %vm9629_vm0, %v9630_v6 }
 0x31c   : > { %9176 = vmatprep.mubr.msk.f32.mxu1 %vm9629_vm0, %v9630_v6  ;;  %v4142_v13 = vadd.f32 %v11506_v18, %v4115_v62  ;;  %v4095_v38 = vadd.f32 %v11493_v35, %v3810_v2 }
 0x31d   : > { %v3715_v15 = vpop.f32.mrb[214].mxu0 }
 0x31e   : > { %v3994_v60 = vpop.f32.mrb[214].mxu1  ;;  %v4163_v16 = vsub.f32 %v4142_v13, %v10106_v61  ;;  %v4116_v47 = vadd.f32 %v4095_v38, %v3989_v14  ;;  %v3811_v19 = vadd.f32 %v3715_v15, %v11318_v57  ;;  %v8820_v1 = vpop.f32.mrb[215].mxu0  ;;  %9112 = vmatmul.mubr.msk.f32.gmra.mrb[64].mxu0 %vm391_vm3, %v5044_v29  ;;  %v5049_v13 = vld [vmem:[#allocation2 + $0x13f] sm:$0xff] }
 0x31f   : > { %9177 = vmatmul.mubr.msk.f32.gmra.mrb[64].mxu1 %vm391_vm3, %v5046_v7  ;;  %v8885_v17 = vpop.f32.mrb[215].mxu1  ;;  %9114 = vmatprep.mubr.msk.f32.mxu0 %vm9629_vm0, %v9630_v6 }
 0x320   : > { %9179 = vmatprep.mubr.msk.f32.mxu1 %vm9629_vm0, %v9630_v6  ;;  %v4184_v31 = vmax.f32 %v4163_v16, 0.0  ;;  %v4143_v49 = vadd.f32 %v11506_v18, %v4116_v47  ;;  %v4096_v23 = vadd.f32 %v11493_v35, %v3811_v19 }
 0x321   : > { %v3720_v57 = vpop.f32.mrb[216].mxu0 }
 0x322   : > { %v3999_v28 = vpop.f32.mrb[216].mxu1  ;;  %v4205_v45 = vadd.f32 %v4184_v31, %v10106_v61  ;;  %v4164_v59 = vsub.f32 %v4143_v49, %v10106_v61  ;;  %v4117_v39 = vadd.f32 %v4096_v23, %v3994_v60  ;;  %v3812_v40 = vadd.f32 %v3720_v57, %v11327_v37  ;;  %v8823_v53 = vpop.f32.mrb[217].mxu0  ;;  %9115 = vmatmul.mubr.msk.f32.gmra.mrb[66].mxu0 %vm391_vm3, %v5045_v8  ;;  %v5050_v49 = vld [vmem:[#allocation2 + $0x147] sm:$0xff] }
 0x323   : > { %v8888_v20 = vpop.f32.mrb[217].mxu1  ;;  %9180 = vmatmul.mubr.msk.f32.gmra.mrb[66].mxu1 %vm391_vm3, %v5047_v58  ;;  %9117 = vmatprep.mubr.msk.f32.mxu0 %vm9629_vm0, %v9630_v6 }
 0x324   : > { %4226 = vst.msk [vmem:[%s11531_s29] sm:$0xff] %vm391_vm3, %v4205_v45  ;;  %v4185_v54 = vmax.f32 %v4164_v59, 0.0  ;;  %v4144_v4 = vadd.f32 %v11506_v18, %v4117_v39  ;;  %v4097_v33 = vadd.f32 %v11493_v35, %v3812_v40  ;;  %9182 = vmatprep.mubr.msk.f32.mxu1 %vm9629_vm0, %v9630_v6 }
 0x325   : > { %v3725_v37 = vpop.f32.mrb[218].mxu0 }
 0x326   : > { %v4004_v12 = vpop.f32.mrb[218].mxu1  ;;  %v4206_v21 = vadd.f32 %v4185_v54, %v10106_v61  ;;  %v4165_v32 = vsub.f32 %v4144_v4, %v10106_v61  ;;  %v4118_v46 = vadd.f32 %v4097_v33, %v3999_v28  ;;  %v3813_v29 = vadd.f32 %v3725_v37, %v11336_v0  ;;  %v8826_v51 = vpop.f32.mrb[219].mxu0  ;;  %9118 = vmatmul.mubr.msk.f32.gmra.mrb[68].mxu0 %vm391_vm3, %v5046_v7  ;;  %v5051_v54 = vld [vmem:[#allocation2 + $0x14f] sm:$0xff] }
 0x327   : > { %v8891_v48 = vpop.f32.mrb[219].mxu1  ;;  %9183 = vmatmul.mubr.msk.f32.gmra.mrb[68].mxu1 %vm391_vm3, %v5048_v3  ;;  %9120 = vmatprep.mubr.msk.f32.mxu0 %vm9629_vm0, %v9630_v6 }
 0x328   : > { %4227 = vst.msk [vmem:[%s11531_s29 + $0x8] sm:$0xff] %vm391_vm3, %v4206_v21  ;;  %v4186_v22 = vmax.f32 %v4165_v32, 0.0  ;;  %v4145_v30 = vadd.f32 %v11506_v18, %v4118_v46  ;;  %v4098_v42 = vadd.f32 %v11493_v35, %v3813_v29  ;;  %9185 = vmatprep.mubr.msk.f32.mxu1 %vm9629_vm0, %v9630_v6  ;;  %v5052_v48 = vld [vmem:[#allocation2 + $0x157] sm:$0xff] }
 0x329   : > { %v3730_v0 = vpop.f32.mrb[220].mxu0 }
 0x32a   : > { %v4009_v8 = vpop.f32.mrb[220].mxu1  ;;  %v4207_v14 = vadd.f32 %v4186_v22, %v10106_v61  ;;  %v4166_v62 = vsub.f32 %v4145_v30, %v10106_v61  ;;  %v4119_v2 = vadd.f32 %v4098_v42, %v4004_v12  ;;  %v3814_v11 = vadd.f32 %v3730_v0, %v11345_v56  ;;  %v8829_v27 = vpop.f32.mrb[221].mxu0  ;;  %9121 = vmatmul.mubr.msk.f32.gmra.mrb[70].mxu0 %vm391_vm3, %v5047_v58 }
 0x32b   : > { %v8894_v38 = vpop.f32.mrb[221].mxu1  ;;  %9186 = vmatmul.mubr.msk.f32.gmra.mrb[70].mxu1 %vm391_vm3, %v5049_v13  ;;  %9123 = vmatprep.mubr.msk.f32.mxu0 %vm9629_vm0, %v9630_v6 }
 0x32c   : > { %4228 = vst.msk [vmem:[%s11531_s29 + $0x10] sm:$0xff] %vm391_vm3, %v4207_v14  ;;  %v4187_v15 = vmax.f32 %v4166_v62, 0.0  ;;  %v4146_v7 = vadd.f32 %v11506_v18, %v4119_v2  ;;  %v4099_v60 = vadd.f32 %v11493_v35, %v3814_v11  ;;  %9188 = vmatprep.mubr.msk.f32.mxu1 %vm9629_vm0, %v9630_v6 }
 0x32d   : > { %v3735_v56 = vpop.f32.mrb[222].mxu0 }
 0x32e   : > { %v4014_v16 = vpop.f32.mrb[222].mxu1  ;;  %v4208_v47 = vadd.f32 %v4187_v15, %v10106_v61  ;;  %v4167_v19 = vsub.f32 %v4146_v7, %v10106_v61  ;;  %v4120_v1 = vadd.f32 %v4099_v60, %v4009_v8  ;;  %v3815_v17 = vadd.f32 %v3735_v56, %v11354_v10  ;;  %v8832_v31 = vpop.f32.mrb[223].mxu0  ;;  %9124 = vmatmul.mubr.msk.f32.gmra.mrb[72].mxu0 %vm391_vm3, %v5048_v3 }
 0x32f   : > { %v8897_v23 = vpop.f32.mrb[223].mxu1  ;;  %9189 = vmatmul.mubr.msk.f32.gmra.mrb[72].mxu1 %vm391_vm3, %v5050_v49  ;;  %9126 = vmatprep.mubr.msk.f32.mxu0 %vm9629_vm0, %v9630_v6 }
 0x330   : > { %4229 = vst.msk [vmem:[%s11531_s29 + $0x18] sm:$0xff] %vm391_vm3, %v4208_v47  ;;  %v4188_v57 = vmax.f32 %v4167_v19, 0.0  ;;  %v4147_v28 = vadd.f32 %v11506_v18, %v4120_v1  ;;  %v4100_v45 = vadd.f32 %v11493_v35, %v3815_v17  ;;  %9191 = vmatprep.mubr.msk.f32.mxu1 %vm9629_vm0, %v9630_v6  ;;  %v5585_v23 = vld [vmem:[#allocation2 + $0xc1] sm:$0xff] }
 0x331   : > { %v3740_v10 = vpop.f32.mrb[224].mxu0 }
 0x332   : > { %v4019_v59 = vpop.f32.mrb[224].mxu1  ;;  %v4209_v39 = vadd.f32 %v4188_v57, %v10106_v61  ;;  %v4168_v40 = vsub.f32 %v4147_v28, %v10106_v61  ;;  %v4121_v53 = vadd.f32 %v4100_v45, %v4014_v16  ;;  %v3816_v58 = vadd.f32 %v3740_v10, %v11363_v41  ;;  %v8835_v20 = vpop.f32.mrb[225].mxu0  ;;  %9127 = vmatmul.mubr.msk.f32.gmra.mrb[74].mxu0 %vm391_vm3, %v5049_v13  ;;  %v5053_v13 = vld [vmem:[#allocation2 + $0x15f] sm:$0xff] }
 0x333   : > { %v8900_v4 = vpop.f32.mrb[225].mxu1  ;;  %9192 = vmatmul.mubr.msk.f32.gmra.mrb[74].mxu1 %vm391_vm3, %v5051_v54  ;;  %9129 = vmatprep.mubr.msk.f32.mxu0 %vm9629_vm0, %v9630_v6  ;;  %v5309_v16 = vld [vmem:[#allocation2 + $0xc0] sm:$0xff]  ;;  %v7584_v28 = vld [vmem:[%s12595_s5 + $0x38] sm:$0xff] }
 0x334   : > { %4230 = vst.msk [vmem:[%s11531_s29 + $0x20] sm:$0xff] %vm391_vm3, %v4209_v39  ;;  %v4189_v33 = vmax.f32 %v4168_v40, 0.0  ;;  %v4148_v37 = vadd.f32 %v11506_v18, %v4121_v53  ;;  %v4101_v12 = vadd.f32 %v11493_v35, %v3816_v58  ;;  %9194 = vmatprep.mubr.msk.f32.mxu1 %vm9629_vm0, %v9630_v6  ;;  %v5310_v39 = vld [vmem:[#allocation2 + $0xc8] sm:$0xff] }
 0x335   : > { %v3745_v41 = vpop.f32.mrb[226].mxu0 }
 0x336   : > { %v4024_v21 = vpop.f32.mrb[226].mxu1  ;;  %v4210_v32 = vadd.f32 %v4189_v33, %v10106_v61  ;;  %v4169_v46 = vsub.f32 %v4148_v37, %v10106_v61  ;;  %v4122_v29 = vadd.f32 %v4101_v12, %v4019_v59  ;;  %v3817_v51 = vadd.f32 %v3745_v41, %v11372_v44  ;;  %v8838_v3 = vpop.f32.mrb[227].mxu0  ;;  %9130 = vmatmul.mubr.msk.f32.gmra.mrb[76].mxu0 %vm391_vm3, %v5050_v49  ;;  %v5586_v33 = vld [vmem:[#allocation2 + $0xc9] sm:$0xff] }
 0x337   : > { %v8903_v22 = vpop.f32.mrb[227].mxu1  ;;  %9195 = vmatmul.mubr.msk.f32.gmra.mrb[76].mxu1 %vm391_vm3, %v5052_v48  ;;  %9132 = vmatprep.mubr.msk.f32.mxu0 %vm9629_vm0, %v9630_v6 }
 0x338   : > { %4231 = vst.msk [vmem:[%s11531_s29 + $0x28] sm:$0xff] %vm391_vm3, %v4210_v32  ;;  %v4190_v30 = vmax.f32 %v4169_v46, 0.0  ;;  %v4149_v42 = vadd.f32 %v11506_v18, %v4122_v29  ;;  %v4102_v0 = vadd.f32 %v11493_v35, %v3817_v51  ;;  %9197 = vmatprep.mubr.msk.f32.mxu1 %vm9629_vm0, %v9630_v6  ;;  %v5311_v32 = vld [vmem:[#allocation2 + $0xd0] sm:$0xff] }
 0x339   : > { %v3750_v44 = vpop.f32.mrb[228].mxu0 }
 0x33a   : > { %v4029_v8 = vpop.f32.mrb[228].mxu1  ;;  %v4211_v14 = vadd.f32 %v4190_v30, %v10106_v61  ;;  %v4170_v62 = vsub.f32 %v4149_v42, %v10106_v61  ;;  %v4123_v2 = vadd.f32 %v4102_v0, %v4024_v21  ;;  %v3818_v11 = vadd.f32 %v3750_v44, %v11384_v9  ;;  %v8841_v27 = vpop.f32.mrb[229].mxu0  ;;  %9133 = vmatmul.mubr.msk.f32.gmra.mrb[78].mxu0 %vm391_vm3, %v5051_v54  ;;  %v7562_v9 = vld [vmem:[%s12595_s5 + $0x30] sm:$0xff] }
 0x33b   : > { %v8906_v38 = vpop.f32.mrb[229].mxu1  ;;  %9198 = vmatmul.mubr.msk.f32.gmra.mrb[78].mxu1 %vm391_vm3, %v5053_v13  ;;  %9202 = vmatprep.mubr.msk.f32.mxu0 %vm9629_vm0, %v9630_v6  ;;  %v11662_v30 = vld [vmem:[#allocation2 + $0xd1] sm:$0xff] }
 0x33c   : > { %4232 = vst.msk [vmem:[%s11531_s29 + $0x30] sm:$0xff] %vm391_vm3, %v4211_v14  ;;  %v4191_v15 = vmax.f32 %v4170_v62, 0.0  ;;  %v4150_v7 = vadd.f32 %v11506_v18, %v4123_v2  ;;  %v4103_v60 = vadd.f32 %v11493_v35, %v3818_v11  ;;  %9267 = vmatprep.mubr.msk.f32.mxu1 %vm9629_vm0, %v9630_v6  ;;  %v5312_v14 = vld [vmem:[#allocation2 + $0xd8] sm:$0xff] }
 0x33d   : > { %v3755_v56 = vpop.f32.mrb[230].mxu0 }
 0x33e   : > { %v4034_v47 = vpop.f32.mrb[230].mxu1  ;;  %v4212_v19 = vadd.f32 %v4191_v15, %v10106_v61  ;;  %v4171_v1 = vsub.f32 %v4150_v7, %v10106_v61  ;;  %v4124_v17 = vadd.f32 %v4103_v60, %v4029_v8  ;;  %v3819_v31 = vadd.f32 %v3755_v56, %v11396_v43  ;;  %v8844_v49 = vpop.f32.mrb[231].mxu0  ;;  %9203 = vmatmul.mubr.msk.f32.vlgmr.msra.gmra.mrb[80].mxu0 %vm391_vm3, %v5309_v16  ;;  %v11678_v15 = vld [vmem:[#allocation2 + $0xd9] sm:$0xff] }
 0x33f   : > { %v8909_v57 = vpop.f32.mrb[231].mxu1  ;;  %9268 = vmatmul.mubr.msk.f32.vlgmr.msra.gmra.mrb[80].mxu1 %vm391_vm3, %v5585_v23  ;;  %9331 = vmatpush3.msra.mxu0 %v7562_v9  ;;  %v5313_v16 = vld [vmem:[#allocation2 + $0xe0] sm:$0xff] }
 0x340   : > { %4233 = vst.msk [vmem:[%s11531_s29 + $0x38] sm:$0xff] %vm391_vm3, %v4212_v19  ;;  %v4192_v45 = vmax.f32 %v4171_v1, 0.0  ;;  %v4151_v10 = vadd.f32 %v11506_v18, %v4124_v17  ;;  %v4104_v59 = vadd.f32 %v11493_v35, %v3819_v31  ;;  %9205 = vmatprep.mubr.msk.f32.mxu0 %vm9629_vm0, %v9630_v6  ;;  %9270 = vmatprep.mubr.msk.f32.mxu1 %vm9629_vm0, %v9630_v6  ;;  %v11694_v23 = vld [vmem:[#allocation2 + $0xe1] sm:$0xff] }
 0x341   : > { %v3760_v43 = vpop.f32.mrb[232].mxu0  ;;  %9396 = vmatpush3.msra.mxu1 %v7584_v28  ;;  %9460 = vmatprep.subr.mxu0 %v9630_v6 }
 0x342   : > { %v4039_v40 = vpop.f32.mrb[232].mxu1  ;;  %v4213_v53 = vadd.f32 %v4192_v45, %v10106_v61  ;;  %v4172_v58 = vsub.f32 %v4151_v10, %v10106_v61  ;;  %v4125_v20 = vadd.f32 %v4104_v59, %v4034_v47  ;;  %v3820_v54 = vadd.f32 %v3760_v43, %v11407_v24  ;;  %v8847_v4 = vpop.f32.mrb[233].mxu0  ;;  %9206 = vmatmul.mubr.msk.f32.gmra.mrb[82].mxu0 %vm391_vm3, %v5310_v39  ;;  %v5314_v59 = vld [vmem:[#allocation2 + $0xe8] sm:$0xff] }
 0x343   : > { %v8912_v37 = vpop.f32.mrb[233].mxu1  ;;  %9271 = vmatmul.mubr.msk.f32.gmra.mrb[82].mxu1 %vm391_vm3, %v5586_v33  ;;  %9208 = vmatprep.mubr.msk.f32.mxu0 %vm9629_vm0, %v9630_v6 }
 0x344   : > { %4234 = vst.msk [vmem:[%s11531_s29 + $0x40] sm:$0xff] %vm391_vm3, %v4213_v53  ;;  %v4193_v12 = vmax.f32 %v4172_v58, 0.0  ;;  %v4152_v41 = vadd.f32 %v11506_v18, %v4125_v20  ;;  %v4105_v21 = vadd.f32 %v11493_v35, %v3820_v54  ;;  %9273 = vmatprep.mubr.msk.f32.mxu1 %vm9629_vm0, %v9630_v6  ;;  %9525 = vmatprep.subr.mxu1 %v9630_v6  ;;  %v11710_v54 = vld [vmem:[#allocation2 + $0xe9] sm:$0xff] }
 0x345   : > { %v3765_v24 = vpop.f32.mrb[234].mxu0 }
 0x346   : > { %v4044_v46 = vpop.f32.mrb[234].mxu1  ;;  %v4214_v29 = vadd.f32 %v4193_v12, %v10106_v61  ;;  %v4173_v51 = vsub.f32 %v4152_v41, %v10106_v61  ;;  %v4126_v3 = vadd.f32 %v4105_v21, %v4039_v40  ;;  %v3821_v48 = vadd.f32 %v3765_v24, %v11416_v52  ;;  %v8850_v22 = vpop.f32.mrb[235].mxu0  ;;  %9209 = vmatmul.mubr.msk.f32.gmra.mrb[84].mxu0 %vm391_vm3, %v5311_v32  ;;  %v5315_v41 = vld [vmem:[#allocation2 + $0xf0] sm:$0xff] }
 0x347   : > { %v8915_v42 = vpop.f32.mrb[235].mxu1  ;;  %9274 = vmatmul.mubr.msk.f32.gmra.mrb[84].mxu1 %vm391_vm3, %v11662_v30  ;;  %9211 = vmatprep.mubr.msk.f32.mxu0 %vm9629_vm0, %v9630_v6 }
 0x348   : > { %4235 = vst.msk [vmem:[%s11531_s29 + $0x48] sm:$0xff] %vm391_vm3, %v4214_v29  ;;  %v4194_v0 = vmax.f32 %v4173_v51, 0.0  ;;  %v4153_v44 = vadd.f32 %v11506_v18, %v4126_v3  ;;  %v4106_v52 = vadd.f32 %v11493_v35, %v3821_v48  ;;  %9276 = vmatprep.mubr.msk.f32.mxu1 %vm9629_vm0, %v9630_v6  ;;  %v11726_v3 = vld [vmem:[#allocation2 + $0xf1] sm:$0xff] }
 0x349   : > { %v3770_v8 = vpop.f32.mrb[236].mxu0 }
 0x34a   : > { %v4049_v62 = vpop.f32.mrb[236].mxu1  ;;  %v4215_v2 = vadd.f32 %v4194_v0, %v10106_v61  ;;  %v4174_v11 = vsub.f32 %v4153_v44, %v10106_v61  ;;  %v4127_v27 = vadd.f32 %v4106_v52, %v4044_v46  ;;  %v3822_v13 = vadd.f32 %v3770_v8, %v11425_v36  ;;  %v8853_v38 = vpop.f32.mrb[237].mxu0  ;;  %9212 = vmatmul.mubr.msk.f32.gmra.mrb[86].mxu0 %vm391_vm3, %v5312_v14  ;;  %v5316_v44 = vld [vmem:[#allocation2 + $0xf8] sm:$0xff] }
 0x34b   : > { %v8918_v7 = vpop.f32.mrb[237].mxu1  ;;  %9277 = vmatmul.mubr.msk.f32.gmra.mrb[86].mxu1 %vm391_vm3, %v11678_v15  ;;  %9214 = vmatprep.mubr.msk.f32.mxu0 %vm9629_vm0, %v9630_v6 }
 0x34c   : > { %4236 = vst.msk [vmem:[%s11531_s29 + $0x50] sm:$0xff] %vm391_vm3, %v4215_v2  ;;  %v4195_v60 = vmax.f32 %v4174_v11, 0.0  ;;  %v4154_v9 = vadd.f32 %v11506_v18, %v4127_v27  ;;  %v4107_v36 = vadd.f32 %v11493_v35, %v3822_v13  ;;  %9279 = vmatprep.mubr.msk.f32.mxu1 %vm9629_vm0, %v9630_v6  ;;  %v11742_v27 = vld [vmem:[#allocation2 + $0xf9] sm:$0xff] }
 0x34d   : > { %v3775_v56 = vpop.f32.mrb[238].mxu0 }
 0x34e   : > { %v4054_v47 = vpop.f32.mrb[238].mxu1  ;;  %v4216_v19 = vadd.f32 %v4195_v60, %v10106_v61  ;;  %v4175_v1 = vsub.f32 %v4154_v9, %v10106_v61  ;;  %v4128_v17 = vadd.f32 %v4107_v36, %v4049_v62  ;;  %v3823_v31 = vadd.f32 %v3775_v56, %v11434_v34  ;;  %v8856_v49 = vpop.f32.mrb[239].mxu0  ;;  %9215 = vmatmul.mubr.msk.f32.gmra.mrb[88].mxu0 %vm391_vm3, %v5313_v16  ;;  %v5317_v9 = vld [vmem:[#allocation2 + $0x100] sm:$0xff] }
 0x34f   : > { %v8921_v57 = vpop.f32.mrb[239].mxu1  ;;  %9280 = vmatmul.mubr.msk.f32.gmra.mrb[88].mxu1 %vm391_vm3, %v11694_v23  ;;  %9217 = vmatprep.mubr.msk.f32.mxu0 %vm9629_vm0, %v9630_v6 }
 0x350   : > { %4237 = vst.msk [vmem:[%s11531_s29 + $0x58] sm:$0xff] %vm391_vm3, %v4216_v19  ;;  %v4196_v28 = vmax.f32 %v4175_v1, 0.0  ;;  %v4155_v45 = vadd.f32 %v11506_v18, %v4128_v17  ;;  %v4108_v34 = vadd.f32 %v11493_v35, %v3823_v31  ;;  %9282 = vmatprep.mubr.msk.f32.mxu1 %vm9629_vm0, %v9630_v6  ;;  %v11758_v17 = vld [vmem:[#allocation2 + $0x101] sm:$0xff] }
 0x351   : > { %v3780_v10 = vpop.f32.mrb[240].mxu0 }
 0x352   : > { %v4059_v43 = vpop.f32.mrb[240].mxu1  ;;  %v4217_v39 = vadd.f32 %v4196_v28, %v10106_v61  ;;  %v4176_v40 = vsub.f32 %v4155_v45, %v10106_v61  ;;  %v4129_v53 = vadd.f32 %v4108_v34, %v4054_v47  ;;  %v3824_v58 = vadd.f32 %v3780_v10, %v11443_v26  ;;  %v8859_v20 = vpop.f32.mrb[241].mxu0  ;;  %9218 = vmatmul.mubr.msk.f32.gmra.mrb[90].mxu0 %vm391_vm3, %v5314_v59  ;;  %v5318_v45 = vld [vmem:[#allocation2 + $0x108] sm:$0xff] }
 0x353   : > { %v8924_v4 = vpop.f32.mrb[241].mxu1  ;;  %9283 = vmatmul.mubr.msk.f32.gmra.mrb[90].mxu1 %vm391_vm3, %v11710_v54  ;;  %9220 = vmatprep.mubr.msk.f32.mxu0 %vm9629_vm0, %v9630_v6 }
 0x354   : > { %4238 = vst.msk [vmem:[%s11531_s29 + $0x60] sm:$0xff] %vm391_vm3, %v4217_v39  ;;  %v4197_v33 = vmax.f32 %v4176_v40, 0.0  ;;  %v4156_v37 = vadd.f32 %v11506_v18, %v4129_v53  ;;  %v4109_v26 = vadd.f32 %v11493_v35, %v3824_v58  ;;  %9285 = vmatprep.mubr.msk.f32.mxu1 %vm9629_vm0, %v9630_v6  ;;  %v11774_v53 = vld [vmem:[#allocation2 + $0x109] sm:$0xff] }
 0x355   : > { %v3785_v12 = vpop.f32.mrb[242].mxu0 }
 0x356   : > { %v4064_v21 = vpop.f32.mrb[242].mxu1  ;;  %v4218_v24 = vadd.f32 %v4197_v33, %v10106_v61  ;;  %v4177_v32 = vsub.f32 %v4156_v37, %v10106_v61  ;;  %v4130_v46 = vadd.f32 %v4109_v26, %v4059_v43  ;;  %v3825_v29 = vadd.f32 %v3785_v12, %v11452_v63  ;;  %v8862_v51 = vpop.f32.mrb[243].mxu0  ;;  %9221 = vmatmul.mubr.msk.f32.gmra.mrb[92].mxu0 %vm391_vm3, %v5315_v41  ;;  %v5319_v37 = vld [vmem:[#allocation2 + $0x110] sm:$0xff] }
 0x357   : > { %v8927_v48 = vpop.f32.mrb[243].mxu1  ;;  %9286 = vmatmul.mubr.msk.f32.gmra.mrb[92].mxu1 %vm391_vm3, %v11726_v3  ;;  %9223 = vmatprep.mubr.msk.f32.mxu0 %vm9629_vm0, %v9630_v6 }
 0x358   : > { %4239 = vst.msk [vmem:[%s11531_s29 + $0x68] sm:$0xff] %vm391_vm3, %v4218_v24  ;;  %v4198_v22 = vmax.f32 %v4177_v32, 0.0  ;;  %v4157_v42 = vadd.f32 %v11506_v18, %v4130_v46  ;;  %v4110_v63 = vadd.f32 %v11493_v35, %v3825_v29  ;;  %9288 = vmatprep.mubr.msk.f32.mxu1 %vm9629_vm0, %v9630_v6  ;;  %v11790_v46 = vld [vmem:[#allocation2 + $0x111] sm:$0xff] }
 0x359   : > { %v3790_v0 = vpop.f32.mrb[244].mxu0 }
 0x35a   : > { %v4069_v52 = vpop.f32.mrb[244].mxu1  ;;  %v4219_v8 = vadd.f32 %v4198_v22, %v10106_v61  ;;  %v4178_v14 = vsub.f32 %v4157_v42, %v10106_v61  ;;  %v4131_v62 = vadd.f32 %v4110_v63, %v4064_v21  ;;  %v3826_v2 = vadd.f32 %v3790_v0, %v11461_v5  ;;  %v8865_v11 = vpop.f32.mrb[245].mxu0  ;;  %9224 = vmatmul.mubr.msk.f32.gmra.mrb[94].mxu0 %vm391_vm3, %v5316_v44  ;;  %v5320_v63 = vld [vmem:[#allocation2 + $0x118] sm:$0xff] }
 0x35b   : > { %v8930_v13 = vpop.f32.mrb[245].mxu1  ;;  %9289 = vmatmul.mubr.msk.f32.gmra.mrb[94].mxu1 %vm391_vm3, %v11742_v27  ;;  %9226 = vmatprep.mubr.msk.f32.mxu0 %vm9629_vm0, %v9630_v6 }
 0x35c   : > { %4240 = vst.msk [vmem:[%s11531_s29 + $0x70] sm:$0xff] %vm391_vm3, %v4219_v8  ;;  %v4199_v38 = vmax.f32 %v4178_v14, 0.0  ;;  %v4158_v7 = vadd.f32 %v11506_v18, %v4131_v62  ;;  %v4111_v5 = vadd.f32 %v11493_v35, %v3826_v2  ;;  %9291 = vmatprep.mubr.msk.f32.mxu1 %vm9629_vm0, %v9630_v6  ;;  %v11807_v2 = vld [vmem:[#allocation2 + $0x119] sm:$0xff] }
 0x35d   : > { %v3795_v60 = vpop.f32.mrb[246].mxu0 }
 0x35e   : > { %v4074_v36 = vpop.f32.mrb[246].mxu1  ;;  %v4220_v56 = vadd.f32 %v4199_v38, %v10106_v61  ;;  %v4179_v16 = vsub.f32 %v4158_v7, %v10106_v61  ;;  %v4132_v47 = vadd.f32 %v4111_v5, %v4069_v52  ;;  %v3827_v19 = vadd.f32 %v3795_v60, %v11470_v50  ;;  %v8868_v1 = vpop.f32.mrb[247].mxu0  ;;  %9227 = vmatmul.mubr.msk.f32.gmra.mrb[96].mxu0 %vm391_vm3, %v5317_v9  ;;  %v5321_v7 = vld [vmem:[#allocation2 + $0x120] sm:$0xff] }
 0x35f   : > { %v8933_v31 = vpop.f32.mrb[247].mxu1  ;;  %9292 = vmatmul.mubr.msk.f32.gmra.mrb[96].mxu1 %vm391_vm3, %v11758_v17  ;;  %9229 = vmatprep.mubr.msk.f32.mxu0 %vm9629_vm0, %v9630_v6  ;;  %v5322_v1 = vld [vmem:[#allocation2 + $0x128] sm:$0xff] }
 0x360   : > { %4241 = vst.msk [vmem:[%s11531_s29 + $0x78] sm:$0xff] %vm391_vm3, %v4220_v56  ;;  %v4200_v49 = vmax.f32 %v4179_v16, 0.0  ;;  %v4159_v57 = vadd.f32 %v11506_v18, %v4132_v47  ;;  %v4112_v50 = vadd.f32 %v11493_v35, %v3827_v19  ;;  %9294 = vmatprep.mubr.msk.f32.mxu1 %vm9629_vm0, %v9630_v6  ;;  %v11823_v16 = vld [vmem:[#allocation2 + $0x121] sm:$0xff] }
 0x361   : > { %v3800_v28 = vpop.f32.mrb[248].mxu0 }
 0x362   : > { %v4079_v34 = vpop.f32.mrb[248].mxu1  ;;  %v4221_v10 = vadd.f32 %v4200_v49, %v10106_v61  ;;  %v4180_v59 = vsub.f32 %v4159_v57, %v10106_v61  ;;  %v4133_v43 = vadd.f32 %v4112_v50, %v4074_v36  ;;  %v3828_v39 = vadd.f32 %v3800_v28, %v11479_v55  ;;  %v8871_v40 = vpop.f32.mrb[249].mxu0  ;;  %9230 = vmatmul.mubr.msk.f32.gmra.mrb[98].mxu0 %vm391_vm3, %v5318_v45  ;;  %v11837_v28 = vld [vmem:[#allocation2 + $0x129] sm:$0xff] }
 0x363   : > { %v8936_v58 = vpop.f32.mrb[249].mxu1  ;;  %9295 = vmatmul.mubr.msk.f32.gmra.mrb[98].mxu1 %vm391_vm3, %v11774_v53  ;;  %9232 = vmatprep.mubr.msk.f32.mxu0 %vm9629_vm0, %v9630_v6  ;;  %v11850_v40 = vld [vmem:[#allocation2 + $0x131] sm:$0xff] }
 0x364   : > { %4242 = vst.msk [vmem:[%s11531_s29 + $0x80] sm:$0xff] %vm391_vm3, %v4221_v10  ;;  %v4201_v20 = vmax.f32 %v4180_v59, 0.0  ;;  %v4160_v4 = vadd.f32 %v11506_v18, %v4133_v43  ;;  %v4113_v55 = vadd.f32 %v11493_v35, %v3828_v39  ;;  %9297 = vmatprep.mubr.msk.f32.mxu1 %vm9629_vm0, %v9630_v6  ;;  %v5323_v10 = vld [vmem:[#allocation2 + $0x130] sm:$0xff] }
 0x365   : > { %v3805_v33 = vpop.f32.mrb[250].mxu0 }
 0x366   : > { %v4084_v26 = vpop.f32.mrb[250].mxu1  ;;  %v4222_v12 = vadd.f32 %v4201_v20, %v10106_v61  ;;  %v4181_v41 = vsub.f32 %v4160_v4, %v10106_v61  ;;  %v4134_v21 = vadd.f32 %v4113_v55, %v4079_v34  ;;  %v3829_v24 = vadd.f32 %v3805_v33, %v11488_v25  ;;  %v8874_v32 = vpop.f32.mrb[251].mxu0  ;;  %9233 = vmatmul.mubr.msk.f32.gmra.mrb[100].mxu0 %vm391_vm3, %v5319_v37  ;;  %v5324_v4 = vld [vmem:[#allocation2 + $0x138] sm:$0xff] }
 0x367   : > { %v8939_v29 = vpop.f32.mrb[251].mxu1  ;;  %9298 = vmatmul.mubr.msk.f32.gmra.mrb[100].mxu1 %vm391_vm3, %v11790_v46  ;;  %9235 = vmatprep.mubr.msk.f32.mxu0 %vm9629_vm0, %v9630_v6 }
 0x368   : > { %4243 = vst.msk [vmem:[%s11531_s29 + $0x88] sm:$0xff] %vm391_vm3, %v4222_v12  ;;  %v4202_v51 = vmax.f32 %v4181_v41, 0.0  ;;  %v4161_v48 = vadd.f32 %v11506_v18, %v4134_v21  ;;  %v4114_v25 = vadd.f32 %v11493_v35, %v3829_v24  ;;  %9300 = vmatprep.mubr.msk.f32.mxu1 %vm9629_vm0, %v9630_v6  ;;  %v5325_v21 = vld [vmem:[#allocation2 + $0x140] sm:$0xff] }
 0x369   : > { %v4420_v22 = vpop.f32.mrb[252].mxu0 }
 0x36a   : > { %v4653_v42 = vpop.f32.mrb[252].mxu1  ;;  %v4223_v0 = vadd.f32 %v4202_v51, %v10106_v61  ;;  %v4182_v44 = vsub.f32 %v4161_v48, %v10106_v61  ;;  %v4135_v52 = vadd.f32 %v4114_v25, %v4084_v26  ;;  %v8944_v14 = vpop.f32.mrb[253].mxu0  ;;  %9236 = vmatmul.mubr.msk.f32.gmra.mrb[102].mxu0 %vm391_vm3, %v5320_v63  ;;  %v11861_v26 = vld [vmem:[#allocation2 + $0x139] sm:$0xff]  ;;  %v11872_v51 = vld [vmem:[#allocation2 + $0x141] sm:$0xff] }
 0x36b   : > { %v11804_v8 = vadd.f32 %v4653_v42, %v4420_v22  ;;  %v9009_v62 = vpop.f32.mrb[253].mxu1  ;;  %9301 = vmatmul.mubr.msk.f32.gmra.mrb[102].mxu1 %vm391_vm3, %v11807_v2  ;;  %9238 = vmatprep.mubr.msk.f32.mxu0 %vm9629_vm0, %v9630_v6  ;;  %v5326_v22 = vld [vmem:[#allocation2 + $0x148] sm:$0xff] }
 0x36c   : > { %4244 = vst.msk [vmem:[%s11531_s29 + $0x90] sm:$0xff] %vm391_vm3, %v4223_v0  ;;  %v4203_v35 = vmax.f32 %v4182_v44, 0.0  ;;  %v4162_v11 = vadd.f32 %v11506_v18, %v4135_v52  ;;  %9303 = vmatprep.mubr.msk.f32.mxu1 %vm9629_vm0, %v9630_v6  ;;  %v11883_v44 = vld [vmem:[#allocation2 + $0x149] sm:$0xff] }
 0x36d   : > { %v4425_v13 = vpop.f32.mrb[254].mxu0  ;;  %v5327_v62 = vld [vmem:[#allocation2 + $0x150] sm:$0xff] }
 0x36e   : > { %v4658_v38 = vpop.f32.mrb[254].mxu1  ;;  %v4224_v5 = vadd.f32 %v4203_v35, %v10106_v61  ;;  %v4183_v60 = vsub.f32 %v4162_v11, %v10106_v61  ;;  %v8947_v36 = vpop.f32.mrb[255].mxu0  ;;  %9239 = vmatmul.mubr.msk.f32.gmra.mrb[104].mxu0 %vm391_vm3, %v5321_v7 }
 0x36f   : > { %v11820_v9 = vadd.f32 %v4658_v38, %v4425_v13  ;;  %v9012_v56 = vpop.f32.mrb[255].mxu1  ;;  %9304 = vmatmul.mubr.msk.f32.gmra.mrb[104].mxu1 %vm391_vm3, %v11823_v16  ;;  %9241 = vmatprep.mubr.msk.f32.mxu0 %vm9629_vm0, %v9630_v6  ;;  %v11894_v38 = vld [vmem:[#allocation2 + $0x151] sm:$0xff] }
 0x370   : > { %4245 = vst.msk [vmem:[%s11531_s29 + $0x98] sm:$0xff] %vm391_vm3, %v4224_v5  ;;  %v4204_v18 = vmax.f32 %v4183_v60, 0.0  ;;  %9306 = vmatprep.mubr.msk.f32.mxu1 %vm9629_vm0, %v9630_v6  ;;  %v5328_v60 = vld [vmem:[#allocation2 + $0x158] sm:$0xff] }
 0x371   : > { %v4430_v47 = vpop.f32.mrb[0].mxu0 }
 0x372   : > { %v4663_v19 = vpop.f32.mrb[0].mxu1  ;;  %v4225_v31 = vadd.f32 %v4204_v18, %v10106_v61  ;;  %v8950_v57 = vpop.f32.mrb[1].mxu0  ;;  %9242 = vmatmul.mubr.msk.f32.gmra.mrb[106].mxu0 %vm391_vm3, %v5322_v1 }
 0x373   : > { %v11834_v49 = vadd.f32 %v4663_v19, %v4430_v47  ;;  %v9015_v50 = vpop.f32.mrb[1].mxu1  ;;  %9307 = vmatmul.mubr.msk.f32.gmra.mrb[106].mxu1 %vm391_vm3, %v11837_v28  ;;  %9244 = vmatprep.mubr.msk.f32.mxu0 %vm9629_vm0, %v9630_v6  ;;  %v11905_v47 = vld [vmem:[#allocation2 + $0x159] sm:$0xff] }
 0x374   : > { %4246 = vst.msk [vmem:[%s11531_s29 + $0xa0] sm:$0xff] %vm391_vm3, %v4225_v31  ;;  %9309 = vmatprep.mubr.msk.f32.mxu1 %vm9629_vm0, %v9630_v6  ;;  %v5329_v31 = vld [vmem:[#allocation2 + $0x160] sm:$0xff] }
 0x375   : > { %v4435_v45 = vpop.f32.mrb[2].mxu0 }
 0x376   : > { %v4668_v34 = vpop.f32.mrb[2].mxu1  ;;  %v8953_v43 = vpop.f32.mrb[3].mxu0  ;;  %9245 = vmatmul.mubr.msk.f32.gmra.mrb[108].mxu0 %vm391_vm3, %v5323_v10  ;;  %v7606_v10 = vld [vmem:[%s12595_s5 + $0x40] sm:$0xff] }
 0x377   : > { %v11847_v59 = vadd.f32 %v4668_v34, %v4435_v45  ;;  %v9018_v39 = vpop.f32.mrb[3].mxu1  ;;  %9310 = vmatmul.mubr.msk.f32.gmra.mrb[108].mxu1 %vm391_vm3, %v11850_v40  ;;  %9247 = vmatprep.mubr.msk.f32.mxu0 %vm9629_vm0, %v9630_v6  ;;  %v11916_v34 = vld [vmem:[#allocation2 + $0x161] sm:$0xff] }
 0x378   : > { %9312 = vmatprep.mubr.msk.f32.mxu1 %vm9629_vm0, %v9630_v6 }
 0x379   : > { %v4440_v58 = vpop.f32.mrb[4].mxu0 }
 0x37a   : > { %v4673_v20 = vpop.f32.mrb[4].mxu1  ;;  %v8956_v33 = vpop.f32.mrb[5].mxu0  ;;  %9248 = vmatmul.mubr.msk.f32.gmra.mrb[110].mxu0 %vm391_vm3, %v5324_v4 }
 0x37b   : > { %v11858_v55 = vadd.f32 %v4673_v20, %v4440_v58  ;;  %v9021_v37 = vpop.f32.mrb[5].mxu1  ;;  %9313 = vmatmul.mubr.msk.f32.gmra.mrb[110].mxu1 %vm391_vm3, %v11861_v26  ;;  %9250 = vmatprep.mubr.msk.f32.mxu0 %vm9629_vm0, %v9630_v6  ;;  %v6137_v33 = vld [vmem:[#allocation2 + $0xd2] sm:$0xff] }
 0x37c   : > { %9315 = vmatprep.mubr.msk.f32.mxu1 %vm9629_vm0, %v9630_v6 }
 0x37d   : > { %v4445_v12 = vpop.f32.mrb[6].mxu0 }
 0x37e   : > { %v4678_v41 = vpop.f32.mrb[6].mxu1  ;;  %v8959_v32 = vpop.f32.mrb[7].mxu0  ;;  %9251 = vmatmul.mubr.msk.f32.gmra.mrb[112].mxu0 %vm391_vm3, %v5325_v21 }
 0x37f   : > { %v11869_v24 = vadd.f32 %v4678_v41, %v4445_v12  ;;  %v9024_v29 = vpop.f32.mrb[7].mxu1  ;;  %9316 = vmatmul.mubr.msk.f32.gmra.mrb[112].mxu1 %vm391_vm3, %v11872_v51  ;;  %9253 = vmatprep.mubr.msk.f32.mxu0 %vm9629_vm0, %v9630_v6  ;;  %v9617_v41 = vld [vmem:[%s12597_s7] sm:$0xf] }
 0x380   : > { %9318 = vmatprep.mubr.msk.f32.mxu1 %vm9629_vm0, %v9630_v6  ;;  %v6138_v29 = vld [vmem:[#allocation2 + $0xda] sm:$0xff] }
 0x381   : > { %v4450_v48 = vpop.f32.mrb[8].mxu0 }
 0x382   : > { %v4683_v25 = vpop.f32.mrb[8].mxu1  ;;  %v8962_v63 = vpop.f32.mrb[9].mxu0  ;;  %9254 = vmatmul.mubr.msk.f32.gmra.mrb[114].mxu0 %vm391_vm3, %v5326_v22 }
 0x383   : > { %v11880_v42 = vadd.f32 %v4683_v25, %v4450_v48  ;;  %v9027_v0 = vpop.f32.mrb[9].mxu1  ;;  %9319 = vmatmul.mubr.msk.f32.gmra.mrb[114].mxu1 %vm391_vm3, %v11883_v44  ;;  %9256 = vmatprep.mubr.msk.f32.mxu0 %vm9629_vm0, %v9630_v6 }
 0x384   : > { %9321 = vmatprep.mubr.msk.f32.mxu1 %vm9629_vm0, %v9630_v6 }
 0x385   : > { %v4455_v52 = vpop.f32.mrb[10].mxu0 }
 0x386   : > { %v4688_v14 = vpop.f32.mrb[10].mxu1  ;;  %v8965_v11 = vpop.f32.mrb[11].mxu0  ;;  %9257 = vmatmul.mubr.msk.f32.gmra.mrb[116].mxu0 %vm391_vm3, %v5327_v62 }
 0x387   : > { %v11891_v35 = vadd.f32 %v4688_v14, %v4455_v52  ;;  %v9030_v13 = vpop.f32.mrb[11].mxu1  ;;  %9322 = vmatmul.mubr.msk.f32.gmra.mrb[116].mxu1 %vm391_vm3, %v11894_v38  ;;  %9259 = vmatprep.mubr.msk.f32.mxu0 %vm9629_vm0, %v9630_v6  ;;  %v6139_v52 = vld [vmem:[#allocation2 + $0xe2] sm:$0xff] }
 0x388   : > { %9324 = vmatprep.mubr.msk.f32.mxu1 %vm9629_vm0, %v9630_v6 }
 0x389   : > { %v4460_v7 = vpop.f32.mrb[12].mxu0 }
 0x38a   : > { %v4693_v5 = vpop.f32.mrb[12].mxu1  ;;  %v8968_v56 = vpop.f32.mrb[13].mxu0  ;;  %9260 = vmatmul.mubr.msk.f32.gmra.mrb[118].mxu0 %vm391_vm3, %v5328_v60 }
 0x38b   : > { %v11902_v36 = vadd.f32 %v4693_v5, %v4460_v7  ;;  %v9033_v18 = vpop.f32.mrb[13].mxu1  ;;  %9325 = vmatmul.mubr.msk.f32.gmra.mrb[118].mxu1 %vm391_vm3, %v11905_v47  ;;  %9262 = vmatprep.mubr.msk.f32.mxu0 %vm9629_vm0, %v9630_v6  ;;  %v6140_v7 = vld [vmem:[#allocation2 + $0xea] sm:$0xff] }
 0x38c   : > { %9327 = vmatprep.mubr.msk.f32.mxu1 %vm9629_vm0, %v9630_v6 }
 0x38d   : > { %v4465_v19 = vpop.f32.mrb[14].mxu0 }
 0x38e   : > { %v4698_v1 = vpop.f32.mrb[14].mxu1  ;;  %v8971_v50 = vpop.f32.mrb[15].mxu0  ;;  %9263 = vmatmul.mubr.msk.f32.gmra.mrb[120].mxu0 %vm391_vm3, %v5329_v31 }
 0x38f   : > { %v11913_v57 = vadd.f32 %v4698_v1, %v4465_v19  ;;  %v9036_v45 = vpop.f32.mrb[15].mxu1  ;;  %9328 = vmatmul.mubr.msk.f32.gmra.mrb[120].mxu1 %vm391_vm3, %v11916_v34  ;;  %9332 = vmatprep.mubr.msk.f32.mxu0 %vm9629_vm0, %v9630_v6  ;;  %v6141_v19 = vld [vmem:[#allocation2 + $0xf2] sm:$0xff] }
 0x390   : > { %9397 = vmatprep.mubr.msk.f32.mxu1 %vm9629_vm0, %v9630_v6 }
 0x391   : > { %v4470_v43 = vpop.f32.mrb[16].mxu0 }
 0x392   : > { %v4703_v39 = vpop.f32.mrb[16].mxu1  ;;  %v8974_v20 = vpop.f32.mrb[17].mxu0  ;;  %9333 = vmatmul.mubr.msk.f32.vlgmr.msra.gmra.mrb[122].mxu0 %vm391_vm3, %v11662_v30 }
 0x393   : > { %v11927_v58 = vadd.f32 %v4703_v39, %v4470_v43  ;;  %v9039_v4 = vpop.f32.mrb[17].mxu1  ;;  %9398 = vmatmul.mubr.msk.f32.vlgmr.msra.gmra.mrb[122].mxu1 %vm391_vm3, %v6137_v33  ;;  %9461 = vmatpush3.msra.mxu0 %v7606_v10  ;;  %v6142_v10 = vld [vmem:[#allocation2 + $0xfa] sm:$0xff]  ;;  %v6143_v33 = vld [vmem:[#allocation2 + $0x102] sm:$0xff] }
 0x394   : > { %9335 = vmatprep.mubr.msk.f32.mxu0 %vm9629_vm0, %v9630_v6  ;;  %9400 = vmatprep.mubr.msk.f32.mxu1 %vm9629_vm0, %v9630_v6 }
 0x395   : > { %v4475_v37 = vpop.f32.mrb[18].mxu0  ;;  %9526 = vmatpush3.msk.msra.mxu1 %vm489_vm1, %v9617_v41 }
 0x396   : > { %v4708_v12 = vpop.f32.mrb[18].mxu1  ;;  %v8977_v30 = vpop.f32.mrb[19].mxu0  ;;  %9336 = vmatmul.mubr.msk.f32.gmra.mrb[124].mxu0 %vm391_vm3, %v11678_v15 }
 0x397   : > { %v11940_v21 = vadd.f32 %v4708_v12, %v4475_v37  ;;  %v9042_v32 = vpop.f32.mrb[19].mxu1  ;;  %9401 = vmatmul.mubr.msk.f32.gmra.mrb[124].mxu1 %vm391_vm3, %v6138_v29  ;;  %9338 = vmatprep.mubr.msk.f32.mxu0 %vm9629_vm0, %v9630_v6 }
 0x398   : > { %9403 = vmatprep.mubr.msk.f32.mxu1 %vm9629_vm0, %v9630_v6  ;;  %v6144_v32 = vld [vmem:[#allocation2 + $0x10a] sm:$0xff] }
 0x399   : > { %v4480_v48 = vpop.f32.mrb[20].mxu0 }
 0x39a   : > { %v4713_v25 = vpop.f32.mrb[20].mxu1  ;;  %v8980_v63 = vpop.f32.mrb[21].mxu0  ;;  %9339 = vmatmul.mubr.msk.f32.gmra.mrb[126].mxu0 %vm391_vm3, %v11694_v23 }
 0x39b   : > { %v11949_v22 = vadd.f32 %v4713_v25, %v4480_v48  ;;  %v9045_v0 = vpop.f32.mrb[21].mxu1  ;;  %9404 = vmatmul.mubr.msk.f32.gmra.mrb[126].mxu1 %vm391_vm3, %v6139_v52  ;;  %9341 = vmatprep.mubr.msk.f32.mxu0 %vm9629_vm0, %v9630_v6 }
 0x39c   : > { %9406 = vmatprep.mubr.msk.f32.mxu1 %vm9629_vm0, %v9630_v6  ;;  %v6145_v0 = vld [vmem:[#allocation2 + $0x112] sm:$0xff] }
 0x39d   : > { %v4485_v15 = vpop.f32.mrb[22].mxu0 }
 0x39e   : > { %v4718_v14 = vpop.f32.mrb[22].mxu1  ;;  %v8983_v11 = vpop.f32.mrb[23].mxu0  ;;  %9342 = vmatmul.mubr.msk.f32.gmra.mrb[128].mxu0 %vm391_vm3, %v11710_v54 }
 0x39f   : > { %v11958_v62 = vadd.f32 %v4718_v14, %v4485_v15  ;;  %v9048_v13 = vpop.f32.mrb[23].mxu1  ;;  %9407 = vmatmul.mubr.msk.f32.gmra.mrb[128].mxu1 %vm391_vm3, %v6140_v7  ;;  %9344 = vmatprep.mubr.msk.f32.mxu0 %vm9629_vm0, %v9630_v6 }
 0x3a0   : > { %9409 = vmatprep.mubr.msk.f32.mxu1 %vm9629_vm0, %v9630_v6  ;;  %v6146_v13 = vld [vmem:[#allocation2 + $0x11a] sm:$0xff] }
 0x3a1   : > { %v4490_v23 = vpop.f32.mrb[24].mxu0 }
 0x3a2   : > { %v4723_v5 = vpop.f32.mrb[24].mxu1  ;;  %v8986_v56 = vpop.f32.mrb[25].mxu0  ;;  %9345 = vmatmul.mubr.msk.f32.gmra.mrb[130].mxu0 %vm391_vm3, %v11726_v3 }
 0x3a3   : > { %v11967_v60 = vadd.f32 %v4723_v5, %v4490_v23  ;;  %v9051_v18 = vpop.f32.mrb[25].mxu1  ;;  %9410 = vmatmul.mubr.msk.f32.gmra.mrb[130].mxu1 %vm391_vm3, %v6141_v19  ;;  %9347 = vmatprep.mubr.msk.f32.mxu0 %vm9629_vm0, %v9630_v6 }
 0x3a4   : > { %9412 = vmatprep.mubr.msk.f32.mxu1 %vm9629_vm0, %v9630_v6  ;;  %v6147_v18 = vld [vmem:[#allocation2 + $0x122] sm:$0xff] }
 0x3a5   : > { %v4495_v54 = vpop.f32.mrb[26].mxu0 }
 0x3a6   : > { %v4728_v1 = vpop.f32.mrb[26].mxu1  ;;  %v8989_v50 = vpop.f32.mrb[27].mxu0  ;;  %9348 = vmatmul.mubr.msk.f32.gmra.mrb[132].mxu0 %vm391_vm3, %v11742_v27 }
 0x3a7   : > { %v11976_v31 = vadd.f32 %v4728_v1, %v4495_v54  ;;  %v9054_v45 = vpop.f32.mrb[27].mxu1  ;;  %9413 = vmatmul.mubr.msk.f32.gmra.mrb[132].mxu1 %vm391_vm3, %v6142_v10  ;;  %9350 = vmatprep.mubr.msk.f32.mxu0 %vm9629_vm0, %v9630_v6 }
 0x3a8   : > { %9415 = vmatprep.mubr.msk.f32.mxu1 %vm9629_vm0, %v9630_v6  ;;  %v6148_v45 = vld [vmem:[#allocation2 + $0x12a] sm:$0xff] }
 0x3a9   : > { %v4500_v3 = vpop.f32.mrb[28].mxu0 }
 0x3aa   : > { %v4733_v43 = vpop.f32.mrb[28].mxu1  ;;  %v8992_v20 = vpop.f32.mrb[29].mxu0  ;;  %9351 = vmatmul.mubr.msk.f32.gmra.mrb[134].mxu0 %vm391_vm3, %v11758_v17 }
 0x3ab   : > { %v11985_v39 = vadd.f32 %v4733_v43, %v4500_v3  ;;  %v9057_v4 = vpop.f32.mrb[29].mxu1  ;;  %9416 = vmatmul.mubr.msk.f32.gmra.mrb[134].mxu1 %vm391_vm3, %v6143_v33  ;;  %9353 = vmatprep.mubr.msk.f32.mxu0 %vm9629_vm0, %v9630_v6 }
 0x3ac   : > { %9418 = vmatprep.mubr.msk.f32.mxu1 %vm9629_vm0, %v9630_v6 }
 0x3ad   : > { %v4505_v27 = vpop.f32.mrb[30].mxu0 }
 0x3ae   : > { %v4738_v37 = vpop.f32.mrb[30].mxu1  ;;  %v8995_v41 = vpop.f32.mrb[31].mxu0  ;;  %9354 = vmatmul.mubr.msk.f32.gmra.mrb[136].mxu0 %vm391_vm3, %v11774_v53 }
 0x3af   : > { %v11994_v12 = vadd.f32 %v4738_v37, %v4505_v27  ;;  %v9060_v30 = vpop.f32.mrb[31].mxu1  ;;  %9419 = vmatmul.mubr.msk.f32.gmra.mrb[136].mxu1 %vm391_vm3, %v6144_v32  ;;  %9356 = vmatprep.mubr.msk.f32.mxu0 %vm9629_vm0, %v9630_v6 }
 0x3b0   : > { %9421 = vmatprep.mubr.msk.f32.mxu1 %vm9629_vm0, %v9630_v6 }
 0x3b1   : > { %v4510_v17 = vpop.f32.mrb[32].mxu0 }
 0x3b2   : > { %v4743_v29 = vpop.f32.mrb[32].mxu1  ;;  %v8998_v25 = vpop.f32.mrb[33].mxu0  ;;  %9357 = vmatmul.mubr.msk.f32.gmra.mrb[138].mxu0 %vm391_vm3, %v11790_v46 }
 0x3b3   : > { %v12003_v48 = vadd.f32 %v4743_v29, %v4510_v17  ;;  %v9063_v63 = vpop.f32.mrb[33].mxu1  ;;  %9422 = vmatmul.mubr.msk.f32.gmra.mrb[138].mxu1 %vm391_vm3, %v6145_v0  ;;  %9359 = vmatprep.mubr.msk.f32.mxu0 %vm9629_vm0, %v9630_v6 }
 0x3b4   : > { %9424 = vmatprep.mubr.msk.f32.mxu1 %vm9629_vm0, %v9630_v6 }
 0x3b5   : > { %v4515_v53 = vpop.f32.mrb[34].mxu0 }
 0x3b6   : > { %v4748_v52 = vpop.f32.mrb[34].mxu1  ;;  %v9001_v14 = vpop.f32.mrb[35].mxu0  ;;  %9360 = vmatmul.mubr.msk.f32.gmra.mrb[140].mxu0 %vm391_vm3, %v11807_v2 }
 0x3b7   : > { %v12012_v15 = vadd.f32 %v4748_v52, %v4515_v53  ;;  %v9066_v11 = vpop.f32.mrb[35].mxu1  ;;  %9425 = vmatmul.mubr.msk.f32.gmra.mrb[140].mxu1 %vm391_vm3, %v6146_v13  ;;  %9362 = vmatprep.mubr.msk.f32.mxu0 %vm9629_vm0, %v9630_v6 }
 0x3b8   : > { %9427 = vmatprep.mubr.msk.f32.mxu1 %vm9629_vm0, %v9630_v6 }
 0x3b9   : > { %v4520_v46 = vpop.f32.mrb[36].mxu0 }
 0x3ba   : > { %v4753_v7 = vpop.f32.mrb[36].mxu1  ;;  %v9004_v5 = vpop.f32.mrb[37].mxu0  ;;  %9363 = vmatmul.mubr.msk.f32.gmra.mrb[142].mxu0 %vm391_vm3, %v11823_v16 }
 0x3bb   : > { %v12021_v23 = vadd.f32 %v4753_v7, %v4520_v46  ;;  %v9069_v56 = vpop.f32.mrb[37].mxu1  ;;  %9428 = vmatmul.mubr.msk.f32.gmra.mrb[142].mxu1 %vm391_vm3, %v6147_v18  ;;  %9365 = vmatprep.mubr.msk.f32.mxu0 %vm9629_vm0, %v9630_v6 }
 0x3bc   : > { %9430 = vmatprep.mubr.msk.f32.mxu1 %vm9629_vm0, %v9630_v6 }
 0x3bd   : > { %v4908_v2 = vpop.f32.mrb[38].mxu0 }
 0x3be   : > { %v5184_v19 = vpop.f32.mrb[38].mxu1  ;;  %v5012_v54 = vadd.f32 %v4908_v2, %v11804_v8  ;;  %v9074_v1 = vpop.f32.mrb[39].mxu0  ;;  %9366 = vmatmul.mubr.msk.f32.gmra.mrb[144].mxu0 %vm391_vm3, %v11837_v28  ;;  %v6149_v28 = vld [vmem:[#allocation2 + $0x132] sm:$0xff] }
 0x3bf   : > { %v9139_v50 = vpop.f32.mrb[39].mxu1  ;;  %9431 = vmatmul.mubr.msk.f32.gmra.mrb[144].mxu1 %vm391_vm3, %v6148_v45  ;;  %9368 = vmatprep.mubr.msk.f32.mxu0 %vm9629_vm0, %v9630_v6 }
 0x3c0   : > { %v12036_v16 = vadd.f32 %v5184_v19, %v5012_v54  ;;  %9433 = vmatprep.mubr.msk.f32.mxu1 %vm9629_vm0, %v9630_v6 }
 0x3c1   : > { %v4913_v10 = vpop.f32.mrb[40].mxu0 }
 0x3c2   : > { %v5189_v3 = vpop.f32.mrb[40].mxu1  ;;  %v5013_v8 = vadd.f32 %v4913_v10, %v11820_v9  ;;  %v9077_v43 = vpop.f32.mrb[41].mxu0  ;;  %9369 = vmatmul.mubr.msk.f32.gmra.mrb[146].mxu0 %vm391_vm3, %v11850_v40  ;;  %v6150_v40 = vld [vmem:[#allocation2 + $0x13a] sm:$0xff] }
 0x3c3   : > { %v9142_v20 = vpop.f32.mrb[41].mxu1  ;;  %9434 = vmatmul.mubr.msk.f32.gmra.mrb[146].mxu1 %vm391_vm3, %v6149_v28  ;;  %9371 = vmatprep.mubr.msk.f32.mxu0 %vm9629_vm0, %v9630_v6 }
 0x3c4   : > { %v12046_v4 = vadd.f32 %v5189_v3, %v5013_v8  ;;  %9436 = vmatprep.mubr.msk.f32.mxu1 %vm9629_vm0, %v9630_v6  ;;  %v5880_v8 = vld [vmem:[#allocation2 + $0x169] sm:$0xff] }
 0x3c5   : > { %v4918_v33 = vpop.f32.mrb[42].mxu0  ;;  %v6156_v20 = vld [vmem:[#allocation2 + $0x16a] sm:$0xff] }
 0x3c6   : > { %v5194_v27 = vpop.f32.mrb[42].mxu1  ;;  %v5014_v9 = vadd.f32 %v4918_v33, %v11834_v49  ;;  %v9080_v37 = vpop.f32.mrb[43].mxu0  ;;  %9372 = vmatmul.mubr.msk.f32.gmra.mrb[148].mxu0 %vm391_vm3, %v11861_v26  ;;  %v6151_v26 = vld [vmem:[#allocation2 + $0x142] sm:$0xff] }
 0x3c7   : > { %v9145_v41 = vpop.f32.mrb[43].mxu1  ;;  %9437 = vmatmul.mubr.msk.f32.gmra.mrb[148].mxu1 %vm391_vm3, %v6150_v40  ;;  %9374 = vmatprep.mubr.msk.f32.mxu0 %vm9629_vm0, %v9630_v6 }
 0x3c8   : > { %v12056_v30 = vadd.f32 %v5194_v27, %v5014_v9  ;;  %9439 = vmatprep.mubr.msk.f32.mxu1 %vm9629_vm0, %v9630_v6  ;;  %v6157_v41 = vld [vmem:[#allocation2 + $0x172] sm:$0xff] }
 0x3c9   : > { %v4923_v32 = vpop.f32.mrb[44].mxu0 }
 0x3ca   : > { %v5199_v17 = vpop.f32.mrb[44].mxu1  ;;  %v5015_v49 = vadd.f32 %v4923_v32, %v11847_v59  ;;  %v9083_v29 = vpop.f32.mrb[45].mxu0  ;;  %9375 = vmatmul.mubr.msk.f32.gmra.mrb[150].mxu0 %vm391_vm3, %v11872_v51  ;;  %v6152_v51 = vld [vmem:[#allocation2 + $0x14a] sm:$0xff] }
 0x3cb   : > { %v9148_v25 = vpop.f32.mrb[45].mxu1  ;;  %9440 = vmatmul.mubr.msk.f32.gmra.mrb[150].mxu1 %vm391_vm3, %v6151_v26  ;;  %9377 = vmatprep.mubr.msk.f32.mxu0 %vm9629_vm0, %v9630_v6 }
 0x3cc   : > { %v12066_v63 = vadd.f32 %v5199_v17, %v5015_v49  ;;  %9442 = vmatprep.mubr.msk.f32.mxu1 %vm9629_vm0, %v9630_v6  ;;  %v6689_v25 = vld [vmem:[%s10957_s27 + $0xa8] sm:$0xff] }
 0x3cd   : > { %v4928_v0 = vpop.f32.mrb[46].mxu0 }
 0x3ce   : > { %v5204_v53 = vpop.f32.mrb[46].mxu1  ;;  %v5016_v59 = vadd.f32 %v4928_v0, %v11858_v55  ;;  %v9086_v52 = vpop.f32.mrb[47].mxu0  ;;  %9378 = vmatmul.mubr.msk.f32.gmra.mrb[152].mxu0 %vm391_vm3, %v11883_v44  ;;  %v6153_v44 = vld [vmem:[#allocation2 + $0x152] sm:$0xff] }
 0x3cf   : > { %v9151_v14 = vpop.f32.mrb[47].mxu1  ;;  %9443 = vmatmul.mubr.msk.f32.gmra.mrb[152].mxu1 %vm391_vm3, %v6152_v51  ;;  %9380 = vmatprep.mubr.msk.f32.mxu0 %vm9629_vm0, %v9630_v6  ;;  %v6690_v51 = vld [vmem:[%s10957_s27 + $0xb0] sm:$0xff] }
 0x3d0   : > { %v12076_v11 = vadd.f32 %v5204_v53, %v5016_v59  ;;  %9445 = vmatprep.mubr.msk.f32.mxu1 %vm9629_vm0, %v9630_v6  ;;  %v6413_v53 = vld [vmem:[#allocation2 + $0xd3] sm:$0xff] }
 0x3d1   : > { %v4933_v13 = vpop.f32.mrb[48].mxu0 }
 0x3d2   : > { %v5209_v46 = vpop.f32.mrb[48].mxu1  ;;  %v5017_v55 = vadd.f32 %v4933_v13, %v11869_v24  ;;  %v9089_v7 = vpop.f32.mrb[49].mxu0  ;;  %9381 = vmatmul.mubr.msk.f32.gmra.mrb[154].mxu0 %vm391_vm3, %v11894_v38  ;;  %v6154_v38 = vld [vmem:[#allocation2 + $0x15a] sm:$0xff] }
 0x3d3   : > { %v9154_v5 = vpop.f32.mrb[49].mxu1  ;;  %9446 = vmatmul.mubr.msk.f32.gmra.mrb[154].mxu1 %vm391_vm3, %v6153_v44  ;;  %9383 = vmatprep.mubr.msk.f32.mxu0 %vm9629_vm0, %v9630_v6 }
 0x3d4   : > { %v12086_v56 = vadd.f32 %v5209_v46, %v5017_v55  ;;  %9448 = vmatprep.mubr.msk.f32.mxu1 %vm9629_vm0, %v9630_v6  ;;  %v6414_v55 = vld [vmem:[#allocation2 + $0xdb] sm:$0xff] }
 0x3d5   : > { %v4938_v18 = vpop.f32.mrb[50].mxu0 }
 0x3d6   : > { %v5214_v2 = vpop.f32.mrb[50].mxu1  ;;  %v5018_v24 = vadd.f32 %v4938_v18, %v11880_v42  ;;  %v9092_v19 = vpop.f32.mrb[51].mxu0  ;;  %9384 = vmatmul.mubr.msk.f32.gmra.mrb[156].mxu0 %vm391_vm3, %v11905_v47  ;;  %v6155_v47 = vld [vmem:[#allocation2 + $0x162] sm:$0xff]  ;;  %v6691_v18 = vld [vmem:[%s10957_s27 + $0xb8] sm:$0xff] }
 0x3d7   : > { %v9157_v54 = vpop.f32.mrb[51].mxu1  ;;  %9449 = vmatmul.mubr.msk.f32.gmra.mrb[156].mxu1 %vm391_vm3, %v6154_v38  ;;  %9386 = vmatprep.mubr.msk.f32.mxu0 %vm9629_vm0, %v9630_v6  ;;  %v6415_v19 = vld [vmem:[#allocation2 + $0xe3] sm:$0xff] }
 0x3d8   : > { %v12096_v1 = vadd.f32 %v5214_v2, %v5018_v24  ;;  %9451 = vmatprep.mubr.msk.f32.mxu1 %vm9629_vm0, %v9630_v6 }
 0x3d9   : > { %v4943_v50 = vpop.f32.mrb[52].mxu0 }
 0x3da   : > { %v5219_v45 = vpop.f32.mrb[52].mxu1  ;;  %v5019_v42 = vadd.f32 %v4943_v50, %v11891_v35  ;;  %v9095_v10 = vpop.f32.mrb[53].mxu0  ;;  %9387 = vmatmul.mubr.msk.f32.gmra.mrb[158].mxu0 %vm391_vm3, %v11916_v34  ;;  %v5881_v34 = vld [vmem:[#allocation2 + $0x171] sm:$0xff] }
 0x3db   : > { %v9160_v3 = vpop.f32.mrb[53].mxu1  ;;  %9452 = vmatmul.mubr.msk.f32.gmra.mrb[158].mxu1 %vm391_vm3, %v6155_v47  ;;  %9389 = vmatprep.mubr.msk.f32.mxu0 %vm9629_vm0, %v9630_v6 }
 0x3dc   : > { %v12106_v43 = vadd.f32 %v5219_v45, %v5019_v42  ;;  %9454 = vmatprep.mubr.msk.f32.mxu1 %vm9629_vm0, %v9630_v6  ;;  %v6692_v45 = vld [vmem:[%s10957_s27 + $0xc0] sm:$0xff]  ;;  %v6416_v3 = vld [vmem:[#allocation2 + $0xeb] sm:$0xff] }
 0x3dd   : > { %v4948_v28 = vpop.f32.mrb[54].mxu0 }
 0x3de   : > { %v5224_v35 = vpop.f32.mrb[54].mxu1  ;;  %v5020_v33 = vadd.f32 %v4948_v28, %v11902_v36  ;;  %v9098_v27 = vpop.f32.mrb[55].mxu0  ;;  %9390 = vmatmul.mubr.msk.f32.gmra.mrb[160].mxu0 %vm391_vm3, %v5880_v8  ;;  %v6693_v28 = vld [vmem:[%s10957_s27 + $0xc8] sm:$0xff] }
 0x3df   : > { %v9163_v9 = vpop.f32.mrb[55].mxu1  ;;  %9455 = vmatmul.mubr.msk.f32.gmra.mrb[160].mxu1 %vm391_vm3, %v6156_v20  ;;  %9392 = vmatprep.mubr.msk.f32.mxu0 %vm9629_vm0, %v9630_v6 }
 0x3e0   : > { %v12115_v37 = vadd.f32 %v5224_v35, %v5020_v33  ;;  %9457 = vmatprep.mubr.msk.f32.mxu1 %vm9629_vm0, %v9630_v6  ;;  %v6417_v33 = vld [vmem:[#allocation2 + $0xf3] sm:$0xff] }
 0x3e1   : > { %v4953_v40 = vpop.f32.mrb[56].mxu0 }
 0x3e2   : > { %v5229_v32 = vpop.f32.mrb[56].mxu1  ;;  %v5021_v36 = vadd.f32 %v4953_v40, %v11913_v57  ;;  %v9101_v17 = vpop.f32.mrb[57].mxu0  ;;  %9393 = vmatmul.mubr.msk.f32.gmra.mrb[162].mxu0 %vm391_vm3, %v5881_v34  ;;  %v6694_v40 = vld [vmem:[%s10957_s27 + $0xd0] sm:$0xff] }
 0x3e3   : > { %v9166_v49 = vpop.f32.mrb[57].mxu1  ;;  %9458 = vmatmul.mubr.msk.f32.gmra.mrb[162].mxu1 %vm391_vm3, %v6157_v41  ;;  %9462 = vmatprep.mubr.msk.f32.mxu0 %vm9629_vm0, %v9630_v6 }
 0x3e4   : > { %v12124_v29 = vadd.f32 %v5229_v32, %v5021_v36  ;;  %9527 = vmatprep.mubr.msk.f32.mxu1 %vm9629_vm0, %v9630_v6  ;;  %v6418_v36 = vld [vmem:[#allocation2 + $0xfb] sm:$0xff] }
 0x3e5   : > { %v4958_v26 = vpop.f32.mrb[58].mxu0 }
 0x3e6   : > { %v5234_v0 = vpop.f32.mrb[58].mxu1  ;;  %v5022_v57 = vadd.f32 %v4958_v26, %v11927_v58  ;;  %v9104_v59 = vpop.f32.mrb[59].mxu0  ;;  %9463 = vmatmul.mubr.msk.f32.vlgmr.msra.gmra.mrb[164].mxu0 %vm391_vm3, %v6413_v53 }
 0x3e7   : > { %v9169_v52 = vpop.f32.mrb[59].mxu1  ;;  %9465 = vmatprep.mubr.msk.f32.mxu0 %vm9629_vm0, %v9630_v6  ;;  %9528 = vmatmul.mubr.msk.f32.vlgmr.msra.gmra.mrb[164].mxu1 %vm3851_vm4, %v6689_v25 }
 0x3e8   : > { %v12134_v14 = vadd.f32 %v5234_v0, %v5022_v57  ;;  %9530 = vmatprep.mubr.msk.f32.mxu1 %vm9629_vm0, %v9630_v6  ;;  %v6695_v0 = vld [vmem:[%s10957_s27 + $0xd8] sm:$0xff]  ;;  %v6419_v57 = vld [vmem:[#allocation2 + $0x103] sm:$0xff] }
 0x3e9   : > { %v4963_v13 = vpop.f32.mrb[60].mxu0 }
 0x3ea   : > { %v5239_v46 = vpop.f32.mrb[60].mxu1  ;;  %v5023_v58 = vadd.f32 %v4963_v13, %v11940_v21  ;;  %v9107_v7 = vpop.f32.mrb[61].mxu0  ;;  %9466 = vmatmul.mubr.msk.f32.gmra.mrb[166].mxu0 %vm391_vm3, %v6414_v55 }
 0x3eb   : > { %v9172_v5 = vpop.f32.mrb[61].mxu1  ;;  %9468 = vmatprep.mubr.msk.f32.mxu0 %vm9629_vm0, %v9630_v6  ;;  %9531 = vmatmul.mubr.msk.f32.gmra.mrb[166].mxu1 %vm3851_vm4, %v6690_v51 }
 0x3ec   : > { %v12144_v44 = vadd.f32 %v5239_v46, %v5023_v58  ;;  %9533 = vmatprep.mubr.msk.f32.mxu1 %vm9629_vm0, %v9630_v6  ;;  %v6696_v46 = vld [vmem:[%s10957_s27 + $0xe0] sm:$0xff]  ;;  %v6420_v58 = vld [vmem:[#allocation2 + $0x10b] sm:$0xff] }
 0x3ed   : > { %v4968_v2 = vpop.f32.mrb[62].mxu0 }
 0x3ee   : > { %v5244_v24 = vpop.f32.mrb[62].mxu1  ;;  %v5024_v21 = vadd.f32 %v4968_v2, %v11949_v22  ;;  %v9110_v54 = vpop.f32.mrb[63].mxu0  ;;  %9469 = vmatmul.mubr.msk.f32.gmra.mrb[168].mxu0 %vm391_vm3, %v6415_v19 }
 0x3ef   : > { %v9175_v38 = vpop.f32.mrb[63].mxu1  ;;  %9471 = vmatprep.mubr.msk.f32.mxu0 %vm9629_vm0, %v9630_v6  ;;  %9534 = vmatmul.mubr.msk.f32.gmra.mrb[168].mxu1 %vm3851_vm4, %v6691_v18 }
 0x3f0   : > { %v12154_v50 = vadd.f32 %v5244_v24, %v5024_v21  ;;  %9536 = vmatprep.mubr.msk.f32.mxu1 %vm9629_vm0, %v9630_v6  ;;  %v6697_v24 = vld [vmem:[%s10957_s27 + $0xe8] sm:$0xff]  ;;  %v6421_v21 = vld [vmem:[#allocation2 + $0x113] sm:$0xff] }
 0x3f1   : > { %v4973_v42 = vpop.f32.mrb[64].mxu0 }
 0x3f2   : > { %v5249_v10 = vpop.f32.mrb[64].mxu1  ;;  %v5025_v22 = vadd.f32 %v4973_v42, %v11958_v62  ;;  %v9113_v47 = vpop.f32.mrb[65].mxu0  ;;  %9472 = vmatmul.mubr.msk.f32.gmra.mrb[170].mxu0 %vm391_vm3, %v6416_v3 }
 0x3f3   : > { %v9178_v8 = vpop.f32.mrb[65].mxu1  ;;  %9474 = vmatprep.mubr.msk.f32.mxu0 %vm9629_vm0, %v9630_v6  ;;  %9537 = vmatmul.mubr.msk.f32.gmra.mrb[170].mxu1 %vm3851_vm4, %v6692_v45 }
 0x3f4   : > { %v12164_v20 = vadd.f32 %v5249_v10, %v5025_v22  ;;  %9539 = vmatprep.mubr.msk.f32.mxu1 %vm9629_vm0, %v9630_v6  ;;  %v6698_v10 = vld [vmem:[%s10957_s27 + $0xf0] sm:$0xff]  ;;  %v6422_v22 = vld [vmem:[#allocation2 + $0x11b] sm:$0xff] }
 0x3f5   : > { %v4978_v35 = vpop.f32.mrb[66].mxu0 }
 0x3f6   : > { %v5026_v62 = vadd.f32 %v4978_v35, %v11967_v60  ;;  %v5254_v27 = vpop.f32.mrb[66].mxu1  ;;  %v9116_v9 = vpop.f32.mrb[67].mxu0  ;;  %9475 = vmatmul.mubr.msk.f32.gmra.mrb[172].mxu0 %vm391_vm3, %v6417_v33  ;;  %v6699_v33 = vld [vmem:[%s10957_s27 + $0xf8] sm:$0xff] }
 0x3f7   : > { %v9181_v34 = vpop.f32.mrb[67].mxu1  ;;  %9477 = vmatprep.mubr.msk.f32.mxu0 %vm9629_vm0, %v9630_v6  ;;  %9540 = vmatmul.mubr.msk.f32.gmra.mrb[172].mxu1 %vm3851_vm4, %v6693_v28 }
 0x3f8   : > { %v12174_v41 = vadd.f32 %v5254_v27, %v5026_v62  ;;  %9542 = vmatprep.mubr.msk.f32.mxu1 %vm9629_vm0, %v9630_v6  ;;  %v6423_v27 = vld [vmem:[#allocation2 + $0x123] sm:$0xff] }
 0x3f9   : > { %v4983_v32 = vpop.f32.mrb[68].mxu0 }
 0x3fa   : > { %v5027_v60 = vadd.f32 %v4983_v32, %v11976_v31  ;;  %v5259_v17 = vpop.f32.mrb[68].mxu1  ;;  %v9119_v49 = vpop.f32.mrb[69].mxu0  ;;  %9478 = vmatmul.mubr.msk.f32.gmra.mrb[174].mxu0 %vm391_vm3, %v6418_v36  ;;  %v6700_v36 = vld [vmem:[%s10957_s27 + $0x100] sm:$0xff] }
 0x3fb   : > { %v9184_v25 = vpop.f32.mrb[69].mxu1  ;;  %9480 = vmatprep.mubr.msk.f32.mxu0 %vm9629_vm0, %v9630_v6  ;;  %9543 = vmatmul.mubr.msk.f32.gmra.mrb[174].mxu1 %vm3851_vm4, %v6694_v40 }
 0x3fc   : > { %v12184_v26 = vadd.f32 %v5259_v17, %v5027_v60  ;;  %9545 = vmatprep.mubr.msk.f32.mxu1 %vm9629_vm0, %v9630_v6  ;;  %v6424_v17 = vld [vmem:[#allocation2 + $0x12b] sm:$0xff] }
 0x3fd   : > { %v4988_v53 = vpop.f32.mrb[70].mxu0 }
 0x3fe   : > { %v5028_v31 = vadd.f32 %v4988_v53, %v11985_v39  ;;  %v5264_v59 = vpop.f32.mrb[70].mxu1  ;;  %v9122_v52 = vpop.f32.mrb[71].mxu0  ;;  %9481 = vmatmul.mubr.msk.f32.gmra.mrb[176].mxu0 %vm391_vm3, %v6419_v57  ;;  %v6701_v57 = vld [vmem:[%s10957_s27 + $0x108] sm:$0xff] }
 0x3ff   : > { %v9187_v51 = vpop.f32.mrb[71].mxu1  ;;  %9483 = vmatprep.mubr.msk.f32.mxu0 %vm9629_vm0, %v9630_v6  ;;  %9546 = vmatmul.mubr.msk.f32.gmra.mrb[176].mxu1 %vm3851_vm4, %v6695_v0 }
 0x400   : > { %v12194_v13 = vadd.f32 %v5264_v59, %v5028_v31  ;;  %9548 = vmatprep.mubr.msk.f32.mxu1 %vm9629_vm0, %v9630_v6  ;;  %v6425_v59 = vld [vmem:[#allocation2 + $0x133] sm:$0xff] }
 0x401   : > { %v4993_v55 = vpop.f32.mrb[72].mxu0 }
 0x402   : > { %v5029_v39 = vadd.f32 %v4993_v55, %v11994_v12  ;;  %v5269_v7 = vpop.f32.mrb[72].mxu1  ;;  %v9125_v5 = vpop.f32.mrb[73].mxu0  ;;  %9484 = vmatmul.mubr.msk.f32.gmra.mrb[178].mxu0 %vm391_vm3, %v6420_v58  ;;  %v6702_v58 = vld [vmem:[%s10957_s27 + $0x110] sm:$0xff] }
 0x403   : > { %v9190_v18 = vpop.f32.mrb[73].mxu1  ;;  %9486 = vmatprep.mubr.msk.f32.mxu0 %vm9629_vm0, %v9630_v6  ;;  %9549 = vmatmul.mubr.msk.f32.gmra.mrb[178].mxu1 %vm3851_vm4, %v6696_v46 }
 0x404   : > { %v12204_v2 = vadd.f32 %v5269_v7, %v5029_v39  ;;  %9551 = vmatprep.mubr.msk.f32.mxu1 %vm9629_vm0, %v9630_v6  ;;  %v6426_v7 = vld [vmem:[#allocation2 + $0x13b] sm:$0xff] }
 0x405   : > { %v4998_v19 = vpop.f32.mrb[74].mxu0 }
 0x406   : > { %v5030_v12 = vadd.f32 %v4998_v19, %v12003_v48  ;;  %v5274_v54 = vpop.f32.mrb[74].mxu1  ;;  %v9128_v38 = vpop.f32.mrb[75].mxu0  ;;  %9487 = vmatmul.mubr.msk.f32.gmra.mrb[180].mxu0 %vm391_vm3, %v6421_v21  ;;  %v6703_v21 = vld [vmem:[%s10957_s27 + $0x118] sm:$0xff] }
 0x407   : > { %v9193_v45 = vpop.f32.mrb[75].mxu1  ;;  %9489 = vmatprep.mubr.msk.f32.mxu0 %vm9629_vm0, %v9630_v6  ;;  %9552 = vmatmul.mubr.msk.f32.gmra.mrb[180].mxu1 %vm3851_vm4, %v6697_v24 }
 0x408   : > { %v12214_v42 = vadd.f32 %v5274_v54, %v5030_v12  ;;  %9554 = vmatprep.mubr.msk.f32.mxu1 %vm9629_vm0, %v9630_v6  ;;  %v6427_v54 = vld [vmem:[#allocation2 + $0x143] sm:$0xff] }
 0x409   : > { %v5003_v3 = vpop.f32.mrb[76].mxu0 }
 0x40a   : > { %v5031_v48 = vadd.f32 %v5003_v3, %v12012_v15  ;;  %v5279_v47 = vpop.f32.mrb[76].mxu1  ;;  %v9131_v8 = vpop.f32.mrb[77].mxu0  ;;  %9490 = vmatmul.mubr.msk.f32.gmra.mrb[182].mxu0 %vm391_vm3, %v6422_v22  ;;  %v6704_v22 = vld [vmem:[%s10957_s27 + $0x120] sm:$0xff] }
 0x40b   : > { %v9196_v28 = vpop.f32.mrb[77].mxu1  ;;  %9492 = vmatprep.mubr.msk.f32.mxu0 %vm9629_vm0, %v9630_v6  ;;  %9555 = vmatmul.mubr.msk.f32.gmra.mrb[182].mxu1 %vm3851_vm4, %v6698_v10 }
 0x40c   : > { %v12224_v35 = vadd.f32 %v5279_v47, %v5031_v48  ;;  %9557 = vmatprep.mubr.msk.f32.mxu1 %vm9629_vm0, %v9630_v6  ;;  %v6428_v47 = vld [vmem:[#allocation2 + $0x14b] sm:$0xff] }
 0x40d   : > { %v5008_v62 = vpop.f32.mrb[78].mxu0 }
 0x40e   : > { %v5032_v15 = vadd.f32 %v5008_v62, %v12021_v23  ;;  %v5284_v9 = vpop.f32.mrb[78].mxu1  ;;  %v9134_v34 = vpop.f32.mrb[79].mxu0  ;;  %9493 = vmatmul.mubr.msk.f32.gmra.mrb[184].mxu0 %vm391_vm3, %v6423_v27  ;;  %v6705_v27 = vld [vmem:[%s10957_s27 + $0x128] sm:$0xff] }
 0x40f   : > { %v9199_v40 = vpop.f32.mrb[79].mxu1  ;;  %9495 = vmatprep.mubr.msk.f32.mxu0 %vm9629_vm0, %v9630_v6  ;;  %9558 = vmatmul.mubr.msk.f32.gmra.mrb[184].mxu1 %vm3851_vm4, %v6699_v33 }
 0x410   : > { %v12234_v32 = vadd.f32 %v5284_v9, %v5032_v15  ;;  %9560 = vmatprep.mubr.msk.f32.mxu1 %vm9629_vm0, %v9630_v6  ;;  %v6429_v9 = vld [vmem:[#allocation2 + $0x153] sm:$0xff] }
 0x411   : > { %v5460_v60 = vpop.f32.mrb[80].mxu0 }
 0x412   : > { %v5564_v23 = vadd.f32 %v5460_v60, %v12036_v16  ;;  %v5736_v49 = vpop.f32.mrb[80].mxu1  ;;  %v9204_v25 = vpop.f32.mrb[81].mxu0  ;;  %9496 = vmatmul.mubr.msk.f32.gmra.mrb[186].mxu0 %vm391_vm3, %v6424_v17  ;;  %v6706_v17 = vld [vmem:[%s10957_s27 + $0x130] sm:$0xff] }
 0x413   : > { %v9269_v0 = vpop.f32.mrb[81].mxu1  ;;  %9498 = vmatprep.mubr.msk.f32.mxu0 %vm9629_vm0, %v9630_v6  ;;  %9561 = vmatmul.mubr.msk.f32.gmra.mrb[186].mxu1 %vm3851_vm4, %v6700_v36 }
 0x414   : > { %v12244_v53 = vadd.f32 %v5736_v49, %v5564_v23  ;;  %9563 = vmatprep.mubr.msk.f32.mxu1 %vm9629_vm0, %v9630_v6  ;;  %v6430_v49 = vld [vmem:[#allocation2 + $0x15b] sm:$0xff] }
 0x415   : > { %v5465_v31 = vpop.f32.mrb[82].mxu0 }
 0x416   : > { %v5565_v16 = vadd.f32 %v5465_v31, %v12046_v4  ;;  %v5741_v52 = vpop.f32.mrb[82].mxu1  ;;  %v9207_v51 = vpop.f32.mrb[83].mxu0  ;;  %9499 = vmatmul.mubr.msk.f32.gmra.mrb[188].mxu0 %vm391_vm3, %v6425_v59  ;;  %v6707_v59 = vld [vmem:[%s10957_s27 + $0x138] sm:$0xff] }
 0x417   : > { %v9272_v46 = vpop.f32.mrb[83].mxu1  ;;  %9501 = vmatprep.mubr.msk.f32.mxu0 %vm9629_vm0, %v9630_v6  ;;  %9564 = vmatmul.mubr.msk.f32.gmra.mrb[188].mxu1 %vm3851_vm4, %v6701_v57 }
 0x418   : > { %v12254_v55 = vadd.f32 %v5741_v52, %v5565_v16  ;;  %9566 = vmatprep.mubr.msk.f32.mxu1 %vm9629_vm0, %v9630_v6  ;;  %v6431_v52 = vld [vmem:[#allocation2 + $0x163] sm:$0xff] }
 0x419   : > { %v5470_v39 = vpop.f32.mrb[84].mxu0 }
 0x41a   : > { %v5566_v4 = vadd.f32 %v5470_v39, %v12056_v30  ;;  %v5746_v5 = vpop.f32.mrb[84].mxu1  ;;  %v9210_v18 = vpop.f32.mrb[85].mxu0  ;;  %9502 = vmatmul.mubr.msk.f32.gmra.mrb[190].mxu0 %vm391_vm3, %v6426_v7  ;;  %v6432_v39 = vld [vmem:[#allocation2 + $0x16b] sm:$0xff] }
 0x41b   : > { %v9275_v24 = vpop.f32.mrb[85].mxu1  ;;  %9504 = vmatprep.mubr.msk.f32.mxu0 %vm9629_vm0, %v9630_v6  ;;  %9567 = vmatmul.mubr.msk.f32.gmra.mrb[190].mxu1 %vm3851_vm4, %v6702_v58 }
 0x41c   : > { %v12264_v19 = vadd.f32 %v5746_v5, %v5566_v4  ;;  %9569 = vmatprep.mubr.msk.f32.mxu1 %vm9629_vm0, %v9630_v6  ;;  %v6708_v4 = vld [vmem:[%s10957_s27 + $0x140] sm:$0xff] }
 0x41d   : > { %v5475_v12 = vpop.f32.mrb[86].mxu0 }
 0x41e   : > { %v5567_v30 = vadd.f32 %v5475_v12, %v12066_v63  ;;  %v5751_v38 = vpop.f32.mrb[86].mxu1  ;;  %v9213_v45 = vpop.f32.mrb[87].mxu0  ;;  %9505 = vmatmul.mubr.msk.f32.gmra.mrb[192].mxu0 %vm391_vm3, %v6427_v54  ;;  %v6433_v12 = vld [vmem:[#allocation2 + $0x173] sm:$0xff] }
 0x41f   : > { %v9278_v10 = vpop.f32.mrb[87].mxu1  ;;  %9507 = vmatprep.mubr.msk.f32.mxu0 %vm9629_vm0, %v9630_v6  ;;  %9570 = vmatmul.mubr.msk.f32.gmra.mrb[192].mxu1 %vm3851_vm4, %v6703_v21 }
 0x420   : > { %v12274_v3 = vadd.f32 %v5751_v38, %v5567_v30  ;;  %9572 = vmatprep.mubr.msk.f32.mxu1 %vm9629_vm0, %v9630_v6  ;;  %v6709_v30 = vld [vmem:[%s10957_s27 + $0x148] sm:$0xff] }
 0x421   : > { %v5480_v48 = vpop.f32.mrb[88].mxu0 }
 0x422   : > { %v5568_v63 = vadd.f32 %v5480_v48, %v12076_v11  ;;  %v5756_v8 = vpop.f32.mrb[88].mxu1  ;;  %v9216_v28 = vpop.f32.mrb[89].mxu0  ;;  %9508 = vmatmul.mubr.msk.f32.gmra.mrb[194].mxu0 %vm391_vm3, %v6428_v47 }
 0x423   : > { %v9281_v33 = vpop.f32.mrb[89].mxu1  ;;  %9510 = vmatprep.mubr.msk.f32.mxu0 %vm9629_vm0, %v9630_v6  ;;  %9573 = vmatmul.mubr.msk.f32.gmra.mrb[194].mxu1 %vm3851_vm4, %v6704_v22 }
 0x424   : > { %v12284_v62 = vadd.f32 %v5756_v8, %v5568_v63  ;;  %9575 = vmatprep.mubr.msk.f32.mxu1 %vm9629_vm0, %v9630_v6 }
 0x425   : > { %v5485_v15 = vpop.f32.mrb[90].mxu0 }
 0x426   : > { %v5569_v11 = vadd.f32 %v5485_v15, %v12086_v56  ;;  %v5761_v34 = vpop.f32.mrb[90].mxu1  ;;  %v9219_v40 = vpop.f32.mrb[91].mxu0  ;;  %9511 = vmatmul.mubr.msk.f32.gmra.mrb[196].mxu0 %vm391_vm3, %v6429_v9 }
 0x427   : > { %v9284_v36 = vpop.f32.mrb[91].mxu1  ;;  %9513 = vmatprep.mubr.msk.f32.mxu0 %vm9629_vm0, %v9630_v6  ;;  %9576 = vmatmul.mubr.msk.f32.gmra.mrb[196].mxu1 %vm3851_vm4, %v6705_v27 }
 0x428   : > { %v12294_v60 = vadd.f32 %v5761_v34, %v5569_v11  ;;  %9578 = vmatprep.mubr.msk.f32.mxu1 %vm9629_vm0, %v9630_v6 }
 0x429   : > { %v5490_v23 = vpop.f32.mrb[92].mxu0 }
 0x42a   : > { %v5570_v56 = vadd.f32 %v5490_v23, %v12096_v1  ;;  %v5766_v25 = vpop.f32.mrb[92].mxu1  ;;  %v9222_v0 = vpop.f32.mrb[93].mxu0  ;;  %9514 = vmatmul.mubr.msk.f32.gmra.mrb[198].mxu0 %vm391_vm3, %v6430_v49 }
 0x42b   : > { %v9287_v57 = vpop.f32.mrb[93].mxu1  ;;  %9516 = vmatprep.mubr.msk.f32.mxu0 %vm9629_vm0, %v9630_v6  ;;  %9579 = vmatmul.mubr.msk.f32.gmra.mrb[198].mxu1 %vm3851_vm4, %v6706_v17 }
 0x42c   : > { %v12304_v31 = vadd.f32 %v5766_v25, %v5570_v56  ;;  %9581 = vmatprep.mubr.msk.f32.mxu1 %vm9629_vm0, %v9630_v6 }
 0x42d   : > { %v5495_v16 = vpop.f32.mrb[94].mxu0 }
 0x42e   : > { %v5571_v1 = vadd.f32 %v5495_v16, %v12106_v43  ;;  %v5771_v51 = vpop.f32.mrb[94].mxu1  ;;  %v9225_v46 = vpop.f32.mrb[95].mxu0  ;;  %9517 = vmatmul.mubr.msk.f32.gmra.mrb[200].mxu0 %vm391_vm3, %v6431_v52 }
 0x42f   : > { %v9290_v58 = vpop.f32.mrb[95].mxu1  ;;  %9519 = vmatprep.mubr.msk.f32.mxu0 %vm9629_vm0, %v9630_v6  ;;  %9582 = vmatmul.mubr.msk.f32.gmra.mrb[200].mxu1 %vm3851_vm4, %v6707_v59 }
 0x430   : > { %v12314_v7 = vadd.f32 %v5771_v51, %v5571_v1  ;;  %9584 = vmatprep.mubr.msk.f32.mxu1 %vm9629_vm0, %v9630_v6 }
 0x431   : > { %v5500_v5 = vpop.f32.mrb[96].mxu0 }
 0x432   : > { %v5572_v43 = vadd.f32 %v5500_v5, %v12115_v37  ;;  %v5776_v18 = vpop.f32.mrb[96].mxu1  ;;  %v9228_v24 = vpop.f32.mrb[97].mxu0  ;;  %9520 = vmatmul.mubr.msk.f32.gmra.mrb[202].mxu0 %vm391_vm3, %v6432_v39 }
 0x433   : > { %v9293_v21 = vpop.f32.mrb[97].mxu1  ;;  %9522 = vmatprep.mubr.msk.f32.mxu0 %vm9629_vm0, %v9630_v6  ;;  %9585 = vmatmul.mubr.msk.f32.gmra.mrb[202].mxu1 %vm3851_vm4, %v6708_v4 }
 0x434   : > { %v12324_v54 = vadd.f32 %v5776_v18, %v5572_v43  ;;  %9587 = vmatprep.mubr.msk.f32.mxu1 %vm9629_vm0, %v9630_v6 }
 0x435   : > { %v5505_v38 = vpop.f32.mrb[98].mxu0 }
 0x436   : > { %v5573_v37 = vadd.f32 %v5505_v38, %v12124_v29  ;;  %v5781_v45 = vpop.f32.mrb[98].mxu1  ;;  %v9231_v10 = vpop.f32.mrb[99].mxu0  ;;  %9523 = vmatmul.mubr.msk.f32.gmra.mrb[204].mxu0 %vm391_vm3, %v6433_v12 }
 0x437   : > { %v9296_v22 = vpop.f32.mrb[99].mxu1  ;;  %9588 = vmatmul.mubr.msk.f32.gmra.mrb[204].mxu1 %vm3851_vm4, %v6709_v30 }
 0x438   : > { %v12332_v48 = vadd.f32 %v5781_v45, %v5573_v37 }
 0x439   : > { %v5510_v47 = vpop.f32.mrb[100].mxu0 }
 0x43a   : > { %v5574_v63 = vadd.f32 %v5510_v47, %v12134_v14  ;;  %v5786_v8 = vpop.f32.mrb[100].mxu1  ;;  %v9234_v28 = vpop.f32.mrb[101].mxu0 }
 0x43b   : > { %v9299_v33 = vpop.f32.mrb[101].mxu1 }
 0x43c   : > { %v12335_v6 = vadd.f32 %v5786_v8, %v5574_v63 }
 0x43d   : > { %v5515_v27 = vpop.f32.mrb[102].mxu0 }
 0x43e   : > { %v5575_v29 = vadd.f32 %v5515_v27, %v12144_v44  ;;  %v5791_v15 = vpop.f32.mrb[102].mxu1  ;;  %v9237_v9 = vpop.f32.mrb[103].mxu0 }
 0x43f   : > { %v9302_v11 = vpop.f32.mrb[103].mxu1 }
 0x440   : > { %v12338_v34 = vadd.f32 %v5791_v15, %v5575_v29 }
 0x441   : > { %v5520_v40 = vpop.f32.mrb[104].mxu0 }
 0x442   : > { %v5576_v36 = vadd.f32 %v5520_v40, %v12154_v50  ;;  %v5796_v17 = vpop.f32.mrb[104].mxu1  ;;  %v9240_v23 = vpop.f32.mrb[105].mxu0 }
 0x443   : > { %v9305_v49 = vpop.f32.mrb[105].mxu1 }
 0x444   : > { %v12341_v14 = vadd.f32 %v5796_v17, %v5576_v36 }
 0x445   : > { %v5525_v56 = vpop.f32.mrb[106].mxu0 }
 0x446   : > { %v5577_v25 = vadd.f32 %v5525_v56, %v12164_v20  ;;  %v5801_v0 = vpop.f32.mrb[106].mxu1  ;;  %v9243_v57 = vpop.f32.mrb[107].mxu0 }
 0x447   : > { %v9308_v59 = vpop.f32.mrb[107].mxu1 }
 0x448   : > { %v12344_v44 = vadd.f32 %v5801_v0, %v5577_v25 }
 0x449   : > { %v5530_v16 = vpop.f32.mrb[108].mxu0 }
 0x44a   : > { %v5578_v52 = vadd.f32 %v5530_v16, %v12174_v41  ;;  %v5806_v1 = vpop.f32.mrb[108].mxu1  ;;  %v9246_v51 = vpop.f32.mrb[109].mxu0 }
 0x44b   : > { %v9311_v46 = vpop.f32.mrb[109].mxu1 }
 0x44c   : > { %v12347_v50 = vadd.f32 %v5806_v1, %v5578_v52 }
 0x44d   : > { %v5535_v58 = vpop.f32.mrb[110].mxu0 }
 0x44e   : > { %v5579_v39 = vadd.f32 %v5535_v58, %v12184_v26  ;;  %v5811_v4 = vpop.f32.mrb[110].mxu1  ;;  %v9249_v5 = vpop.f32.mrb[111].mxu0 }
 0x44f   : > { %v9314_v43 = vpop.f32.mrb[111].mxu1 }
 0x450   : > { %v12350_v20 = vadd.f32 %v5811_v4, %v5579_v39 }
 0x451   : > { %v5540_v18 = vpop.f32.mrb[112].mxu0 }
 0x452   : > { %v5580_v24 = vadd.f32 %v5540_v18, %v12194_v13  ;;  %v5816_v21 = vpop.f32.mrb[112].mxu1  ;;  %v9252_v12 = vpop.f32.mrb[113].mxu0 }
 0x453   : > { %v9317_v30 = vpop.f32.mrb[113].mxu1 }
 0x454   : > { %v12353_v41 = vadd.f32 %v5816_v21, %v5580_v24 }
 0x455   : > { %v5545_v38 = vpop.f32.mrb[114].mxu0 }
 0x456   : > { %v5581_v37 = vadd.f32 %v5545_v38, %v12204_v2  ;;  %v5821_v45 = vpop.f32.mrb[114].mxu1  ;;  %v9255_v10 = vpop.f32.mrb[115].mxu0 }
 0x457   : > { %v9320_v22 = vpop.f32.mrb[115].mxu1 }
 0x458   : > { %v12356_v26 = vadd.f32 %v5821_v45, %v5581_v37 }
 0x459   : > { %v5550_v47 = vpop.f32.mrb[116].mxu0 }
 0x45a   : > { %v5582_v63 = vadd.f32 %v5550_v47, %v12214_v42  ;;  %v5826_v8 = vpop.f32.mrb[116].mxu1  ;;  %v9258_v28 = vpop.f32.mrb[117].mxu0 }
 0x45b   : > { %v9323_v33 = vpop.f32.mrb[117].mxu1 }
 0x45c   : > { %v12359_v13 = vadd.f32 %v5826_v8, %v5582_v63 }
 0x45d   : > { %v5555_v27 = vpop.f32.mrb[118].mxu0 }
 0x45e   : > { %v5583_v29 = vadd.f32 %v5555_v27, %v12224_v35  ;;  %v5831_v15 = vpop.f32.mrb[118].mxu1  ;;  %v9261_v9 = vpop.f32.mrb[119].mxu0 }
 0x45f   : > { %v9326_v11 = vpop.f32.mrb[119].mxu1 }
 0x460   : > { %v12362_v2 = vadd.f32 %v5831_v15, %v5583_v29 }
 0x461   : > { %v5560_v40 = vpop.f32.mrb[120].mxu0 }
 0x462   : > { %v5584_v36 = vadd.f32 %v5560_v40, %v12234_v32  ;;  %v5836_v17 = vpop.f32.mrb[120].mxu1  ;;  %v9264_v23 = vpop.f32.mrb[121].mxu0 }
 0x463   : > { %v9329_v49 = vpop.f32.mrb[121].mxu1 }
 0x464   : > { %v12365_v42 = vadd.f32 %v5836_v17, %v5584_v36 }
 0x465   : > { %v6012_v56 = vpop.f32.mrb[122].mxu0 }
 0x466   : > { %v6116_v25 = vadd.f32 %v6012_v56, %v12244_v53  ;;  %v6288_v0 = vpop.f32.mrb[122].mxu1  ;;  %v9334_v57 = vpop.f32.mrb[123].mxu0 }
 0x467   : > { %v9399_v59 = vpop.f32.mrb[123].mxu1 }
 0x468   : > { %v12368_v35 = vadd.f32 %v6288_v0, %v6116_v25 }
 0x469   : > { %v6017_v16 = vpop.f32.mrb[124].mxu0 }
 0x46a   : > { %v6117_v52 = vadd.f32 %v6017_v16, %v12254_v55  ;;  %v6293_v1 = vpop.f32.mrb[124].mxu1  ;;  %v9337_v51 = vpop.f32.mrb[125].mxu0 }
 0x46b   : > { %v9402_v46 = vpop.f32.mrb[125].mxu1 }
 0x46c   : > { %v12371_v32 = vadd.f32 %v6293_v1, %v6117_v52 }
 0x46d   : > { %v6022_v58 = vpop.f32.mrb[126].mxu0 }
 0x46e   : > { %v6118_v39 = vadd.f32 %v6022_v58, %v12264_v19  ;;  %v6298_v4 = vpop.f32.mrb[126].mxu1  ;;  %v9340_v5 = vpop.f32.mrb[127].mxu0 }
 0x46f   : > { %v9405_v43 = vpop.f32.mrb[127].mxu1 }
 0x470   : > { %v12374_v53 = vadd.f32 %v6298_v4, %v6118_v39 }
 0x471   : > { %v6027_v18 = vpop.f32.mrb[128].mxu0 }
 0x472   : > { %v6119_v24 = vadd.f32 %v6027_v18, %v12274_v3  ;;  %v6303_v21 = vpop.f32.mrb[128].mxu1  ;;  %v9343_v12 = vpop.f32.mrb[129].mxu0 }
 0x473   : > { %v9408_v30 = vpop.f32.mrb[129].mxu1 }
 0x474   : > { %v12377_v55 = vadd.f32 %v6303_v21, %v6119_v24 }
 0x475   : > { %v6032_v38 = vpop.f32.mrb[130].mxu0 }
 0x476   : > { %v6120_v37 = vadd.f32 %v6032_v38, %v12284_v62  ;;  %v6308_v45 = vpop.f32.mrb[130].mxu1  ;;  %v9346_v10 = vpop.f32.mrb[131].mxu0 }
 0x477   : > { %v9411_v22 = vpop.f32.mrb[131].mxu1 }
 0x478   : > { %v12380_v19 = vadd.f32 %v6308_v45, %v6120_v37 }
 0x479   : > { %v6037_v47 = vpop.f32.mrb[132].mxu0 }
 0x47a   : > { %v6121_v63 = vadd.f32 %v6037_v47, %v12294_v60  ;;  %v6313_v8 = vpop.f32.mrb[132].mxu1  ;;  %v9349_v28 = vpop.f32.mrb[133].mxu0 }
 0x47b   : > { %v9414_v33 = vpop.f32.mrb[133].mxu1 }
 0x47c   : > { %v12383_v3 = vadd.f32 %v6313_v8, %v6121_v63 }
 0x47d   : > { %v6042_v27 = vpop.f32.mrb[134].mxu0 }
 0x47e   : > { %v6122_v29 = vadd.f32 %v6042_v27, %v12304_v31  ;;  %v6318_v15 = vpop.f32.mrb[134].mxu1  ;;  %v9352_v9 = vpop.f32.mrb[135].mxu0 }
 0x47f   : > { %v9417_v11 = vpop.f32.mrb[135].mxu1 }
 0x480   : > { %v12386_v62 = vadd.f32 %v6318_v15, %v6122_v29 }
 0x481   : > { %v6047_v40 = vpop.f32.mrb[136].mxu0 }
 0x482   : > { %v6123_v36 = vadd.f32 %v6047_v40, %v12314_v7  ;;  %v6323_v17 = vpop.f32.mrb[136].mxu1  ;;  %v9355_v23 = vpop.f32.mrb[137].mxu0 }
 0x483   : > { %v9420_v49 = vpop.f32.mrb[137].mxu1 }
 0x484   : > { %v12389_v60 = vadd.f32 %v6323_v17, %v6123_v36 }
 0x485   : > { %v6052_v56 = vpop.f32.mrb[138].mxu0 }
 0x486   : > { %v6124_v25 = vadd.f32 %v6052_v56, %v12324_v54  ;;  %v6328_v0 = vpop.f32.mrb[138].mxu1  ;;  %v9358_v57 = vpop.f32.mrb[139].mxu0 }
 0x487   : > { %v9423_v59 = vpop.f32.mrb[139].mxu1 }
 0x488   : > { %v12392_v31 = vadd.f32 %v6328_v0, %v6124_v25 }
 0x489   : > { %v6057_v16 = vpop.f32.mrb[140].mxu0 }
 0x48a   : > { %v6125_v52 = vadd.f32 %v6057_v16, %v12332_v48  ;;  %v6333_v1 = vpop.f32.mrb[140].mxu1  ;;  %v9361_v51 = vpop.f32.mrb[141].mxu0 }
 0x48b   : > { %v9426_v46 = vpop.f32.mrb[141].mxu1 }
 0x48c   : > { %v12395_v7 = vadd.f32 %v6333_v1, %v6125_v52 }
 0x48d   : > { %v6062_v58 = vpop.f32.mrb[142].mxu0 }
 0x48e   : > { %v6126_v39 = vadd.f32 %v6062_v58, %v12335_v6  ;;  %v6338_v4 = vpop.f32.mrb[142].mxu1  ;;  %v9364_v5 = vpop.f32.mrb[143].mxu0 }
 0x48f   : > { %v9429_v43 = vpop.f32.mrb[143].mxu1 }
 0x490   : > { %v12398_v54 = vadd.f32 %v6338_v4, %v6126_v39 }
 0x491   : > { %v6067_v18 = vpop.f32.mrb[144].mxu0 }
 0x492   : > { %v6127_v24 = vadd.f32 %v6067_v18, %v12338_v34  ;;  %v6343_v21 = vpop.f32.mrb[144].mxu1  ;;  %v9367_v12 = vpop.f32.mrb[145].mxu0 }
 0x493   : > { %v9432_v30 = vpop.f32.mrb[145].mxu1 }
 0x494   : > { %v12401_v48 = vadd.f32 %v6343_v21, %v6127_v24 }
 0x495   : > { %v6072_v38 = vpop.f32.mrb[146].mxu0 }
 0x496   : > { %v6128_v37 = vadd.f32 %v6072_v38, %v12341_v14  ;;  %v6348_v45 = vpop.f32.mrb[146].mxu1  ;;  %v9370_v10 = vpop.f32.mrb[147].mxu0 }
 0x497   : > { %v9435_v22 = vpop.f32.mrb[147].mxu1 }
 0x498   : > { %v12404_v6 = vadd.f32 %v6348_v45, %v6128_v37 }
 0x499   : > { %v6077_v47 = vpop.f32.mrb[148].mxu0 }
 0x49a   : > { %v6129_v63 = vadd.f32 %v6077_v47, %v12344_v44  ;;  %v6353_v8 = vpop.f32.mrb[148].mxu1  ;;  %v9373_v28 = vpop.f32.mrb[149].mxu0 }
 0x49b   : > { %v9438_v33 = vpop.f32.mrb[149].mxu1 }
 0x49c   : > { %v12407_v34 = vadd.f32 %v6353_v8, %v6129_v63 }
 0x49d   : > { %v6082_v27 = vpop.f32.mrb[150].mxu0 }
 0x49e   : > { %v6130_v29 = vadd.f32 %v6082_v27, %v12347_v50  ;;  %v6358_v15 = vpop.f32.mrb[150].mxu1  ;;  %v9376_v9 = vpop.f32.mrb[151].mxu0 }
 0x49f   : > { %v9441_v11 = vpop.f32.mrb[151].mxu1 }
 0x4a0   : > { %v12410_v14 = vadd.f32 %v6358_v15, %v6130_v29 }
 0x4a1   : > { %v6087_v40 = vpop.f32.mrb[152].mxu0 }
 0x4a2   : > { %v6131_v36 = vadd.f32 %v6087_v40, %v12350_v20  ;;  %v6363_v17 = vpop.f32.mrb[152].mxu1  ;;  %v9379_v23 = vpop.f32.mrb[153].mxu0 }
 0x4a3   : > { %v9444_v49 = vpop.f32.mrb[153].mxu1 }
 0x4a4   : > { %v12413_v44 = vadd.f32 %v6363_v17, %v6131_v36 }
 0x4a5   : > { %v6092_v56 = vpop.f32.mrb[154].mxu0 }
 0x4a6   : > { %v6132_v25 = vadd.f32 %v6092_v56, %v12353_v41  ;;  %v6368_v0 = vpop.f32.mrb[154].mxu1  ;;  %v9382_v57 = vpop.f32.mrb[155].mxu0 }
 0x4a7   : > { %v9447_v59 = vpop.f32.mrb[155].mxu1 }
 0x4a8   : > { %v12416_v50 = vadd.f32 %v6368_v0, %v6132_v25 }
 0x4a9   : > { %v6097_v16 = vpop.f32.mrb[156].mxu0 }
 0x4aa   : > { %v6133_v52 = vadd.f32 %v6097_v16, %v12356_v26  ;;  %v6373_v1 = vpop.f32.mrb[156].mxu1  ;;  %v9385_v51 = vpop.f32.mrb[157].mxu0 }
 0x4ab   : > { %v9450_v46 = vpop.f32.mrb[157].mxu1 }
 0x4ac   : > { %v12419_v20 = vadd.f32 %v6373_v1, %v6133_v52 }
 0x4ad   : > { %v6102_v58 = vpop.f32.mrb[158].mxu0 }
 0x4ae   : > { %v6134_v39 = vadd.f32 %v6102_v58, %v12359_v13  ;;  %v6378_v4 = vpop.f32.mrb[158].mxu1  ;;  %v9388_v5 = vpop.f32.mrb[159].mxu0 }
 0x4af   : > { %v9453_v43 = vpop.f32.mrb[159].mxu1 }
 0x4b0   : > { %v12422_v41 = vadd.f32 %v6378_v4, %v6134_v39 }
 0x4b1   : > { %v6107_v18 = vpop.f32.mrb[160].mxu0 }
 0x4b2   : > { %v6135_v24 = vadd.f32 %v6107_v18, %v12362_v2  ;;  %v9391_v21 = vpop.f32.mrb[161].mxu0  ;;  %v6383_v12 = vpop.f32.mrb[160].mxu1  ;;  %v12434_v2 = vld [vmem:[%s12596_s6] ss:$0 sm:$0xff] }
 0x4b3   : > { %v9456_v30 = vpop.f32.mrb[161].mxu1 }
 0x4b4   : > { %v12425_v26 = vadd.f32 %v6383_v12, %v6135_v24 }
 0x4b5   : > { %v6112_v38 = vpop.f32.mrb[162].mxu0 }
 0x4b6   : > { %v6136_v37 = vadd.f32 %v6112_v38, %v12365_v42  ;;  %v9394_v45 = vpop.f32.mrb[163].mxu0  ;;  %v6388_v10 = vpop.f32.mrb[162].mxu1 }
 0x4b7   : > { %v9459_v22 = vpop.f32.mrb[163].mxu1 }
 0x4b8   : > { %v12428_v13 = vadd.f32 %v6388_v10, %v6136_v37 }
 0x4b9   : > { %v6564_v47 = vpop.f32.mrb[164].mxu0 }
 0x4ba   : > { %v6668_v63 = vadd.f32 %v6564_v47, %v12368_v35  ;;  %v9464_v8 = vpop.f32.mrb[165].mxu0  ;;  %v6839_v28 = vpop.f32.mrb[164].mxu1  ;;  %v12441_v35 = vld [vmem:[%s12598_s8] ss:$0 sm:$0xff] }
 0x4bb   : > { %v9529_v33 = vpop.f32.mrb[165].mxu1 }
 0x4bc   : > { %v6943_v27 = vadd.f32 %v12434_v2, %v6668_v63 }
 0x4bd   : > { %v6569_v29 = vpop.f32.mrb[166].mxu0 }
 0x4be   : > { %v6964_v42 = vadd.f32 %v6943_v27, %v6839_v28  ;;  %v6669_v15 = vadd.f32 %v6569_v29, %v12371_v32  ;;  %v9467_v9 = vpop.f32.mrb[167].mxu0  ;;  %v6844_v11 = vpop.f32.mrb[166].mxu1 }
 0x4bf   : > { %v9532_v40 = vpop.f32.mrb[167].mxu1 }
 0x4c0   : > { %v6985_v36 = vadd.f32 %v12441_v35, %v6964_v42  ;;  %v6944_v17 = vadd.f32 %v12434_v2, %v6669_v15 }
 0x4c1   : > { %v6574_v23 = vpop.f32.mrb[168].mxu0 }
 0x4c2   : > { %v7006_v49 = vsub.f32 %v6985_v36, %v10106_v61  ;;  %v6965_v56 = vadd.f32 %v6944_v17, %v6844_v11  ;;  %v6670_v25 = vadd.f32 %v6574_v23, %v12374_v53  ;;  %v9470_v32 = vpop.f32.mrb[169].mxu0  ;;  %v6849_v0 = vpop.f32.mrb[168].mxu1 }
 0x4c3   : > { %v9535_v57 = vpop.f32.mrb[169].mxu1 }
 0x4c4   : > { %v7027_v59 = vmax.f32 %v7006_v49, 0.0  ;;  %v6986_v16 = vadd.f32 %v12441_v35, %v6965_v56  ;;  %v6945_v52 = vadd.f32 %v12434_v2, %v6670_v25 }
 0x4c5   : > { %v6579_v1 = vpop.f32.mrb[170].mxu0 }
 0x4c6   : > { %v7048_v51 = vadd.f32 %v7027_v59, %v10106_v61  ;;  %v7007_v46 = vsub.f32 %v6986_v16, %v10106_v61  ;;  %v6966_v58 = vadd.f32 %v6945_v52, %v6849_v0  ;;  %v6671_v39 = vadd.f32 %v6579_v1, %v12377_v55  ;;  %v9473_v4 = vpop.f32.mrb[171].mxu0  ;;  %v6854_v5 = vpop.f32.mrb[170].mxu1 }
 0x4c7   : > { %v9538_v53 = vpop.f32.mrb[171].mxu1 }
 0x4c8   : > { %7069 = vst.msk [vmem:[%s11531_s29 + $0xa8] sm:$0xff] %vm391_vm3, %v7048_v51  ;;  %v7028_v43 = vmax.f32 %v7007_v46, 0.0  ;;  %v6987_v18 = vadd.f32 %v12441_v35, %v6966_v58  ;;  %v6946_v24 = vadd.f32 %v12434_v2, %v6671_v39 }
 0x4c9   : > { %v6584_v21 = vpop.f32.mrb[172].mxu0 }
 0x4ca   : > { %v7049_v12 = vadd.f32 %v7028_v43, %v10106_v61  ;;  %v7008_v30 = vsub.f32 %v6987_v18, %v10106_v61  ;;  %v6967_v38 = vadd.f32 %v6946_v24, %v6854_v5  ;;  %v6672_v37 = vadd.f32 %v6584_v21, %v12380_v19  ;;  %v9476_v55 = vpop.f32.mrb[173].mxu0  ;;  %v6859_v45 = vpop.f32.mrb[172].mxu1 }
 0x4cb   : > { %v9541_v10 = vpop.f32.mrb[173].mxu1 }
 0x4cc   : > { %7070 = vst.msk [vmem:[%s11531_s29 + $0xb0] sm:$0xff] %vm391_vm3, %v7049_v12  ;;  %v7029_v22 = vmax.f32 %v7008_v30, 0.0  ;;  %v6988_v47 = vadd.f32 %v12441_v35, %v6967_v38  ;;  %v6947_v63 = vadd.f32 %v12434_v2, %v6672_v37 }
 0x4cd   : > { %v6589_v8 = vpop.f32.mrb[174].mxu0 }
 0x4ce   : > { %v7050_v28 = vadd.f32 %v7029_v22, %v10106_v61  ;;  %v7009_v33 = vsub.f32 %v6988_v47, %v10106_v61  ;;  %v6968_v27 = vadd.f32 %v6947_v63, %v6859_v45  ;;  %v6673_v29 = vadd.f32 %v6589_v8, %v12383_v3  ;;  %v9479_v19 = vpop.f32.mrb[175].mxu0  ;;  %v6864_v42 = vpop.f32.mrb[174].mxu1 }
 0x4cf   : > { %v9544_v15 = vpop.f32.mrb[175].mxu1 }
 0x4d0   : > { %7071 = vst.msk [vmem:[%s11531_s29 + $0xb8] sm:$0xff] %vm391_vm3, %v7050_v28  ;;  %v7030_v9 = vmax.f32 %v7009_v33, 0.0  ;;  %v6989_v11 = vadd.f32 %v12441_v35, %v6968_v27  ;;  %v6948_v40 = vadd.f32 %v12434_v2, %v6673_v29 }
 0x4d1   : > { %v6594_v36 = vpop.f32.mrb[176].mxu0 }
 0x4d2   : > { %v7051_v17 = vadd.f32 %v7030_v9, %v10106_v61  ;;  %v7010_v23 = vsub.f32 %v6989_v11, %v10106_v61  ;;  %v6969_v49 = vadd.f32 %v6948_v40, %v6864_v42  ;;  %v6674_v56 = vadd.f32 %v6594_v36, %v12386_v62  ;;  %v9482_v3 = vpop.f32.mrb[177].mxu0  ;;  %v6869_v25 = vpop.f32.mrb[176].mxu1 }
 0x4d3   : > { %v9547_v32 = vpop.f32.mrb[177].mxu1 }
 0x4d4   : > { %7072 = vst.msk [vmem:[%s11531_s29 + $0xc0] sm:$0xff] %vm391_vm3, %v7051_v17  ;;  %v7031_v0 = vmax.f32 %v7010_v23, 0.0  ;;  %v6990_v57 = vadd.f32 %v12441_v35, %v6969_v49  ;;  %v6949_v59 = vadd.f32 %v12434_v2, %v6674_v56 }
 0x4d5   : > { %v6599_v16 = vpop.f32.mrb[178].mxu0 }
 0x4d6   : > { %v7052_v52 = vadd.f32 %v7031_v0, %v10106_v61  ;;  %v7011_v1 = vsub.f32 %v6990_v57, %v10106_v61  ;;  %v6970_v51 = vadd.f32 %v6949_v59, %v6869_v25  ;;  %v6675_v46 = vadd.f32 %v6599_v16, %v12389_v60  ;;  %v9485_v62 = vpop.f32.mrb[179].mxu0  ;;  %v6874_v58 = vpop.f32.mrb[178].mxu1 }
 0x4d7   : > { %v9550_v39 = vpop.f32.mrb[179].mxu1 }
 0x4d8   : > { %7073 = vst.msk [vmem:[%s11531_s29 + $0xc8] sm:$0xff] %vm391_vm3, %v7052_v52  ;;  %v7032_v4 = vmax.f32 %v7011_v1, 0.0  ;;  %v6991_v5 = vadd.f32 %v12441_v35, %v6970_v51  ;;  %v6950_v53 = vadd.f32 %v12434_v2, %v6675_v46 }
 0x4d9   : > { %v6604_v43 = vpop.f32.mrb[180].mxu0 }
 0x4da   : > { %v7053_v18 = vadd.f32 %v7032_v4, %v10106_v61  ;;  %v7012_v24 = vsub.f32 %v6991_v5, %v10106_v61  ;;  %v6971_v21 = vadd.f32 %v6950_v53, %v6874_v58  ;;  %v6676_v12 = vadd.f32 %v6604_v43, %v12392_v31  ;;  %v9488_v60 = vpop.f32.mrb[181].mxu0  ;;  %v6879_v30 = vpop.f32.mrb[180].mxu1 }
 0x4db   : > { %v9553_v38 = vpop.f32.mrb[181].mxu1 }
 0x4dc   : > { %7074 = vst.msk [vmem:[%s11531_s29 + $0xd0] sm:$0xff] %vm391_vm3, %v7053_v18  ;;  %v7033_v37 = vmax.f32 %v7012_v24, 0.0  ;;  %v6992_v55 = vadd.f32 %v12441_v35, %v6971_v21  ;;  %v6951_v45 = vadd.f32 %v12434_v2, %v6676_v12 }
 0x4dd   : > { %v6609_v10 = vpop.f32.mrb[182].mxu0 }
 0x4de   : > { %v7054_v22 = vadd.f32 %v7033_v37, %v10106_v61  ;;  %v7013_v47 = vsub.f32 %v6992_v55, %v10106_v61  ;;  %v6972_v63 = vadd.f32 %v6951_v45, %v6879_v30  ;;  %v6677_v8 = vadd.f32 %v6609_v10, %v12395_v7  ;;  %v9491_v31 = vpop.f32.mrb[183].mxu0  ;;  %v6884_v28 = vpop.f32.mrb[182].mxu1 }
 0x4df   : > { %v9556_v33 = vpop.f32.mrb[183].mxu1 }
 0x4e0   : > { %7075 = vst.msk [vmem:[%s11531_s29 + $0xd8] sm:$0xff] %vm391_vm3, %v7054_v22  ;;  %v7034_v27 = vmax.f32 %v7013_v47, 0.0  ;;  %v6993_v29 = vadd.f32 %v12441_v35, %v6972_v63  ;;  %v6952_v19 = vadd.f32 %v12434_v2, %v6677_v8 }
 0x4e1   : > { %v6614_v42 = vpop.f32.mrb[184].mxu0 }
 0x4e2   : > { %v7055_v15 = vadd.f32 %v7034_v27, %v10106_v61  ;;  %v7014_v9 = vsub.f32 %v6993_v29, %v10106_v61  ;;  %v6973_v11 = vadd.f32 %v6952_v19, %v6884_v28  ;;  %v6678_v40 = vadd.f32 %v6614_v42, %v12398_v54  ;;  %v9494_v7 = vpop.f32.mrb[185].mxu0  ;;  %v6889_v36 = vpop.f32.mrb[184].mxu1 }
 0x4e3   : > { %v9559_v17 = vpop.f32.mrb[185].mxu1 }
 0x4e4   : > { %7076 = vst.msk [vmem:[%s11531_s29 + $0xe0] sm:$0xff] %vm391_vm3, %v7055_v15  ;;  %v7035_v23 = vmax.f32 %v7014_v9, 0.0  ;;  %v6994_v49 = vadd.f32 %v12441_v35, %v6973_v11  ;;  %v6953_v56 = vadd.f32 %v12434_v2, %v6678_v40 }
 0x4e5   : > { %v6619_v3 = vpop.f32.mrb[186].mxu0 }
 0x4e6   : > { %v7056_v25 = vadd.f32 %v7035_v23, %v10106_v61  ;;  %v7015_v32 = vsub.f32 %v6994_v49, %v10106_v61  ;;  %v6974_v0 = vadd.f32 %v6953_v56, %v6889_v36  ;;  %v6679_v57 = vadd.f32 %v6619_v3, %v12401_v48  ;;  %v9497_v54 = vpop.f32.mrb[187].mxu0  ;;  %v6894_v59 = vpop.f32.mrb[186].mxu1 }
 0x4e7   : > { %v9562_v16 = vpop.f32.mrb[187].mxu1 }
 0x4e8   : > { %7077 = vst.msk [vmem:[%s11531_s29 + $0xe8] sm:$0xff] %vm391_vm3, %v7056_v25  ;;  %v7036_v52 = vmax.f32 %v7015_v32, 0.0  ;;  %v6995_v1 = vadd.f32 %v12441_v35, %v6974_v0  ;;  %v6954_v51 = vadd.f32 %v12434_v2, %v6679_v57 }
 0x4e9   : > { %v6624_v46 = vpop.f32.mrb[188].mxu0 }
 0x4ea   : > { %v7057_v62 = vadd.f32 %v7036_v52, %v10106_v61  ;;  %v7016_v58 = vsub.f32 %v6995_v1, %v10106_v61  ;;  %v6975_v39 = vadd.f32 %v6954_v51, %v6894_v59  ;;  %v6680_v4 = vadd.f32 %v6624_v46, %v12404_v6  ;;  %v9500_v48 = vpop.f32.mrb[189].mxu0  ;;  %v6899_v5 = vpop.f32.mrb[188].mxu1 }
 0x4eb   : > { %v9565_v53 = vpop.f32.mrb[189].mxu1 }
 0x4ec   : > { %7078 = vst.msk [vmem:[%s11531_s29 + $0xf0] sm:$0xff] %vm391_vm3, %v7057_v62  ;;  %v7037_v43 = vmax.f32 %v7016_v58, 0.0  ;;  %v6996_v18 = vadd.f32 %v12441_v35, %v6975_v39  ;;  %v6955_v24 = vadd.f32 %v12434_v2, %v6680_v4 }
 0x4ed   : > { %v6629_v21 = vpop.f32.mrb[190].mxu0 }
 0x4ee   : > { %v7058_v12 = vadd.f32 %v7037_v43, %v10106_v61  ;;  %v7017_v60 = vsub.f32 %v6996_v18, %v10106_v61  ;;  %v6976_v30 = vadd.f32 %v6955_v24, %v6899_v5  ;;  %v6681_v38 = vadd.f32 %v6629_v21, %v12407_v34  ;;  %v9503_v6 = vpop.f32.mrb[191].mxu0  ;;  %v6904_v37 = vpop.f32.mrb[190].mxu1 }
 0x4ef   : > { %v9568_v55 = vpop.f32.mrb[191].mxu1 }
 0x4f0   : > { %7079 = vst.msk [vmem:[%s11531_s29 + $0xf8] sm:$0xff] %vm391_vm3, %v7058_v12  ;;  %v7038_v45 = vmax.f32 %v7017_v60, 0.0  ;;  %v6997_v10 = vadd.f32 %v12441_v35, %v6976_v30  ;;  %v6956_v22 = vadd.f32 %v12434_v2, %v6681_v38 }
 0x4f1   : > { %v6634_v47 = vpop.f32.mrb[192].mxu0 }
 0x4f2   : > { %v7059_v63 = vadd.f32 %v7038_v45, %v10106_v61  ;;  %v7018_v8 = vsub.f32 %v6997_v10, %v10106_v61  ;;  %v6977_v31 = vadd.f32 %v6956_v22, %v6904_v37  ;;  %v6682_v28 = vadd.f32 %v6634_v47, %v12410_v14  ;;  %v9506_v34 = vpop.f32.mrb[193].mxu0  ;;  %v6909_v33 = vpop.f32.mrb[192].mxu1 }
 0x4f3   : > { %v9571_v27 = vpop.f32.mrb[193].mxu1 }
 0x4f4   : > { %7080 = vst.msk [vmem:[%s11531_s29 + $0x100] sm:$0xff] %vm391_vm3, %v7059_v63  ;;  %v7039_v29 = vmax.f32 %v7018_v8, 0.0  ;;  %v6998_v19 = vadd.f32 %v12441_v35, %v6977_v31  ;;  %v6957_v42 = vadd.f32 %v12434_v2, %v6682_v28 }
 0x4f5   : > { %v6639_v15 = vpop.f32.mrb[194].mxu0 }
 0x4f6   : > { %v7060_v9 = vadd.f32 %v7039_v29, %v10106_v61  ;;  %v7019_v11 = vsub.f32 %v6998_v19, %v10106_v61  ;;  %v6978_v40 = vadd.f32 %v6957_v42, %v6909_v33  ;;  %v6683_v7 = vadd.f32 %v6639_v15, %v12413_v44  ;;  %v9509_v14 = vpop.f32.mrb[195].mxu0  ;;  %v6914_v36 = vpop.f32.mrb[194].mxu1 }
 0x4f7   : > { %v9574_v17 = vpop.f32.mrb[195].mxu1 }
 0x4f8   : > { %7081 = vst.msk [vmem:[%s11531_s29 + $0x108] sm:$0xff] %vm391_vm3, %v7060_v9  ;;  %v7040_v23 = vmax.f32 %v7019_v11, 0.0  ;;  %v6999_v49 = vadd.f32 %v12441_v35, %v6978_v40  ;;  %v6958_v56 = vadd.f32 %v12434_v2, %v6683_v7 }
 0x4f9   : > { %v6644_v3 = vpop.f32.mrb[196].mxu0 }
 0x4fa   : > { %v7061_v25 = vadd.f32 %v7040_v23, %v10106_v61  ;;  %v7020_v32 = vsub.f32 %v6999_v49, %v10106_v61  ;;  %v6979_v0 = vadd.f32 %v6958_v56, %v6914_v36  ;;  %v6684_v57 = vadd.f32 %v6644_v3, %v12416_v50  ;;  %v9512_v44 = vpop.f32.mrb[197].mxu0  ;;  %v6919_v54 = vpop.f32.mrb[196].mxu1 }
 0x4fb   : > { %v9577_v59 = vpop.f32.mrb[197].mxu1 }
 0x4fc   : > { %7082 = vst.msk [vmem:[%s11531_s29 + $0x110] sm:$0xff] %vm391_vm3, %v7061_v25  ;;  %v7041_v16 = vmax.f32 %v7020_v32, 0.0  ;;  %v7000_v52 = vadd.f32 %v12441_v35, %v6979_v0  ;;  %v6959_v1 = vadd.f32 %v12434_v2, %v6684_v57 }
 0x4fd   : > { %v6649_v51 = vpop.f32.mrb[198].mxu0 }
 0x4fe   : > { %v7062_v46 = vadd.f32 %v7041_v16, %v10106_v61  ;;  %v7021_v62 = vsub.f32 %v7000_v52, %v10106_v61  ;;  %v6980_v58 = vadd.f32 %v6959_v1, %v6919_v54  ;;  %v6685_v39 = vadd.f32 %v6649_v51, %v12419_v20  ;;  %v9515_v50 = vpop.f32.mrb[199].mxu0  ;;  %v6924_v4 = vpop.f32.mrb[198].mxu1 }
 0x4ff   : > { %v9580_v48 = vpop.f32.mrb[199].mxu1 }
 0x500   : > { %7083 = vst.msk [vmem:[%s11531_s29 + $0x118] sm:$0xff] %vm391_vm3, %v7062_v46  ;;  %v7042_v5 = vmax.f32 %v7021_v62, 0.0  ;;  %v7001_v53 = vadd.f32 %v12441_v35, %v6980_v58  ;;  %v6960_v43 = vadd.f32 %v12434_v2, %v6685_v39 }
 0x501   : > { %v6654_v18 = vpop.f32.mrb[200].mxu0 }
 0x502   : > { %v7063_v24 = vadd.f32 %v7042_v5, %v10106_v61  ;;  %v7022_v21 = vsub.f32 %v7001_v53, %v10106_v61  ;;  %v6981_v12 = vadd.f32 %v6960_v43, %v6924_v4  ;;  %v6686_v60 = vadd.f32 %v6654_v18, %v12422_v41  ;;  %v9518_v20 = vpop.f32.mrb[201].mxu0  ;;  %v6929_v30 = vpop.f32.mrb[200].mxu1 }
 0x503   : > { %v9583_v38 = vpop.f32.mrb[201].mxu1 }
 0x504   : > { %7084 = vst.msk [vmem:[%s11531_s29 + $0x120] sm:$0xff] %vm391_vm3, %v7063_v24  ;;  %v7043_v6 = vmax.f32 %v7022_v21, 0.0  ;;  %v7002_v37 = vadd.f32 %v12441_v35, %v6981_v12  ;;  %v6961_v55 = vadd.f32 %v12434_v2, %v6686_v60 }
 0x505   : > { %v6659_v45 = vpop.f32.mrb[202].mxu0 }
 0x506   : > { %v7064_v10 = vadd.f32 %v7043_v6, %v10106_v61  ;;  %v7023_v22 = vsub.f32 %v7002_v37, %v10106_v61  ;;  %v6982_v47 = vadd.f32 %v6961_v55, %v6929_v30  ;;  %v6687_v63 = vadd.f32 %v6659_v45, %v12425_v26  ;;  %v9521_v41 = vpop.f32.mrb[203].mxu0  ;;  %v6934_v8 = vpop.f32.mrb[202].mxu1 }
 0x507   : > { %v9586_v31 = vpop.f32.mrb[203].mxu1 }
 0x508   : > { %7085 = vst.msk [vmem:[%s11531_s29 + $0x128] sm:$0xff] %vm391_vm3, %v7064_v10  ;;  %v7044_v28 = vmax.f32 %v7023_v22, 0.0  ;;  %v7003_v34 = vadd.f32 %v12441_v35, %v6982_v47  ;;  %v6962_v33 = vadd.f32 %v12434_v2, %v6687_v63 }
 0x509   : > { %v6664_v27 = vpop.f32.mrb[204].mxu0 }
 0x50a   : > { %v7065_v29 = vadd.f32 %v7044_v28, %v10106_v61  ;;  %v7024_v19 = vsub.f32 %v7003_v34, %v10106_v61  ;;  %v6983_v42 = vadd.f32 %v6962_v33, %v6934_v8  ;;  %v6688_v26 = vadd.f32 %v6664_v27, %v12428_v13  ;;  %v9524_v15 = vpop.f32.mrb[205].mxu0  ;;  %v6939_v9 = vpop.f32.mrb[204].mxu1 }
 0x50b   : > { %v9589_v11 = vpop.f32.mrb[205].mxu1 }
 0x50c   : > { %7086 = vst.msk [vmem:[%s11531_s29 + $0x130] sm:$0xff] %vm391_vm3, %v7065_v29  ;;  %v7045_v40 = vmax.f32 %v7024_v19, 0.0  ;;  %v7004_v7 = vadd.f32 %v12441_v35, %v6983_v42  ;;  %v6963_v14 = vadd.f32 %v12434_v2, %v6688_v26 }
 0x50e   : > { %v7066_v36 = vadd.f32 %v7045_v40, %v10106_v61  ;;  %v7025_v17 = vsub.f32 %v7004_v7, %v10106_v61  ;;  %v6984_v23 = vadd.f32 %v6963_v14, %v6939_v9 }
 0x510   : > { %7087 = vst.msk [vmem:[%s11531_s29 + $0x138] sm:$0xff] %vm391_vm3, %v7066_v36  ;;  %v7046_v13 = vmax.f32 %v7025_v17, 0.0  ;;  %v7005_v49 = vadd.f32 %v12441_v35, %v6984_v23 }
 0x512   : > { %v7067_v56 = vadd.f32 %v7046_v13, %v10106_v61  ;;  %v7026_v3 = vsub.f32 %v7005_v49, %v10106_v61 }
 0x514   : > { %7088 = vst.msk [vmem:[%s11531_s29 + $0x140] sm:$0xff] %vm391_vm3, %v7067_v56  ;;  %v7047_v25 = vmax.f32 %v7026_v3, 0.0 }
 0x516   : > { %v7068_v32 = vadd.f32 %v7047_v25, %v10106_v61 }
 0x518   : > { %7089 = vst.msk [vmem:[%s11531_s29 + $0x148] sm:$0xff] %vm391_vm3, %v7068_v32 }
 0x519 PF: > { %s21_s15 = sadd.s32 1, %s9626_s15  }
 0x51a   : > { %p18_p4 = scmp.ge.s32.totalorder %s21_s15, 4  }
 0x51c   :  { %20 = sbr.rel (!%p18_p4) target bundleno = 2 (0x2), region = 101 }

</bundles_post_ra>
